<compile_context>
chip_gen: v7x
topology: tpu7x:2x2x1
jax: 0.10.0
libtpu: 0.0.40
codegen_flags: <defaults>
</compile_context>

<pallas_src>
import functools

import jax
import jax.numpy as jnp
from jax.experimental import pallas as pl
from jax.experimental.pallas import tpu as pltpu


def _gelu(x):
    # exact GELU (PyTorch nn.GELU default, approximate='none')
    return 0.5 * x * (1.0 + jax.lax.erf(x * 0.7071067811865476))


# ---------------------------------------------------------------------------
# Fused kernel: depthwise conv + GELU + BN + residual, then 1x1 conv + GELU + BN
# ---------------------------------------------------------------------------
def _convmixer_block_kernel(x_ref, dw_w_ref, dw_b_ref, s1_ref, sh1_ref,
                            pw_w_ref, pw_b_ref, s2_ref, sh2_ref,
                            o_ref, xpad_ref, *, H, W, K, P):
    C = x_ref.shape[-1]
    x = x_ref[0].astype(jnp.float32)                       # (H, W, C)

    # ---- build zero-padded tile in VMEM (no HBM pad round trip) ------------
    # Re-zero every step so the halo is correct even when the grid axis is
    # split across TensorCores (scratch buffers are per-core).
    xpad_ref[...] = jnp.zeros_like(xpad_ref)
    xpad_ref[P:P + H, P:P + W, :] = x

    # ---- depthwise conv (groups=C) + bias + GELU + BN + residual -----------
    wt = dw_w_ref[...].astype(jnp.float32)                 # (K*K, C) hoisted load
    acc = jnp.zeros((H, W, C), jnp.float32)
    for j in range(K):
        # One (possibly sublane-misaligned) W-slice per kernel column;
        # the i-shifts below are on the leading H axis and are free.
        xj = xpad_ref[:, j:j + W, :]                       # (H+2P, W, C)
        for i in range(K):
            acc = acc + xj[i:i + H] * wt[i * K + j]
    y = _gelu(acc + dw_b_ref[0])                           # conv bias + GELU
    y = y * s1_ref[0] + sh1_ref[0]                         # BatchNorm2d (eval)
    y = y + x                                              # residual (VMEM copy reused)

    # ---- pointwise (1x1) conv as MXU matmul + bias + GELU + BN -------------
    z = y.reshape(H * W, C).astype(pw_w_ref.dtype)         # bf16 by default
    z = jnp.dot(z, pw_w_ref[...], preferred_element_type=jnp.float32)
    z = _gelu(z + pw_b_ref[0])
    z = z * s2_ref[0] + sh2_ref[0]
    o_ref[0] = z.astype(o_ref.dtype)


def conv_mixer_block_nhwc(x_nhwc, params, *, kernel_size,
                          matmul_dtype=jnp.bfloat16,
                          vmem_limit_bytes=64 * 1024 * 1024):
    """Fused ConvMixer block on NHWC input. Returns NHWC output."""
    N, H, W, C = x_nhwc.shape
    assert kernel_size % 2 == 1, (
        "padding='same' is asymmetric for even kernel_size in PyTorch; "
        "only odd kernel_size is supported")
    K = kernel_size
    P = (K - 1) // 2

    eps = 1e-5
    # BatchNorm (eval): y = (x - mean)/sqrt(var+eps)*gamma + beta = x*s + sh
    s1 = params["bn1_gamma"] / jnp.sqrt(params["bn1_var"] + eps)
    sh1 = params["bn1_beta"] - params["bn1_mean"] * s1
    s2 = params["bn2_gamma"] / jnp.sqrt(params["bn2_var"] + eps)
    sh2 = params["bn2_beta"] - params["bn2_mean"] * s2

    # depthwise weight (C,1,K,K) -> (K*K, C); pointwise (Cout,Cin,1,1) -> (Cin,Cout)
    dw_flat = jnp.transpose(params["dw_w"][:, 0], (1, 2, 0)).reshape(K * K, C)
    pw_T = params["pw_w"][:, :, 0, 0].T.astype(matmul_dtype)

    vec = lambda v: v.reshape(1, C).astype(jnp.float32)
    kernel = functools.partial(_convmixer_block_kernel, H=H, W=W, K=K, P=P)

    # NOTE: per-image blocks keep the whole fused pipeline in VMEM. For very
    # large H*W*C, tile H into row bands with a P-row halo instead.
    out = pl.pallas_call(
        kernel,
        out_shape=jax.ShapeDtypeStruct((N, H * W, C), x_nhwc.dtype),
        grid_spec=pltpu.PrefetchScalarGridSpec(
            num_scalar_prefetch=0,
            grid=(N,),
            in_specs=[
                pl.BlockSpec((1, H, W, C), lambda n: (n, 0, 0, 0)),  # x (DMA'd once)
                pl.BlockSpec((K * K, C), lambda n: (0, 0)),          # depthwise weight
                pl.BlockSpec((1, C), lambda n: (0, 0)),              # depthwise bias
                pl.BlockSpec((1, C), lambda n: (0, 0)),              # bn1 scale
                pl.BlockSpec((1, C), lambda n: (0, 0)),              # bn1 shift
                pl.BlockSpec((C, C), lambda n: (0, 0)),              # pointwise weight (VMEM-resident)
                pl.BlockSpec((1, C), lambda n: (0, 0)),              # pointwise bias
                pl.BlockSpec((1, C), lambda n: (0, 0)),              # bn2 scale
                pl.BlockSpec((1, C), lambda n: (0, 0)),              # bn2 shift
            ],
            out_specs=pl.BlockSpec((1, H * W, C), lambda n: (n, 0, 0)),
            scratch_shapes=[pltpu.VMEM((H + 2 * P, W + 2 * P, C), jnp.float32)],
        ),
        compiler_params=pltpu.CompilerParams(
            dimension_semantics=("parallel",),
            vmem_limit_bytes=vmem_limit_bytes),
    )(x_nhwc, dw_flat, vec(params["dw_b"]), vec(s1), vec(sh1),
      pw_T, vec(params["pw_b"]), vec(s2), vec(sh2))
    return out.reshape(N, H, W, C)


def conv_mixer_block(x_nchw, params, *, kernel_size, **kw):
    # NCHW (PyTorch) wrapper. When stacking blocks, call conv_mixer_block_nhwc
    # directly to avoid a per-block NCHW<->NHWC HBM transpose pair.
    y = conv_mixer_block_nhwc(jnp.transpose(x_nchw, (0, 2, 3, 1)), params,
                              kernel_size=kernel_size, **kw)
    return jnp.transpose(y, (0, 3, 1, 2))


# ---------------------------------------------------------------------------
# Pure-JAX reference (same math, same bf16 matmul) for verification
# ---------------------------------------------------------------------------
def conv_mixer_block_ref(x_nchw, params, *, kernel_size,
                         matmul_dtype=jnp.bfloat16):
    N, C, H, W = x_nchw.shape
    K = kernel_size
    P = (K - 1) // 2
    eps = 1e-5
    s1 = params["bn1_gamma"] / jnp.sqrt(params["bn1_var"] + eps)
    sh1 = params["bn1_beta"] - params["bn1_mean"] * s1
    s2 = params["bn2_gamma"] / jnp.sqrt(params["bn2_var"] + eps)
    sh2 = params["bn2_beta"] - params["bn2_mean"] * s2

    x = jnp.transpose(x_nchw, (0, 2, 3, 1)).astype(jnp.float32)   # NHWC
    xp = jnp.pad(x, ((0, 0), (P, P), (P, P), (0, 0)))
    w = jnp.transpose(params["dw_w"][:, 0], (1, 2, 0))            # (K, K, C)
    acc = jnp.zeros_like(x)
    for j in range(K):
        for i in range(K):
            acc = acc + xp[:, i:i + H, j:j + W, :] * w[i, j]
    y = _gelu(acc + params["dw_b"]) * s1 + sh1 + x

    pw_T = params["pw_w"][:, :, 0, 0].T.astype(matmul_dtype)
    z = jnp.dot(y.reshape(-1, C).astype(matmul_dtype), pw_T,
                preferred_element_type=jnp.float32)
    z = _gelu(z + params["pw_b"]) * s2 + sh2
    z = z.reshape(N, H, W, C)
    return jnp.transpose(z, (0, 3, 1, 2)).astype(x_nchw.dtype)


def init_params(key, dim, kernel_size):
    ks = jax.random.split(key, 10)
    return {
        "dw_w": 0.1 * jax.random.normal(ks[0], (dim, 1, kernel_size, kernel_size), jnp.float32),
        "dw_b": 0.1 * jax.random.normal(ks[1], (dim,), jnp.float32),
        "pw_w": 0.1 * jax.random.normal(ks[2], (dim, dim, 1, 1), jnp.float32),
        "pw_b": 0.1 * jax.random.normal(ks[3], (dim,), jnp.float32),
        "bn1_gamma": 1.0 + 0.1 * jax.random.normal(ks[4], (dim,), jnp.float32),
        "bn1_beta": 0.1 * jax.random.normal(ks[5], (dim,), jnp.float32),
        "bn1_mean": 0.1 * jax.random.normal(ks[6], (dim,), jnp.float32),
        "bn1_var": jnp.abs(1.0 + 0.1 * jax.random.normal(ks[7], (dim,), jnp.float32)),
        "bn2_gamma": 1.0 + 0.1 * jax.random.normal(ks[8], (dim,), jnp.float32),
        "bn2_beta": 0.1 * jax.random.normal(ks[9], (dim,), jnp.float32),
        "bn2_mean": jnp.zeros((dim,), jnp.float32),
        "bn2_var": jnp.ones((dim,), jnp.float32),
    }


if __name__ == "__main__":
    # dim=128 keeps channels lane-dense (full vreg lanes, unmasked stores).
    dim, kernel_size = 128, 3
    N, H, W = 2, 16, 16

    key = jax.random.PRNGKey(0)
    kx, kp = jax.random.split(key)
    x = jax.random.normal(kx, (N, dim, H, W), jnp.float32)   # NCHW like PyTorch
    params = init_params(kp, dim, kernel_size)

    out = conv_mixer_block(x, params, kernel_size=kernel_size)
    jax.block_until_ready(out)
    assert out.shape == (N, dim, H, W)

    ref = conv_mixer_block_ref(x, params, kernel_size=kernel_size)
    err = float(jnp.max(jnp.abs(out - ref)))
    # loose bound: both paths use bf16 matmul inputs; residual diff comes only
    # from f32 op-ordering / bf16 rounding boundaries.
    assert err == err and err < 5e-2, f"max |err| = {err}"
    print("KERNEL_OK")
</pallas_src>

<mosaic_0001>
module attributes {stable_mosaic.version = 11 : i64} {
  func.func @_convmixer_block_kernel(%arg0: i32, %arg1: memref<1x16x16x128xf32, #tpu.memory_space<vmem>>, %arg2: memref<9x128xf32, #tpu.memory_space<vmem>>, %arg3: memref<1x128xf32, #tpu.memory_space<vmem>>, %arg4: memref<1x128xf32, #tpu.memory_space<vmem>>, %arg5: memref<1x128xf32, #tpu.memory_space<vmem>>, %arg6: memref<128x128xbf16, #tpu.memory_space<vmem>>, %arg7: memref<1x128xf32, #tpu.memory_space<vmem>>, %arg8: memref<1x128xf32, #tpu.memory_space<vmem>>, %arg9: memref<1x128xf32, #tpu.memory_space<vmem>>, %arg10: memref<1x256x128xf32, #tpu.memory_space<vmem>>, %arg11: memref<18x18x128xf32, #tpu.memory_space<vmem>>) attributes {dimension_semantics = [#tpu.dimension_semantics<parallel>], iteration_bounds = array<i64: 2>, scalar_prefetch = 0 : i64, scratch_operands = 1 : i64, tpu.core_type = #tpu.core_type<tc>, window_params = [{transform_indices = @transform_0, window_bounds = array<i64: 1, 16, 16, 128>}, {pipeline_mode = #tpu.pipeline_mode<synchronous>, transform_indices = @transform_1, window_bounds = array<i64: 9, 128>}, {pipeline_mode = #tpu.pipeline_mode<synchronous>, transform_indices = @transform_2, window_bounds = array<i64: 1, 128>}, {pipeline_mode = #tpu.pipeline_mode<synchronous>, transform_indices = @transform_3, window_bounds = array<i64: 1, 128>}, {pipeline_mode = #tpu.pipeline_mode<synchronous>, transform_indices = @transform_4, window_bounds = array<i64: 1, 128>}, {pipeline_mode = #tpu.pipeline_mode<synchronous>, transform_indices = @transform_5, window_bounds = array<i64: 128, 128>}, {pipeline_mode = #tpu.pipeline_mode<synchronous>, transform_indices = @transform_6, window_bounds = array<i64: 1, 128>}, {pipeline_mode = #tpu.pipeline_mode<synchronous>, transform_indices = @transform_7, window_bounds = array<i64: 1, 128>}, {pipeline_mode = #tpu.pipeline_mode<synchronous>, transform_indices = @transform_8, window_bounds = array<i64: 1, 128>}, {transform_indices = @transform_9, window_bounds = array<i64: 1, 256, 128>}]} {
    %c0 = arith.constant 0 : index
    %c0_0 = arith.constant 0 : index
    %c0_1 = arith.constant 0 : index
    %c0_2 = arith.constant 0 : index
    %0 = vector.load %arg1[%c0, %c0_0, %c0_1, %c0_2] : memref<1x16x16x128xf32, #tpu.memory_space<vmem>>, vector<1x16x16x128xf32>
    %1 = vector.shape_cast %0 : vector<1x16x16x128xf32> to vector<16x16x128xf32>
    %cst = arith.constant 0.000000e+00 : f32
    %2 = vector.broadcast %cst : f32 to vector<18x18x128xf32>
    %c0_3 = arith.constant 0 : index
    %c0_4 = arith.constant 0 : index
    %c0_5 = arith.constant 0 : index
    %3 = vector.load %arg11[%c0_3, %c0_4, %c0_5] : memref<18x18x128xf32, #tpu.memory_space<vmem>>, vector<18x18x128xf32>
    tpu.vector_store %arg11[%c0_3, %c0_4, %c0_5], %2 {strides = array<i32>} : memref<18x18x128xf32, #tpu.memory_space<vmem>>, vector<18x18x128xf32>,
    %c1 = arith.constant 1 : index
    %c1_6 = arith.constant 1 : index
    %c0_7 = arith.constant 0 : index
    %4 = vector.load %arg11[%c1, %c1_6, %c0_7] : memref<18x18x128xf32, #tpu.memory_space<vmem>>, vector<16x16x128xf32>
    tpu.vector_store %arg11[%c1, %c1_6, %c0_7], %1 {strides = array<i32>} : memref<18x18x128xf32, #tpu.memory_space<vmem>>, vector<16x16x128xf32>,
    %c0_8 = arith.constant 0 : index
    %c0_9 = arith.constant 0 : index
    %5 = vector.load %arg2[%c0_8, %c0_9] : memref<9x128xf32, #tpu.memory_space<vmem>>, vector<9x128xf32>
    %cst_10 = arith.constant 0.000000e+00 : f32
    %6 = vector.broadcast %cst_10 : f32 to vector<16x16x128xf32>
    %c0_11 = arith.constant 0 : index
    %c0_12 = arith.constant 0 : index
    %c0_13 = arith.constant 0 : index
    %7 = vector.load %arg11[%c0_11, %c0_12, %c0_13] : memref<18x18x128xf32, #tpu.memory_space<vmem>>, vector<18x16x128xf32>
    %8 = vector.extract_strided_slice %7 {offsets = [0, 0, 0], sizes = [16, 16, 128], strides = [1, 1, 1]} : vector<18x16x128xf32> to vector<16x16x128xf32>
    %9 = vector.extract_strided_slice %5 {offsets = [0, 0], sizes = [1, 128], strides = [1, 1]} : vector<9x128xf32> to vector<1x128xf32>
    %10 = vector.shape_cast %9 : vector<1x128xf32> to vector<128xf32>
    %11 = vector.shape_cast %10 : vector<128xf32> to vector<1x1x128xf32>
    %12 = vector.broadcast %11 : vector<1x1x128xf32> to vector<16x16x128xf32>
    %13 = arith.mulf %8, %12 : vector<16x16x128xf32>
    %14 = arith.addf %6, %13 : vector<16x16x128xf32>
    %15 = vector.extract_strided_slice %7 {offsets = [1, 0, 0], sizes = [16, 16, 128], strides = [1, 1, 1]} : vector<18x16x128xf32> to vector<16x16x128xf32>
    %16 = vector.extract_strided_slice %5 {offsets = [3, 0], sizes = [1, 128], strides = [1, 1]} : vector<9x128xf32> to vector<1x128xf32>
    %17 = vector.shape_cast %16 : vector<1x128xf32> to vector<128xf32>
    %18 = vector.shape_cast %17 : vector<128xf32> to vector<1x1x128xf32>
    %19 = vector.broadcast %18 : vector<1x1x128xf32> to vector<16x16x128xf32>
    %20 = arith.mulf %15, %19 : vector<16x16x128xf32>
    %21 = arith.addf %14, %20 : vector<16x16x128xf32>
    %22 = vector.extract_strided_slice %7 {offsets = [2, 0, 0], sizes = [16, 16, 128], strides = [1, 1, 1]} : vector<18x16x128xf32> to vector<16x16x128xf32>
    %23 = vector.extract_strided_slice %5 {offsets = [6, 0], sizes = [1, 128], strides = [1, 1]} : vector<9x128xf32> to vector<1x128xf32>
    %24 = vector.shape_cast %23 : vector<1x128xf32> to vector<128xf32>
    %25 = vector.shape_cast %24 : vector<128xf32> to vector<1x1x128xf32>
    %26 = vector.broadcast %25 : vector<1x1x128xf32> to vector<16x16x128xf32>
    %27 = arith.mulf %22, %26 : vector<16x16x128xf32>
    %28 = arith.addf %21, %27 : vector<16x16x128xf32>
    %c0_14 = arith.constant 0 : index
    %c1_15 = arith.constant 1 : index
    %c0_16 = arith.constant 0 : index
    %29 = vector.load %arg11[%c0_14, %c1_15, %c0_16] : memref<18x18x128xf32, #tpu.memory_space<vmem>>, vector<18x16x128xf32>
    %30 = vector.extract_strided_slice %29 {offsets = [0, 0, 0], sizes = [16, 16, 128], strides = [1, 1, 1]} : vector<18x16x128xf32> to vector<16x16x128xf32>
    %31 = vector.extract_strided_slice %5 {offsets = [1, 0], sizes = [1, 128], strides = [1, 1]} : vector<9x128xf32> to vector<1x128xf32>
    %32 = vector.shape_cast %31 : vector<1x128xf32> to vector<128xf32>
    %33 = vector.shape_cast %32 : vector<128xf32> to vector<1x1x128xf32>
    %34 = vector.broadcast %33 : vector<1x1x128xf32> to vector<16x16x128xf32>
    %35 = arith.mulf %30, %34 : vector<16x16x128xf32>
    %36 = arith.addf %28, %35 : vector<16x16x128xf32>
    %37 = vector.extract_strided_slice %29 {offsets = [1, 0, 0], sizes = [16, 16, 128], strides = [1, 1, 1]} : vector<18x16x128xf32> to vector<16x16x128xf32>
    %38 = vector.extract_strided_slice %5 {offsets = [4, 0], sizes = [1, 128], strides = [1, 1]} : vector<9x128xf32> to vector<1x128xf32>
    %39 = vector.shape_cast %38 : vector<1x128xf32> to vector<128xf32>
    %40 = vector.shape_cast %39 : vector<128xf32> to vector<1x1x128xf32>
    %41 = vector.broadcast %40 : vector<1x1x128xf32> to vector<16x16x128xf32>
    %42 = arith.mulf %37, %41 : vector<16x16x128xf32>
    %43 = arith.addf %36, %42 : vector<16x16x128xf32>
    %44 = vector.extract_strided_slice %29 {offsets = [2, 0, 0], sizes = [16, 16, 128], strides = [1, 1, 1]} : vector<18x16x128xf32> to vector<16x16x128xf32>
    %45 = vector.extract_strided_slice %5 {offsets = [7, 0], sizes = [1, 128], strides = [1, 1]} : vector<9x128xf32> to vector<1x128xf32>
    %46 = vector.shape_cast %45 : vector<1x128xf32> to vector<128xf32>
    %47 = vector.shape_cast %46 : vector<128xf32> to vector<1x1x128xf32>
    %48 = vector.broadcast %47 : vector<1x1x128xf32> to vector<16x16x128xf32>
    %49 = arith.mulf %44, %48 : vector<16x16x128xf32>
    %50 = arith.addf %43, %49 : vector<16x16x128xf32>
    %c0_17 = arith.constant 0 : index
    %c2 = arith.constant 2 : index
    %c0_18 = arith.constant 0 : index
    %51 = vector.load %arg11[%c0_17, %c2, %c0_18] : memref<18x18x128xf32, #tpu.memory_space<vmem>>, vector<18x16x128xf32>
    %52 = vector.extract_strided_slice %51 {offsets = [0, 0, 0], sizes = [16, 16, 128], strides = [1, 1, 1]} : vector<18x16x128xf32> to vector<16x16x128xf32>
    %53 = vector.extract_strided_slice %5 {offsets = [2, 0], sizes = [1, 128], strides = [1, 1]} : vector<9x128xf32> to vector<1x128xf32>
    %54 = vector.shape_cast %53 : vector<1x128xf32> to vector<128xf32>
    %55 = vector.shape_cast %54 : vector<128xf32> to vector<1x1x128xf32>
    %56 = vector.broadcast %55 : vector<1x1x128xf32> to vector<16x16x128xf32>
    %57 = arith.mulf %52, %56 : vector<16x16x128xf32>
    %58 = arith.addf %50, %57 : vector<16x16x128xf32>
    %59 = vector.extract_strided_slice %51 {offsets = [1, 0, 0], sizes = [16, 16, 128], strides = [1, 1, 1]} : vector<18x16x128xf32> to vector<16x16x128xf32>
    %60 = vector.extract_strided_slice %5 {offsets = [5, 0], sizes = [1, 128], strides = [1, 1]} : vector<9x128xf32> to vector<1x128xf32>
    %61 = vector.shape_cast %60 : vector<1x128xf32> to vector<128xf32>
    %62 = vector.shape_cast %61 : vector<128xf32> to vector<1x1x128xf32>
    %63 = vector.broadcast %62 : vector<1x1x128xf32> to vector<16x16x128xf32>
    %64 = arith.mulf %59, %63 : vector<16x16x128xf32>
    %65 = arith.addf %58, %64 : vector<16x16x128xf32>
    %66 = vector.extract_strided_slice %51 {offsets = [2, 0, 0], sizes = [16, 16, 128], strides = [1, 1, 1]} : vector<18x16x128xf32> to vector<16x16x128xf32>
    %67 = vector.extract_strided_slice %5 {offsets = [8, 0], sizes = [1, 128], strides = [1, 1]} : vector<9x128xf32> to vector<1x128xf32>
    %68 = vector.shape_cast %67 : vector<1x128xf32> to vector<128xf32>
    %69 = vector.shape_cast %68 : vector<128xf32> to vector<1x1x128xf32>
    %70 = vector.broadcast %69 : vector<1x1x128xf32> to vector<16x16x128xf32>
    %71 = arith.mulf %66, %70 : vector<16x16x128xf32>
    %72 = arith.addf %65, %71 : vector<16x16x128xf32>
    %c0_19 = arith.constant 0 : index
    %c0_20 = arith.constant 0 : index
    %73 = vector.load %arg3[%c0_19, %c0_20] : memref<1x128xf32, #tpu.memory_space<vmem>>, vector<1x128xf32>
    %74 = vector.shape_cast %73 : vector<1x128xf32> to vector<128xf32>
    %75 = vector.shape_cast %74 : vector<128xf32> to vector<1x1x128xf32>
    %76 = vector.broadcast %75 : vector<1x1x128xf32> to vector<16x16x128xf32>
    %77 = arith.addf %72, %76 : vector<16x16x128xf32>
    %cst_21 = arith.constant 5.000000e-01 : f32
    %78 = vector.broadcast %cst_21 : f32 to vector<16x16x128xf32>
    %79 = arith.mulf %78, %77 : vector<16x16x128xf32>
    %cst_22 = arith.constant 0.707106769 : f32
    %80 = vector.broadcast %cst_22 : f32 to vector<16x16x128xf32>
    %81 = arith.mulf %77, %80 : vector<16x16x128xf32>
    %82 = math.erf %81 : vector<16x16x128xf32>
    %cst_23 = arith.constant 1.000000e+00 : f32
    %83 = vector.broadcast %cst_23 : f32 to vector<16x16x128xf32>
    %84 = arith.addf %83, %82 : vector<16x16x128xf32>
    %85 = arith.mulf %79, %84 : vector<16x16x128xf32>
    %c0_24 = arith.constant 0 : index
    %c0_25 = arith.constant 0 : index
    %86 = vector.load %arg4[%c0_24, %c0_25] : memref<1x128xf32, #tpu.memory_space<vmem>>, vector<1x128xf32>
    %87 = vector.shape_cast %86 : vector<1x128xf32> to vector<128xf32>
    %88 = vector.shape_cast %87 : vector<128xf32> to vector<1x1x128xf32>
    %89 = vector.broadcast %88 : vector<1x1x128xf32> to vector<16x16x128xf32>
    %90 = arith.mulf %85, %89 : vector<16x16x128xf32>
    %c0_26 = arith.constant 0 : index
    %c0_27 = arith.constant 0 : index
    %91 = vector.load %arg5[%c0_26, %c0_27] : memref<1x128xf32, #tpu.memory_space<vmem>>, vector<1x128xf32>
    %92 = vector.shape_cast %91 : vector<1x128xf32> to vector<128xf32>
    %93 = vector.shape_cast %92 : vector<128xf32> to vector<1x1x128xf32>
    %94 = vector.broadcast %93 : vector<1x1x128xf32> to vector<16x16x128xf32>
    %95 = arith.addf %90, %94 : vector<16x16x128xf32>
    %96 = arith.addf %95, %1 : vector<16x16x128xf32>
    %97 = vector.shape_cast %96 : vector<16x16x128xf32> to vector<256x128xf32>
    %98 = arith.truncf %97 : vector<256x128xf32> to vector<256x128xbf16>
    %c0_28 = arith.constant 0 : index
    %c0_29 = arith.constant 0 : index
    %99 = vector.load %arg6[%c0_28, %c0_29] : memref<128x128xbf16, #tpu.memory_space<vmem>>, vector<128x128xbf16>
    %cst_30 = arith.constant dense<0.000000e+00> : vector<256x128xf32>
    %100 = tpu.matmul %98, %99, %cst_30 {dimension_numbers = #tpu.dot_dimension_numbers<[1], [0], [0], [1], [0, 0, 1, 1], [], []>} : vector<256x128xbf16>, vector<128x128xbf16>, vector<256x128xf32> -> vector<256x128xf32>
    %c0_31 = arith.constant 0 : index
    %c0_32 = arith.constant 0 : index
    %101 = vector.load %arg7[%c0_31, %c0_32] : memref<1x128xf32, #tpu.memory_space<vmem>>, vector<1x128xf32>
    %102 = vector.shape_cast %101 : vector<1x128xf32> to vector<128xf32>
    %103 = vector.shape_cast %102 : vector<128xf32> to vector<1x128xf32>
    %104 = vector.broadcast %103 : vector<1x128xf32> to vector<256x128xf32>
    %105 = arith.addf %100, %104 : vector<256x128xf32>
    %cst_33 = arith.constant 5.000000e-01 : f32
    %106 = vector.broadcast %cst_33 : f32 to vector<256x128xf32>
    %107 = arith.mulf %106, %105 : vector<256x128xf32>
    %cst_34 = arith.constant 0.707106769 : f32
    %108 = vector.broadcast %cst_34 : f32 to vector<256x128xf32>
    %109 = arith.mulf %105, %108 : vector<256x128xf32>
    %110 = math.erf %109 : vector<256x128xf32>
    %cst_35 = arith.constant 1.000000e+00 : f32
    %111 = vector.broadcast %cst_35 : f32 to vector<256x128xf32>
    %112 = arith.addf %111, %110 : vector<256x128xf32>
    %113 = arith.mulf %107, %112 : vector<256x128xf32>
    %c0_36 = arith.constant 0 : index
    %c0_37 = arith.constant 0 : index
    %114 = vector.load %arg8[%c0_36, %c0_37] : memref<1x128xf32, #tpu.memory_space<vmem>>, vector<1x128xf32>
    %115 = vector.shape_cast %114 : vector<1x128xf32> to vector<128xf32>
    %116 = vector.shape_cast %115 : vector<128xf32> to vector<1x128xf32>
    %117 = vector.broadcast %116 : vector<1x128xf32> to vector<256x128xf32>
    %118 = arith.mulf %113, %117 : vector<256x128xf32>
    %c0_38 = arith.constant 0 : index
    %c0_39 = arith.constant 0 : index
    %119 = vector.load %arg9[%c0_38, %c0_39] : memref<1x128xf32, #tpu.memory_space<vmem>>, vector<1x128xf32>
    %120 = vector.shape_cast %119 : vector<1x128xf32> to vector<128xf32>
    %121 = vector.shape_cast %120 : vector<128xf32> to vector<1x128xf32>
    %122 = vector.broadcast %121 : vector<1x128xf32> to vector<256x128xf32>
    %123 = arith.addf %118, %122 : vector<256x128xf32>
    %c0_40 = arith.constant 0 : index
    %c0_41 = arith.constant 0 : index
    %c0_42 = arith.constant 0 : index
    %124 = vector.load %arg10[%c0_40, %c0_41, %c0_42] : memref<1x256x128xf32, #tpu.memory_space<vmem>>, vector<1x256x128xf32>
    %125 = vector.shape_cast %124 : vector<1x256x128xf32> to vector<256x128xf32>
    %126 = vector.shape_cast %123 : vector<256x128xf32> to vector<1x256x128xf32>
    tpu.vector_store %arg10[%c0_40, %c0_41, %c0_42], %126 {strides = array<i32>} : memref<1x256x128xf32, #tpu.memory_space<vmem>>, vector<1x256x128xf32>,
    return
  }
  func.func @transform_0(%arg0: i32) -> (i32, i32, i32, i32) {
    %c0_i32 = arith.constant 0 : i32
    %c0_i32_0 = arith.constant 0 : i32
    %c0_i32_1 = arith.constant 0 : i32
    %c0_i32_2 = arith.constant 0 : i32
    return %arg0, %c0_i32, %c0_i32_0, %c0_i32_1 : i32, i32, i32, i32
  }
  func.func @transform_1(%arg0: i32) -> (i32, i32) {
    %c0_i32 = arith.constant 0 : i32
    %c0_i32_0 = arith.constant 0 : i32
    %c0_i32_1 = arith.constant 0 : i32
    return %c0_i32, %c0_i32_0 : i32, i32
  }
  func.func @transform_2(%arg0: i32) -> (i32, i32) {
    %c0_i32 = arith.constant 0 : i32
    %c0_i32_0 = arith.constant 0 : i32
    %c0_i32_1 = arith.constant 0 : i32
    return %c0_i32, %c0_i32_0 : i32, i32
  }
  func.func @transform_3(%arg0: i32) -> (i32, i32) {
    %c0_i32 = arith.constant 0 : i32
    %c0_i32_0 = arith.constant 0 : i32
    %c0_i32_1 = arith.constant 0 : i32
    return %c0_i32, %c0_i32_0 : i32, i32
  }
  func.func @transform_4(%arg0: i32) -> (i32, i32) {
    %c0_i32 = arith.constant 0 : i32
    %c0_i32_0 = arith.constant 0 : i32
    %c0_i32_1 = arith.constant 0 : i32
    return %c0_i32, %c0_i32_0 : i32, i32
  }
  func.func @transform_5(%arg0: i32) -> (i32, i32) {
    %c0_i32 = arith.constant 0 : i32
    %c0_i32_0 = arith.constant 0 : i32
    %c0_i32_1 = arith.constant 0 : i32
    return %c0_i32, %c0_i32_0 : i32, i32
  }
  func.func @transform_6(%arg0: i32) -> (i32, i32) {
    %c0_i32 = arith.constant 0 : i32
    %c0_i32_0 = arith.constant 0 : i32
    %c0_i32_1 = arith.constant 0 : i32
    return %c0_i32, %c0_i32_0 : i32, i32
  }
  func.func @transform_7(%arg0: i32) -> (i32, i32) {
    %c0_i32 = arith.constant 0 : i32
    %c0_i32_0 = arith.constant 0 : i32
    %c0_i32_1 = arith.constant 0 : i32
    return %c0_i32, %c0_i32_0 : i32, i32
  }
  func.func @transform_8(%arg0: i32) -> (i32, i32) {
    %c0_i32 = arith.constant 0 : i32
    %c0_i32_0 = arith.constant 0 : i32
    %c0_i32_1 = arith.constant 0 : i32
    return %c0_i32, %c0_i32_0 : i32, i32
  }
  func.func @transform_9(%arg0: i32) -> (i32, i32, i32) {
    %c0_i32 = arith.constant 0 : i32
    %c0_i32_0 = arith.constant 0 : i32
    %c0_i32_1 = arith.constant 0 : i32
    return %arg0, %c0_i32, %c0_i32_0 : i32, i32, i32
  }
}

</mosaic_0001>

<bundles_post_ra>
// kernel: tpu_custom_call.1
= control target key start
LH: loop header
LB: loop body
LE: loop exit
PB: predicated region body
PF: predicated region fallthrough
CT: control target
= control target key end

     0   :  { %s4785_s0 = inlined_call_operand.hbm [shape: f32[2,16,16,128], index: 0, kind: input, shape index: {}]   ;;  %s4786_s1 = inlined_call_operand.hbm [shape: f32[9,128], index: 1, kind: input, shape index: {}]   ;;  %s4787_s2 = inlined_call_operand.hbm [shape: f32[1,128], index: 2, kind: input, shape index: {}]   ;;  %s4788_s3 = inlined_call_operand.hbm [shape: f32[1,128], index: 3, kind: input, shape index: {}]   ;;  %s4789_s4 = inlined_call_operand.hbm [shape: f32[1,128], index: 4, kind: input, shape index: {}]   ;;  %s4790_s5 = inlined_call_operand.hbm [shape: bf16[128,128], index: 5, kind: input, shape index: {}]   ;;  %s4791_s6 = inlined_call_operand.hbm [shape: f32[1,128], index: 6, kind: input, shape index: {}]   ;;  %s4792_s7 = inlined_call_operand.hbm [shape: f32[1,128], index: 7, kind: input, shape index: {}]   ;;  %s4793_s8 = inlined_call_operand.hbm [shape: f32[1,128], index: 8, kind: input, shape index: {}]   ;;  %s4794_s9 = inlined_call_operand.hbm [shape: f32[2,256,128], index: 9, kind: output, shape index: {}]  }
   0x1   :  { %4839 = sst [smem:[#allocation59_spill]] %s4786_s1 }
   0x2   :  { %4840 = sst [smem:[#allocation60_spill]] %s4788_s3 }
   0x3   :  { %4841 = sst [smem:[#allocation61_spill]] %s4794_s9 }
   0x4   :  { %14 = vsyncpa [#allocation4], 0 }
   0x5   :  { %16 = vsyncpa [#allocation4 + $0x1], 0 }
   0x6   :  { %17 = vsyncpa [#allocation7], 0 }
   0x7   :  { %18 = vsyncpa [#allocation10], 0 }
   0x8   :  { %19 = vsyncpa [#allocation13], 0 }
   0x9   :  { %20 = vsyncpa [#allocation16], 0 }
   0xa   :  { %21 = vsyncpa [#allocation5], 0 }
   0xb   :  { %23 = vsyncpa [#allocation5 + $0x1], 0  ;;  %s3132_s30 = smov 0   ;;  %s3134_s10 = smov 0  }
   0xc   :  { %s3136_s11 = smov 0   ;;  %s3138_s12 = smov 0  }
   0xd LB: > { %s3065_s13 = smov [#allocation6]   ;;  %s3153_s15 = sadd.s32 4294967295, %s3063_s12   ;;  %s3063_s12 = sphi %s3138_s12, %s4941_s12   ;;  %s3059_s11 = sphi %s3136_s11, %s4940_s11   ;;  %s3055_s10 = sphi %s3134_s10, %s4939_s10   ;;  %s3051_s30 = sphi %s3132_s30, %s4938_s30  }
   0xe   : > { %s266_s14 = sshll.u32 %s3065_s13, 4  ;;  %p2288_p0 = scmp.ge.s32.totalorder %s3063_s12, 1  ;;  %s3158_s14 = int_to_ptr.vmem [resolvable:$true] %s266_s14 }
   0xf   : > { %p4798_p1 = scmp.eq.s32.totalorder %s3153_s15, 0  ;;  %p254_p2 = scmp.lt.s32.totalorder %s3063_s12, 3 }
  0x10   : > { %s3066_s17 = smov [#allocation9]   ;;  %s3067_s20 = smov [#allocation12]  }
  0x11   : > { %p3160_p3 = pnand %p2288_p0, %p254_p2  ;;  %s291_s18 = sshll.u32 %s3066_s17, 4  ;;  %s3173_s18 = int_to_ptr.vmem [resolvable:$true] %s291_s18 }
  0x12   : > { %s312_s21 = sshll.u32 %s3067_s20, 4  ;;  %s4844_s1 = sld [smem:[#allocation59_spill]]  ;;  %s3175_s21 = int_to_ptr.vmem [resolvable:$true] %s312_s21 }
  0x13   : > { %s4842_s16 = scalar_select %p3160_p3, 1, 0 }
  0x14   : > { %p2458_p5 = pneg %p3160_p3 }
  0x16   : > { %p3169_p6 = pnand %p2458_p5, %p4798_p1 }
  0x18   : > { %s2727_s24 = scalar_lea.hbm %s4844_s1, 256  ;;  %p3185_p8 = pneg %p3169_p6 }
  0x19   : > { %p2728_p7 = scmp.ne.s32.totalorder %s4844_s1, %s2727_s24  ;;  %p2734_p11 = scmp.lt.u32.totalorder %s2727_s24, %s4844_s1 }
  0x1b   : > { %p2730_p9 = pnand %p3185_p8, %p2728_p7 }
  0x1d   : > { %p2731_p10 = pneg %p2730_p9 }
  0x1f   : > { %p2736_p12 = pnand %p2734_p11, %p2731_p10 }
  0x21   : > { %2739 = shalt.err (!%p2736_p12)
}
  0x22   : > { %s2740_s13 = scalar_lea.vmem %s3158_s14, 256  ;;  %p2748_p5 = scmp.lt.s32.totalorder %s3158_s14, %s3158_s14 }
  0x23   : > { %p2741_p13 = scmp.ne.s32.totalorder %s3158_s14, %s2740_s13  ;;  %p2749_p4 = scmp.lt.s32.totalorder %s2740_s13, %s2740_s13 }
  0x25   : > { %p2743_p0 = pnand %p2741_p13, %p3185_p8  ;;  %p2750_p7 = por %p2749_p4, %p2748_p5 }
  0x27   : > { %p2744_p2 = pneg %p2743_p0 }
  0x29   : > { %p2751_p9 = pnand %p2750_p7, %p2744_p2 }
  0x2b   : > { %2754 = shalt.err (!%p2751_p9)
}
  0x2c   : > { %s4796_s17 = smov 128   ;;  %s4797_s20 = smov 8  }
  0x2d   : > { %2461 = dma.hbm_to_vmem [thread:$0]  (!%p3169_p6), %s4844_s1, 256, %s3158_s14, [#allocation7], %s4796_s17, %s4796_s17, %s4797_s20  }
  0x2e   : > { %s4846_s3 = sld [smem:[#allocation60_spill]] }
  0x34   : > { %s2755_s26 = scalar_lea.hbm %s4846_s3, 16 }
  0x35   : > { %p2756_p4 = scmp.ne.s32.totalorder %s4846_s3, %s2755_s26  ;;  %p2762_p12 = scmp.lt.u32.totalorder %s2755_s26, %s4846_s3 }
  0x37   : > { %p2758_p10 = pnand %p2756_p4, %p3185_p8 }
  0x39   : > { %p2759_p11 = pneg %p2758_p10 }
  0x3b   : > { %p2764_p13 = pnand %p2762_p12, %p2759_p11 }
  0x3d   : > { %2767 = shalt.err (!%p2764_p13)
}
  0x3e   : > { %s2768_s14 = scalar_lea.vmem %s3173_s18, 16  ;;  %s2775_s22 = scalar_lea.vmem %s3173_s18, 32 }
  0x3f   : > { %p2769_p0 = scmp.ne.s32.totalorder %s3173_s18, %s2768_s14  ;;  %p2776_p7 = scmp.lt.s32.totalorder %s3173_s18, %s3173_s18 }
  0x40   : > { %p2777_p9 = scmp.lt.s32.totalorder %s2775_s22, %s2768_s14 }
  0x41   : > { %p2771_p2 = pnand %p2769_p0, %p3185_p8 }
  0x42   : > { %p2778_p4 = por %p2777_p9, %p2776_p7 }
  0x43   : > { %p2772_p5 = pneg %p2771_p2 }
  0x45   : > { %p2779_p10 = pnand %p2778_p4, %p2772_p5 }
  0x47   : > { %2782 = shalt.err (!%p2779_p10)
}
  0x48   : > { %2467 = dma.hbm_to_vmem [thread:$0]  (!%p3169_p6), %s4846_s3, 16, %s3173_s18, [#allocation10]  }
  0x49   : > { %s2783_s26 = scalar_lea.hbm %s4790_s5, 1024 }
  0x4a   : > { %p2784_p11 = scmp.ne.s32.totalorder %s4790_s5, %s2783_s26  ;;  %p2790_p0 = scmp.lt.u32.totalorder %s2783_s26, %s4790_s5 }
  0x4c   : > { %p2786_p12 = pnand %p2784_p11, %p3185_p8 }
  0x4e   : > { %p2787_p13 = pneg %p2786_p12 }
  0x50   : > { %p2792_p2 = pnand %p2790_p0, %p2787_p13 }
  0x52   : > { %2795 = shalt.err (!%p2792_p2)
}
  0x53   : > { %s2796_s18 = scalar_lea.vmem %s3175_s21, 1024  ;;  %p2804_p4 = scmp.lt.s32.totalorder %s3175_s21, %s3175_s21 }
  0x54   : > { %p2797_p5 = scmp.ne.s32.totalorder %s3175_s21, %s2796_s18  ;;  %p2805_p10 = scmp.lt.s32.totalorder %s2796_s18, %s2796_s18 }
  0x56   : > { %p2799_p7 = pnand %p2797_p5, %p3185_p8  ;;  %p2806_p11 = por %p2805_p10, %p2804_p4 }
  0x58   : > { %p2800_p9 = pneg %p2799_p7 }
  0x5a   : > { %p2807_p12 = pnand %p2806_p11, %p2800_p9 }
  0x5c   : > { %2810 = shalt.err (!%p2807_p12)
}
  0x5d   : > { %s3070_s22 = smov 64   ;;  %s3071_s9 = smov 4  }
  0x5e   : > { %2473 = dma.hbm_to_vmem [thread:$0]  (!%p3169_p6), %s4790_s5, 1024, %s3175_s21, [#allocation13], %s3070_s22, %s3070_s22, %s3071_s9  }
  0x5f   : > { %s3072_s25 = smov [#allocation15]   ;;  %s3073_s28 = smov [#allocation8]  }
  0x60   : > { %s337_s26 = sshll.u32 %s3072_s25, 4  ;;  %s280_s29 = sshll.u32 %s3073_s28, 4  ;;  %s338_s26 = int_to_ptr.vmem [resolvable:$true] %s337_s26  ;;  %s281_s29 = int_to_ptr.vmem [resolvable:$true] %s280_s29 }
  0x61   : > { %s2811_s18 = scalar_lea.hbm %s4792_s7, 16 }
  0x62   : > { %p2812_p13 = scmp.ne.s32.totalorder %s4792_s7, %s2811_s18  ;;  %p2818_p5 = scmp.lt.u32.totalorder %s2811_s18, %s4792_s7 }
  0x64   : > { %p2814_p0 = pnand %p2812_p13, %p3185_p8 }
  0x66   : > { %p2815_p2 = pneg %p2814_p0 }
  0x68   : > { %p2820_p7 = pnand %p2818_p5, %p2815_p2 }
  0x6a   : > { %2823 = shalt.err (!%p2820_p7)
}
  0x6b   : > { %s2824_s21 = scalar_lea.vmem %s338_s26, 16  ;;  %s2831_s22 = scalar_lea.vmem %s338_s26, 32 }
  0x6c   : > { %p2825_p9 = scmp.ne.s32.totalorder %s338_s26, %s2824_s21  ;;  %p2832_p11 = scmp.lt.s32.totalorder %s338_s26, %s338_s26 }
  0x6d   : > { %p2833_p12 = scmp.lt.s32.totalorder %s2831_s22, %s2824_s21 }
  0x6e   : > { %p2827_p4 = pnand %p2825_p9, %p3185_p8 }
  0x6f   : > { %p2834_p1 = por %p2833_p12, %p2832_p11 }
  0x70   : > { %p2828_p10 = pneg %p2827_p4 }
  0x72   : > { %p2835_p3 = pnand %p2834_p1, %p2828_p10 }
  0x74   : > { %2838 = shalt.err (!%p2835_p3)
}
  0x75   : > { %2479 = dma.hbm_to_vmem [thread:$0]  (!%p3169_p6), %s4792_s7, 16, %s338_s26, [#allocation16]  }
  0x76   : > { %s2839_s9 = scalar_lea.hbm %s4787_s2, 16 }
  0x77   : > { %p2840_p13 = scmp.ne.s32.totalorder %s4787_s2, %s2839_s9  ;;  %p2846_p3 = scmp.lt.u32.totalorder %s2839_s9, %s4787_s2 }
  0x79   : > { %p2842_p0 = pnand %p2840_p13, %p3185_p8 }
  0x7b   : > { %p2843_p1 = pneg %p2842_p0 }
  0x7d   : > { %p2848_p2 = pnand %p2846_p3, %p2843_p1 }
  0x7f   : > { %2851 = shalt.err (!%p2848_p2)
}
  0x80   : > { %s2852_s13 = scalar_lea.vmem %s281_s29, 16  ;;  %s2859_s26 = scalar_lea.vmem %s281_s29, 32 }
  0x81   : > { %p2853_p5 = scmp.ne.s32.totalorder %s281_s29, %s2852_s13  ;;  %p2860_p4 = scmp.lt.s32.totalorder %s281_s29, %s281_s29 }
  0x82   : > { %p2861_p10 = scmp.lt.s32.totalorder %s2859_s26, %s2852_s13 }
  0x83   : > { %p2855_p7 = pnand %p2853_p5, %p3185_p8 }
  0x84   : > { %p2862_p11 = por %p2861_p10, %p2860_p4 }
  0x85   : > { %p2856_p9 = pneg %p2855_p7 }
  0x87   : > { %p2863_p12 = pnand %p2862_p11, %p2856_p9 }
  0x89   : > { %2866 = shalt.err (!%p2863_p12)
}
  0x8a   : > { %2464 = dma.hbm_to_vmem [thread:$0]  (!%p3169_p6), %s4787_s2, 16, %s281_s29, [#allocation7]  }
  0x8b   : > { %s3074_s21 = smov [#allocation11]   ;;  %s3075_s17 = smov [#allocation14]  }
  0x8c   : > { %s302_s22 = sshll.u32 %s3074_s21, 4  ;;  %s326_s20 = sshll.u32 %s3075_s17, 4  ;;  %s303_s22 = int_to_ptr.vmem [resolvable:$true] %s302_s22  ;;  %s327_s20 = int_to_ptr.vmem [resolvable:$true] %s326_s20 }
  0x8d   : > { %s2867_s9 = scalar_lea.hbm %s4789_s4, 16 }
  0x8e   : > { %p2868_p13 = scmp.ne.s32.totalorder %s4789_s4, %s2867_s9  ;;  %p2874_p3 = scmp.lt.u32.totalorder %s2867_s9, %s4789_s4 }
  0x90   : > { %p2870_p0 = pnand %p2868_p13, %p3185_p8 }
  0x92   : > { %p2871_p1 = pneg %p2870_p0 }
  0x94   : > { %p2876_p2 = pnand %p2874_p3, %p2871_p1 }
  0x96   : > { %2879 = shalt.err (!%p2876_p2)
}
  0x97   : > { %s2880_s29 = scalar_lea.vmem %s303_s22, 16  ;;  %s2887_s13 = scalar_lea.vmem %s303_s22, 32 }
  0x98   : > { %p2881_p5 = scmp.ne.s32.totalorder %s303_s22, %s2880_s29  ;;  %p2888_p4 = scmp.lt.s32.totalorder %s303_s22, %s303_s22 }
  0x99   : > { %p2889_p10 = scmp.lt.s32.totalorder %s2887_s13, %s2880_s29 }
  0x9a   : > { %p2883_p7 = pnand %p2881_p5, %p3185_p8 }
  0x9b   : > { %p2890_p11 = por %p2889_p10, %p2888_p4 }
  0x9c   : > { %p2884_p9 = pneg %p2883_p7 }
  0x9e   : > { %p2891_p12 = pnand %p2890_p11, %p2884_p9 }
  0xa0   : > { %2894 = shalt.err (!%p2891_p12)
}
  0xa1   : > { %2470 = dma.hbm_to_vmem [thread:$0]  (!%p3169_p6), %s4789_s4, 16, %s303_s22, [#allocation10]  }
  0xa2   : > { %s2895_s17 = scalar_lea.hbm %s4791_s6, 16 }
  0xa3   : > { %p2896_p13 = scmp.ne.s32.totalorder %s4791_s6, %s2895_s17  ;;  %p2902_p3 = scmp.lt.u32.totalorder %s2895_s17, %s4791_s6 }
  0xa5   : > { %p2898_p0 = pnand %p2896_p13, %p3185_p8 }
  0xa7   : > { %p2899_p1 = pneg %p2898_p0 }
  0xa9   : > { %p2904_p2 = pnand %p2902_p3, %p2899_p1 }
  0xab   : > { %2907 = shalt.err (!%p2904_p2)
}
  0xac   : > { %s2908_s24 = scalar_lea.vmem %s327_s20, 16  ;;  %s2915_s22 = scalar_lea.vmem %s327_s20, 32 }
  0xad   : > { %p2909_p5 = scmp.ne.s32.totalorder %s327_s20, %s2908_s24  ;;  %p2916_p4 = scmp.lt.s32.totalorder %s327_s20, %s327_s20 }
  0xae   : > { %p2917_p10 = scmp.lt.s32.totalorder %s2915_s22, %s2908_s24 }
  0xaf   : > { %p2911_p7 = pnand %p2909_p5, %p3185_p8 }
  0xb0   : > { %p2918_p11 = por %p2917_p10, %p2916_p4 }
  0xb1   : > { %p2912_p9 = pneg %p2911_p7 }
  0xb3   : > { %p2919_p12 = pnand %p2918_p11, %p2912_p9 }
  0xb5   : > { %2922 = shalt.err (!%p2919_p12)
}
  0xb6   : > { %2476 = dma.hbm_to_vmem [thread:$0]  (!%p3169_p6), %s4791_s6, 16, %s327_s20, [#allocation13]  }
  0xb7   : > { %s3076_s29 = smov [#allocation17]   ;;  %s2923_s18 = scalar_lea.hbm %s4793_s8, 16 }
  0xb8   : > { %s348_s13 = sshll.u32 %s3076_s29, 4  ;;  %p2924_p13 = scmp.ne.s32.totalorder %s4793_s8, %s2923_s18  ;;  %s349_s13 = int_to_ptr.vmem [resolvable:$true] %s348_s13 }
  0xb9   : > { %p2930_p3 = scmp.lt.u32.totalorder %s2923_s18, %s4793_s8 }
  0xba   : > { %p2926_p0 = pnand %p2924_p13, %p3185_p8 }
  0xbc   : > { %p2927_p1 = pneg %p2926_p0 }
  0xbe   : > { %p2932_p2 = pnand %p2930_p3, %p2927_p1 }
  0xc0   : > { %2935 = shalt.err (!%p2932_p2)
}
  0xc1   : > { %s2936_s20 = scalar_lea.vmem %s349_s13, 16  ;;  %s2943_s9 = scalar_lea.vmem %s349_s13, 32 }
  0xc2   : > { %p2937_p5 = scmp.ne.s32.totalorder %s349_s13, %s2936_s20  ;;  %p2944_p4 = scmp.lt.s32.totalorder %s349_s13, %s349_s13 }
  0xc3   : > { %p2945_p10 = scmp.lt.s32.totalorder %s2943_s9, %s2936_s20 }
  0xc4   : > { %p2939_p7 = pnand %p2937_p5, %p3185_p8 }
  0xc5   : > { %p2946_p11 = por %p2945_p10, %p2944_p4 }
  0xc6   : > { %p2940_p9 = pneg %p2939_p7 }
  0xc8   : > { %p2947_p12 = pnand %p2946_p11, %p2940_p9 }
  0xca   : > { %2950 = shalt.err (!%p2947_p12)
}
  0xcb   : > { %2482 = dma.hbm_to_vmem [thread:$0]  (!%p3169_p6), %s4793_s8, 16, %s349_s13, [#allocation16]  }
  0xcc   : > { %s2287_s27 = sadd.s32 4294967294, %s3063_s12   ;;  %s3348_s19 = sadd.s32 1, %s3063_s12  }
  0xcd   : > { %s33_s22 = ssub.s32 %s3063_s12, %s3348_s19  ;;  %s36_s25 = sadd.s32 1, %s3059_s11 }
  0xce   : > { %p34_p8 = scmp.eq.s32.totalorder %s33_s22, 0  ;;  %p43_p13 = scmp.ne.s32.totalorder %s3059_s11, %s3055_s10 }
  0xcf   : > { %p44_p0 = scmp.eq.s32.totalorder %s3063_s12, 0  ;;  %p49_p1 = scmp.ne.s32.totalorder %s3055_s10, %s3051_s30 }
  0xd0   : > { %s3359_s28 = scalar_select %p34_p8, %s3059_s11, %s36_s25  }
  0xd1   : > { %p3361_p3 = por %p44_p0, %p43_p13  ;;  %p4848_p2 = scmp.eq.s32.totalorder %s3153_s15, 0 }
  0xd2   : > { %p241_p5 = scmp.eq.s32.totalorder %s3153_s15, 1  ;;  %p247_p7 = scmp.eq.s32.totalorder %s2287_s27, 1 }
  0xd3   : > { %p3367_p6 = por %p4848_p2, %p49_p1  ;;  %p2499_p9 = scmp.lt.s32.totalorder %s3063_s12, 2 }
  0xd4   : > { %s359_s26 = sand.u32 1, %s3059_s11   ;;  %p3374_p4 = por %p241_p5, %p43_p13 }
  0xd5   : > { %p3378_p10 = por %p247_p7, %p49_p1  ;;  %s2298_s21 = sshll.u32 %s359_s26, 8 }
  0xd6   : > { %s4850_s14 = scalar_select %p3374_p4, 1, 0 }
  0xd7   : > { %s4851_s18 = scalar_select %p3378_p10, 1, 0 }
  0xd8   : > { %s2332_s17 = sshll.u32 %s3063_s12, 12  ;;  %s363_s9 = scalar_lea.vmem [#allocation3], %s2298_s21 }
  0xd9   : > { %s3386_s20 = scalar_lea.hbm %s4785_s0, %s2332_s17  ;;  %s370_s23 = sshll.u32 %s363_s9, 4  ;;  %s3388_s23 = int_to_ptr.vmem [resolvable:$true] %s370_s23 }
  0xda   : > { %p3392_p11 = pnand %p2499_p9, %p3361_p3  ;;  %s3396_s27 = scalar_lea.sflag [#allocation4], %s359_s26 }
  0xdb   : > { %s2951_s22 = scalar_lea.hbm %s3386_s20, 4096  ;;  %s2956_s29 = scalar_lea.hbm %s4785_s0, 8192 }
  0xdc   : > { %p2952_p12 = scmp.ne.s32.totalorder %s3386_s20, %s2951_s22  ;;  %p2953_p8 = pneg %p3392_p11 }
  0xdd   : > { %p2957_p1 = scmp.lt.u32.totalorder %s3386_s20, %s4785_s0  ;;  %p2958_p3 = scmp.lt.u32.totalorder %s2956_s29, %s2951_s22 }
  0xde   : > { %p2954_p13 = pnand %p2953_p8, %p2952_p12  ;;  %p2960_p5 = scmp.lt.u32.totalorder %s2951_s22, %s3386_s20 }
  0xdf   : > { %p2959_p2 = por %p2958_p3, %p2957_p1 }
  0xe0   : > { %p2955_p0 = pneg %p2954_p13 }
  0xe1   : > { %p2961_p7 = por %p2960_p5, %p2959_p2 }
  0xe3   : > { %p2962_p9 = pnand %p2961_p7, %p2955_p0 }
  0xe5   : > { %2965 = shalt.err (!%p2962_p9)
}
  0xe6   : > { %s2966_s26 = scalar_lea.vmem %s3388_s23, 4096  ;;  %s3077_s3 = smov [#allocation3]  }
  0xe7   : > { %p2967_p12 = scmp.ne.s32.totalorder %s3388_s23, %s2966_s26  ;;  %s2971_s9 = sshll.u32 %s3077_s3, 4  ;;  %s2972_s9 = int_to_ptr.vmem [resolvable:$false] %s2971_s9 }
  0xe8   : > { %s2973_s25 = scalar_lea.vmem %s2972_s9, 8192  ;;  %p2974_p4 = scmp.lt.s32.totalorder %s3388_s23, %s2972_s9 }
  0xe9   : > { %p2969_p13 = pnand %p2967_p12, %p2953_p8  ;;  %p2975_p1 = scmp.lt.s32.totalorder %s2973_s25, %s2966_s26 }
  0xeb   : > { %p2970_p10 = pneg %p2969_p13  ;;  %p2976_p3 = por %p2975_p1, %p2974_p4 }
  0xed   : > { %p2977_p2 = pnand %p2976_p3, %p2970_p10 }
  0xef   : > { %2980 = shalt.err (!%p2977_p2)
}
  0xf0   : > { %s4853_s22 = smov 8   ;;  %s4854_s21 = smov 128  }
  0xf1   : > { %2486 = dma.hbm_to_vmem [thread:$0]  (!%p3392_p11), %s3386_s20, 4096, %s3388_s23, %s3396_s27, %s4854_s21, %s4854_s21, %s4853_s22  }
  0xf2   : > { %p4855_p8 = scmp.ne.s32.totalorder %s4842_s16, 0 }
  0xf4   : > { %382 = sbr.rel (%p4855_p8) target bundleno = 794 (0x31a), region = 56 }
  0xfb   : > { %s3430_s29 = sand.u32 1, %s3055_s10  }
  0xfc   : > { %s2302_s17 = sshll.u32 %s3430_s29, 8  ;;  %s385_s1 = scalar_lea.sflag [#allocation4], %s3430_s29 }
  0xfd   : > { %s3436_s24 = scalar_lea.vmem [#allocation3], %s2302_s17 }
  0xfe   : > { %3026 = dma.done.wait (%p3367_p6), %s385_s1, 4096  }
  0xff   : > { %3028 = vsyncadd (%p3367_p6), %s385_s1, 4294963200  ;;  %p4856_p4 = scmp.eq.s32.totalorder %s3153_s15, 0 }
 0x101   : > { %3030 = dma.done.wait (%p4856_p4), [#allocation7], 272   ;;  %p4857_p10 = pmov %p4856_p4 }
 0x102   : > { %p4858_p11 = pmov %p4856_p4 }
 0x103   : > { %3032 = vsyncadd (%p4857_p10), [#allocation7], 4294967024 }
 0x104   : > { %3034 = dma.done.wait (%p4858_p11), [#allocation10], 32   ;;  %p4859_p0 = pmov %p4856_p4 }
 0x106   : > { %3036 = vsyncadd (%p4859_p0), [#allocation10], 4294967264  ;;  %p4860_p5 = pmov %p4859_p0 }
 0x107   : > { %p4861_p7 = pmov %p4859_p0 }
 0x108   : > { %3038 = dma.done.wait (%p4860_p5), [#allocation13], 1040  }
 0x109   : > { %3040 = vsyncadd (%p4861_p7), [#allocation13], 4294966256  ;;  %p4862_p6 = pmov %p4859_p0 }
 0x10a   : > { %p4863_p9 = pmov %p4859_p0 }
 0x10b   : > { %3042 = dma.done.wait (%p4862_p6), [#allocation16], 32  }
 0x10c   : > { %3044 = vsyncadd (%p4863_p9), [#allocation16], 4294967264  ;;  %v3078_v0 = vmov 0.0   ;;  %v613_v1 = vlaneseq  ;;  %v2556_v3 = vld [vmem:[#allocation12] sm:$0xff]   ;;  %v2557_v4 = vld [vmem:[#allocation12 + $0x8] sm:$0xff]   ;;  %s4618_s16 = scalar_lea.vmem [#allocation18], %s2302_s17 }
 0x10d   : > { %488 = vst [vmem:[#allocation2] sm:$0xff] %v3078_v0  ;;  %489 = vst [vmem:[#allocation2 + $0x8] sm:$0xff] %v3078_v0  ;;  %2358 = vmatprep.subr.bf16.mxu0 %v2556_v3  ;;  %2406 = vmatprep.subr.bf16.mxu1 %v2556_v3  ;;  %v2558_v6 = vld [vmem:[#allocation12 + $0x10] sm:$0xff]   ;;  %v2559_v12 = vld [vmem:[#allocation12 + $0x18] sm:$0xff]   ;;  %s2333_s13 = sshll.u32 %s3153_s15, 12  ;;  %s2138_s20 = sshll.u32 %s4618_s16, 4  ;;  %s4739_s20 = int_to_ptr.vmem [resolvable:$true] %s2138_s20 }
 0x10e   : > { %490 = vst [vmem:[#allocation2 + $0x10] sm:$0x3] %v3078_v0  ;;  %491 = vst [vmem:[#allocation2 + $0x18] sm:$0xff] %v3078_v0  ;;  %v3458_v2 = vshrl.u32 %v613_v1, 7  ;;  %2359 = vmatpush3.bf16.msra.mxu0 %v2556_v3  ;;  %2414 = vmatpush3.bf16.msra.mxu1 %v2556_v3  ;;  %v3468_v14 = vld [vmem:[%s3436_s24] sm:$0xff]  ;;  %v3471_v15 = vld [vmem:[%s3436_s24 + $0x8] sm:$0xff] }
 0x10f   : > { %492 = vst [vmem:[#allocation2 + $0x20] sm:$0xff] %v3078_v0  ;;  %493 = vst [vmem:[#allocation2 + $0x28] sm:$0x3] %v3078_v0  ;;  %2360 = vmatprep.subr.bf16.mxu0 %v2557_v4  ;;  %2407 = vmatprep.subr.bf16.mxu1 %v2557_v4  ;;  %v3474_v16 = vld [vmem:[%s3436_s24 + $0x10] sm:$0xff]  ;;  %v3477_v17 = vld [vmem:[%s3436_s24 + $0x18] sm:$0xff]  ;;  %s4934_s26 = sld [smem:[#allocation61_spill]] }
 0x110   : > { %494 = vst [vmem:[#allocation2 + $0x30] sm:$0xff] %v3078_v0  ;;  %495 = vst [vmem:[#allocation2 + $0x38] sm:$0xff] %v3078_v0  ;;  %v615_v5 = vsub.s32 0, %v3458_v2  ;;  %v683_v7 = vsub.s32 3, %v3458_v2  ;;  %v751_v8 = vsub.s32 6, %v3458_v2  ;;  %v855_v9 = vsub.s32 1, %v3458_v2 }
 0x111   : > { %496 = vst [vmem:[#allocation2 + $0x40] sm:$0x3] %v3078_v0  ;;  %497 = vst [vmem:[#allocation2 + $0x48] sm:$0xff] %v3078_v0  ;;  %v923_v10 = vsub.s32 4, %v3458_v2  ;;  %v991_v11 = vsub.s32 7, %v3458_v2  ;;  %v1095_v13 = vsub.s32 2, %v3458_v2 }
 0x112   : > { %498 = vst [vmem:[#allocation2 + $0x50] sm:$0xff] %v3078_v0  ;;  %499 = vst [vmem:[#allocation2 + $0x58] sm:$0x3] %v3078_v0  ;;  %2361 = vmatpush3.bf16.msra.mxu0 %v2557_v4  ;;  %2415 = vmatpush3.bf16.msra.mxu1 %v2557_v4  ;;  %v575_v18 = vld [vmem:[#allocation6] sm:$0xff]  ;;  %v3491_v25 = vld [vmem:[#allocation12 + $0x20] sm:$0xff]   ;;  %v1163_v34 = vsub.s32 5, %v3458_v2 }
 0x113   : > { %500 = vst [vmem:[#allocation2 + $0x60] sm:$0xff] %v3078_v0  ;;  %501 = vst [vmem:[#allocation2 + $0x68] sm:$0xff] %v3078_v0  ;;  %2362 = vmatprep.subr.bf16.mxu0 %v2558_v6  ;;  %2408 = vmatprep.subr.bf16.mxu1 %v2558_v6  ;;  %v3483_v19 = vrot.slane %v575_v18, %v615_v5  ;;  %v3485_v20 = vrot.slane %v575_v18, %v683_v7  ;;  %v470_v35 = vld [vmem:[%s3436_s24 + $0x70] sm:$0xff]  ;;  %v3511_v36 = vld [vmem:[%s3436_s24 + $0x78] sm:$0xff]  ;;  %s2125_s9 = scalar_lea.sflag [#allocation5], %s3430_s29  ;;  %s2981_s15 = scalar_lea.vmem %s4739_s20, 4096 }
 0x114   : > { %502 = vst [vmem:[#allocation2 + $0x70] sm:$0x3] %v3078_v0  ;;  %503 = vst [vmem:[#allocation2 + $0x78] sm:$0xff] %v3078_v0  ;;  %v3487_v21 = vrot.slane %v575_v18, %v751_v8  ;;  %v817_v22 = vld [vmem:[#allocation2 + $0x1] sm:$0xff]  ;;  %v3489_v24 = vrot.slane %v575_v18, %v855_v9  ;;  %v3493_v26 = vrot.slane %v575_v18, %v923_v10  ;;  %v3530_v41 = vld [vmem:[%s3436_s24 + $0x80] sm:$0xff]  ;;  %p2982_p12 = scmp.ne.s32.totalorder %s4739_s20, %s2981_s15  ;;  %p4935_p13 = scmp.ne.s32.totalorder %s4850_s14, 0 }
 0x115   : > { %504 = vst [vmem:[#allocation2 + $0x80] sm:$0xff] %v3078_v0  ;;  %505 = vst [vmem:[#allocation2 + $0x88] sm:$0x3] %v3078_v0  ;;  %v818_v23 = vld [vmem:[#allocation2 + $0x9] sm:$0xff]  ;;  %v3495_v27 = vrot.slane %v575_v18, %v991_v11  ;;  %v3497_v29 = vrot.slane %v575_v18, %v1095_v13  ;;  %v3500_v30 = vmul.f32 0.0, %v3483_v19  ;;  %v3533_v42 = vld [vmem:[%s3436_s24 + $0x88] sm:$0xff]  ;;  %v3597_v62 = vrot.slane %v575_v18, %v1163_v34  ;;  %s4737_s3 = scalar_lea.hbm %s4934_s26, %s2333_s13 }
 0x116   : > { %506 = vst [vmem:[#allocation2 + $0x90] sm:$0xff] %v3078_v0  ;;  %507 = vst [vmem:[#allocation2 + $0x98] sm:$0xff] %v3078_v0  ;;  %2363 = vmatpush3.bf16.msra.mxu0 %v2558_v6  ;;  %2416 = vmatpush3.bf16.msra.mxu1 %v2558_v6  ;;  %v1057_v28 = vld [vmem:[#allocation2 + $0x2] sm:$0xff]  ;;  %v3503_v31 = vmul.f32 %v3489_v24, %v817_v22  ;;  %v3506_v32 = vmul.f32 %v3489_v24, %v818_v23  ;;  %v1058_v33 = vld [vmem:[#allocation2 + $0xa] sm:$0xff]  ;;  %p2983_p1 = pnand %p2982_p12, %p4935_p13  ;;  %s3079_s25 = smov [#allocation18]  }
 0x117   : > { %508 = vst [vmem:[#allocation2 + $0xa0] sm:$0x3] %v3078_v0  ;;  %509 = vst [vmem:[#allocation2 + $0xa8] sm:$0xff] %v3078_v0  ;;  %2364 = vmatprep.subr.bf16.mxu0 %v2559_v12  ;;  %2409 = vmatprep.subr.bf16.mxu1 %v2559_v12  ;;  %v3515_v37 = vmul.f32 %v3489_v24, %v3468_v14  ;;  %v3519_v38 = vmul.f32 %v3489_v24, %v3471_v15  ;;  %v3536_v43 = vld [vmem:[%s3436_s24 + $0x90] sm:$0xff]  ;;  %v3539_v44 = vld [vmem:[#allocation12 + $0x28] sm:$0xff]   ;;  %s2985_s22 = sshll.u32 %s3079_s25, 4  ;;  %s2986_s22 = int_to_ptr.vmem [resolvable:$false] %s2985_s22 }
 0x118   : > { %510 = vst [vmem:[#allocation2 + $0xb0] sm:$0xff] %v3078_v0  ;;  %511 = vst [vmem:[#allocation2 + $0xb8] sm:$0x3] %v3078_v0  ;;  %v3523_v39 = vmul.f32 %v3489_v24, %v3474_v16  ;;  %v3527_v40 = vmul.f32 %v3489_v24, %v3477_v17  ;;  %v3543_v45 = vmul.f32 %v3493_v26, %v3468_v14  ;;  %v3558_v49 = vld [vmem:[%s3436_s24 + $0x98] sm:$0xff]  ;;  %v3564_v50 = vld [vmem:[%s3436_s24 + $0x20] sm:$0xff]  ;;  %p2984_p3 = pneg %p2983_p1  ;;  %s2987_s21 = scalar_lea.vmem %s2986_s22, 8192 }
 0x119   : > { %512 = vst [vmem:[#allocation2 + $0xc0] sm:$0xff] %v3078_v0  ;;  %513 = vst [vmem:[#allocation2 + $0xc8] sm:$0xff] %v3078_v0  ;;  %v3547_v46 = vmul.f32 %v3493_v26, %v3471_v15  ;;  %v3551_v47 = vmul.f32 %v3493_v26, %v3474_v16  ;;  %v3555_v48 = vmul.f32 %v3493_v26, %v3477_v17  ;;  %v3567_v51 = vld [vmem:[%s3436_s24 + $0x28] sm:$0xff]  ;;  %v3584_v55 = vld [vmem:[%s3436_s24 + $0xa0] sm:$0xff]  ;;  %p2988_p2 = scmp.lt.s32.totalorder %s4739_s20, %s2986_s22  ;;  %p2989_p8 = scmp.lt.s32.totalorder %s2987_s21, %s2981_s15 }
 0x11a   : > { %514 = vst [vmem:[#allocation2 + $0xd0] sm:$0x3] %v3078_v0  ;;  %515 = vst [vmem:[#allocation2 + $0xd8] sm:$0xff] %v3078_v0  ;;  %2365 = vmatpush3.bf16.msra.mxu0 %v2559_v12  ;;  %2417 = vmatpush3.bf16.msra.mxu1 %v2559_v12  ;;  %v3571_v52 = vmul.f32 %v3495_v27, %v3474_v16  ;;  %v3575_v53 = vmul.f32 %v3495_v27, %v3477_v17  ;;  %v3587_v56 = vld [vmem:[%s3436_s24 + $0xa8] sm:$0xff]  ;;  %v3590_v57 = vld [vmem:[%s3436_s24 + $0x30] sm:$0xff] }
 0x11b   : > { %516 = vst [vmem:[#allocation2 + $0xe0] sm:$0xff] %v3078_v0  ;;  %517 = vst [vmem:[#allocation2 + $0xe8] sm:$0x3] %v3078_v0  ;;  %v3578_v54 = vmul.f32 %v3497_v29, %v1057_v28  ;;  %2366 = vmatprep.subr.bf16.mxu0 %v3491_v25  ;;  %2410 = vmatprep.subr.bf16.mxu1 %v3491_v25  ;;  %v3595_v61 = vmul.f32 %v3497_v29, %v1058_v33  ;;  %v3626_v13 = vld [vmem:[%s3436_s24 + $0x38] sm:$0xff]  ;;  %v3635_v28 = vld [vmem:[%s3436_s24 + $0xb0] sm:$0xff]  ;;  %p2990_p4 = por %p2989_p8, %p2988_p2 }
 0x11c   : > { %518 = vst [vmem:[#allocation2 + $0xf0] sm:$0xff] %v3078_v0  ;;  %519 = vst [vmem:[#allocation2 + $0xf8] sm:$0xff] %v3078_v0  ;;  %v3600_v63 = vmul.f32 %v3489_v24, %v470_v35  ;;  %v3638_v33 = vld [vmem:[%s3436_s24 + $0xb8] sm:$0xff]  ;;  %v3641_v34 = vld [vmem:[%s3436_s24 + $0x40] sm:$0xff] }
 0x11d   : > { %520 = vst [vmem:[#allocation2 + $0x100] sm:$0x3] %v3078_v0  ;;  %521 = vst [vmem:[#allocation2 + $0x108] sm:$0xff] %v3078_v0  ;;  %p2991_p10 = pnand %p2990_p4, %p2984_p3 }
 0x11e   : > { %522 = vst [vmem:[#allocation2 + $0x110] sm:$0xff] %v3078_v0  ;;  %523 = vst [vmem:[#allocation2 + $0x118] sm:$0x3] %v3078_v0  ;;  %2367 = vmatpush3.bf16.msra.mxu0 %v3491_v25  ;;  %2418 = vmatpush3.bf16.msra.mxu1 %v3491_v25  ;;  %v3645_v25 = vld [vmem:[#allocation6 + $0x8] ss:$0 sm:$0xff] }
 0x11f   : > { %524 = vst [vmem:[#allocation2 + $0x120] sm:$0xff] %v3078_v0  ;;  %525 = vst [vmem:[#allocation2 + $0x128] sm:$0xff] %v3078_v0  ;;  %2368 = vmatprep.subr.bf16.mxu0 %v3539_v44  ;;  %2411 = vmatprep.subr.bf16.mxu1 %v3539_v44 }
 0x120   : > { %526 = vst [vmem:[#allocation2 + $0x130] sm:$0x3] %v3078_v0  ;;  %527 = vst [vmem:[#allocation2 + $0x138] sm:$0xff] %v3078_v0 }
 0x121   : > { %528 = vst [vmem:[#allocation2 + $0x140] sm:$0xff] %v3078_v0  ;;  %529 = vst [vmem:[#allocation2 + $0x148] sm:$0x3] %v3078_v0 }
 0x122   : > { %530 = vst [vmem:[#allocation2 + $0x150] sm:$0xff] %v3078_v0  ;;  %531 = vst [vmem:[#allocation2 + $0x158] sm:$0xff] %v3078_v0  ;;  %2369 = vmatpush3.bf16.msra.mxu0 %v3539_v44  ;;  %2419 = vmatpush3.bf16.msra.mxu1 %v3539_v44 }
 0x123   : > { %532 = vst [vmem:[#allocation2 + $0x160] sm:$0x3] %v3078_v0  ;;  %533 = vst [vmem:[#allocation2 + $0x168] sm:$0xff] %v3078_v0 }
 0x124   : > { %534 = vst [vmem:[#allocation2 + $0x170] sm:$0xff] %v3078_v0  ;;  %535 = vst [vmem:[#allocation2 + $0x178] sm:$0x3] %v3078_v0 }
 0x125   : > { %536 = vst [vmem:[#allocation2 + $0x180] sm:$0xff] %v3078_v0  ;;  %537 = vst [vmem:[#allocation2 + $0x188] sm:$0xff] %v3078_v0 }
 0x126   : > { %538 = vst [vmem:[#allocation2 + $0x190] sm:$0x3] %v3078_v0  ;;  %539 = vst [vmem:[#allocation2 + $0x198] sm:$0xff] %v3078_v0 }
 0x127   : > { %540 = vst [vmem:[#allocation2 + $0x1a0] sm:$0xff] %v3078_v0  ;;  %541 = vst [vmem:[#allocation2 + $0x1a8] sm:$0x3] %v3078_v0 }
 0x128   : > { %4864 = vst [vmem:[#allocation25_spill] sm:$0xff] %v3471_v15  ;;  %4865 = vst [vmem:[#allocation26_spill] sm:$0xff] %v3474_v16 }
 0x129   : > { %4866 = vst [vmem:[#allocation27_spill] sm:$0xff] %v3477_v17  ;;  %543 = vst [vmem:[#allocation2 + $0x19] sm:$0xff] %v3468_v14 }
 0x12a   : > { %544 = vst [vmem:[#allocation2 + $0x21] sm:$0xff] %v3471_v15  ;;  %545 = vst [vmem:[#allocation2 + $0x31] sm:$0xff] %v3474_v16 }
 0x12b   : > { %546 = vst [vmem:[#allocation2 + $0x39] sm:$0xff] %v3477_v17  ;;  %4867 = vst [vmem:[#allocation28_spill] sm:$0xff] %v3483_v19 }
 0x12c   : > { %4868 = vst [vmem:[#allocation29_spill] sm:$0xff] %v3489_v24  ;;  %4869 = vst [vmem:[#allocation30_spill] sm:$0xff] %v3497_v29 }
 0x12d   : > { %4870 = vst [vmem:[#allocation31_spill] sm:$0xff] %v3523_v39  ;;  %4871 = vst [vmem:[#allocation32_spill] sm:$0xff] %v3527_v40 }
 0x12e   : > { %4872 = vst [vmem:[#allocation33_spill] sm:$0xff] %v3533_v42  ;;  %4873 = vst [vmem:[#allocation34_spill] sm:$0xff] %v3536_v43 }
 0x12f   : > { %557 = vst [vmem:[#allocation2 + $0xc1] sm:$0xff] %v470_v35  ;;  %558 = vst [vmem:[#allocation2 + $0xc9] sm:$0xff] %v3511_v36  ;;  %v2562_v35 = vld [vmem:[#allocation12 + $0x30] sm:$0xff]  }
 0x130   : > { %4874 = vst [vmem:[#allocation35_spill] sm:$0xff] %v3558_v49  ;;  %559 = vst [vmem:[#allocation2 + $0xd9] sm:$0xff] %v3530_v41  ;;  %v579_v58 = vld [vmem:[#allocation2 + $0x18] sm:$0xff]  ;;  %2370 = vmatprep.subr.bf16.mxu0 %v2562_v35  ;;  %2412 = vmatprep.subr.bf16.mxu1 %v2562_v35 }
 0x131   : > { %560 = vst [vmem:[#allocation2 + $0xe1] sm:$0xff] %v3533_v42  ;;  %561 = vst [vmem:[#allocation2 + $0xf1] sm:$0xff] %v3536_v43  ;;  %v580_v59 = vld [vmem:[#allocation2 + $0x20] sm:$0xff]  ;;  %v581_v60 = vld [vmem:[#allocation2 + $0x30] sm:$0xff]  ;;  %v3606_v1 = vmul.f32 %v3483_v19, %v579_v58  ;;  %v685_v4 = vmul.f32 %v3485_v20, %v579_v58  ;;  %2371 = vmatpush3.bf16.msra.mxu0 %v2562_v35  ;;  %2420 = vmatpush3.bf16.msra.mxu1 %v2562_v35 }
 0x132   : > { %562 = vst [vmem:[#allocation2 + $0xf9] sm:$0xff] %v3558_v49  ;;  %547 = vst [vmem:[#allocation2 + $0x49] sm:$0xff] %v3564_v50  ;;  %v582_v0 = vld [vmem:[#allocation2 + $0x38] sm:$0xff]  ;;  %v3609_v2 = vmul.f32 %v3483_v19, %v580_v59  ;;  %v3612_v3 = vmul.f32 %v3483_v19, %v581_v60  ;;  %v1060_v6 = vld [vmem:[#allocation2 + $0x22] sm:$0xff]  ;;  %v686_v8 = vmul.f32 %v3485_v20, %v580_v59 }
 0x133   : > { %548 = vst [vmem:[#allocation2 + $0x51] sm:$0xff] %v3567_v51  ;;  %4875 = vst [vmem:[#allocation36_spill] sm:$0xff] %v3590_v57  ;;  %v1059_v5 = vld [vmem:[#allocation2 + $0x1a] sm:$0xff]  ;;  %v3616_v7 = vmul.f32 %v3483_v19, %v582_v0  ;;  %v3620_v9 = vmul.f32 %v3485_v20, %v581_v60  ;;  %v3623_v10 = vmul.f32 %v3485_v20, %v582_v0  ;;  %v1061_v11 = vld [vmem:[#allocation2 + $0x32] sm:$0xff] }
 0x134   : > { %563 = vst [vmem:[#allocation2 + $0x109] sm:$0xff] %v3584_v55  ;;  %564 = vst [vmem:[#allocation2 + $0x111] sm:$0xff] %v3587_v56  ;;  %v1062_v12 = vld [vmem:[#allocation2 + $0x3a] sm:$0xff]  ;;  %v717_v18 = vadd.f32 %v685_v4, %v3500_v30  ;;  %v753_v22 = vmul.f32 %v3487_v21, %v581_v60  ;;  %v754_v23 = vmul.f32 %v3487_v21, %v582_v0 }
 0x135   : > { %549 = vst [vmem:[#allocation2 + $0x61] sm:$0xff] %v3590_v57  ;;  %4876 = vst [vmem:[#allocation37_spill] sm:$0xff] %v3626_v13  ;;  %v718_v58 = vadd.f32 %v686_v8, %v3500_v30  ;;  %v3649_v59 = vmul.f32 %v3497_v29, %v1059_v5  ;;  %v3652_v60 = vmul.f32 %v3497_v29, %v1060_v6 }
 0x136   : > { %550 = vst [vmem:[#allocation2 + $0x69] sm:$0xff] %v3626_v13  ;;  %4877 = vst [vmem:[#allocation38_spill] sm:$0xff] %v3635_v28  ;;  %v785_v0 = vadd.f32 %v753_v22, %v717_v18  ;;  %v3658_v4 = vmul.f32 %v3497_v29, %v1061_v11  ;;  %v3661_v17 = vmul.f32 %v3497_v29, %v1062_v12  ;;  %v593_v8 = vld [vmem:[#allocation2 + $0xc0] sm:$0xff]  ;;  %v594_v16 = vld [vmem:[#allocation2 + $0xc8] sm:$0xff] }
 0x137   : > { %4878 = vst [vmem:[#allocation39_spill] sm:$0xff] %v3638_v33  ;;  %4879 = vst [vmem:[#allocation40_spill] sm:$0xff] %v3641_v34  ;;  %v1165_v30 = vmul.f32 %v3597_v62, %v1059_v5  ;;  %v786_v13 = vadd.f32 %v754_v23, %v718_v58  ;;  %v3665_v57 = vmul.f32 %v3597_v62, %v1060_v6  ;;  %v3673_v18 = vld [vmem:[#allocation2 + $0xd8] sm:$0xff] }
 0x138   : > { %565 = vst [vmem:[#allocation2 + $0x121] sm:$0xff] %v3635_v28  ;;  %566 = vst [vmem:[#allocation2 + $0x129] sm:$0xff] %v3638_v33  ;;  %v3668_v28 = vmul.f32 %v3597_v62, %v1061_v11  ;;  %v889_v5 = vadd.f32 %v3503_v31, %v785_v0  ;;  %v3679_v22 = vmul.f32 %v3645_v25, %v1061_v11  ;;  %v3684_v23 = vld [vmem:[#allocation2 + $0xe0] sm:$0xff]  ;;  %v597_v58 = vld [vmem:[#allocation2 + $0xf0] sm:$0xff] }
 0x139   : > { %551 = vst [vmem:[#allocation2 + $0x79] sm:$0xff] %v3641_v34  ;;  %4880 = vst [vmem:[#allocation41_spill] sm:$0xff] %v3658_v4  ;;  %v3671_v34 = vmul.f32 %v3597_v62, %v1062_v12  ;;  %v3682_v6 = vmul.f32 %v3645_v25, %v1062_v12  ;;  %v598_v33 = vld [vmem:[#allocation2 + $0xf8] sm:$0xff]  ;;  %v890_v4 = vadd.f32 %v3506_v32, %v786_v13 }
 0x13a   : > { %4881 = vst [vmem:[#allocation42_spill] sm:$0xff] %v3661_v17  ;;  %v2563_v17 = vld [vmem:[#allocation12 + $0x38] sm:$0xff]   ;;  %v633_v40 = vmul.f32 %v3483_v19, %v593_v8  ;;  %v634_v44 = vmul.f32 %v3483_v19, %v594_v16  ;;  %v957_v31 = vadd.f32 %v3543_v45, %v889_v5  ;;  %v3691_v11 = vmul.f32 %v3483_v19, %v597_v58 }
 0x13b   : > { %v3694_v12 = vmul.f32 %v3483_v19, %v598_v33  ;;  %v701_v0 = vmul.f32 %v3485_v20, %v3673_v18  ;;  %v958_v39 = vadd.f32 %v3547_v46, %v890_v4  ;;  %v702_v32 = vmul.f32 %v3485_v20, %v3684_v23  ;;  %2372 = vmatprep.subr.bf16.mxu0 %v2563_v17 }
 0x13c   : > { %4882 = vst [vmem:[#allocation43_spill] sm:$0xff] %v3691_v11  ;;  %v3702_v13 = vmul.f32 %v3485_v20, %v597_v58  ;;  %v3705_v16 = vmul.f32 %v3485_v20, %v598_v33  ;;  %v1025_v45 = vadd.f32 %v3571_v52, %v957_v31  ;;  %v769_v5 = vmul.f32 %v3487_v21, %v597_v58  ;;  %v3719_v52 = vld [vmem:[%s3436_s24 + $0x48] sm:$0xff] }
 0x13d   : > { %4883 = vst [vmem:[#allocation44_spill] sm:$0xff] %v3694_v12  ;;  %v733_v8 = vadd.f32 %v701_v0, %v633_v40  ;;  %2413 = vmatprep.subr.bf16.mxu1 %v2563_v17  ;;  %v1026_v46 = vadd.f32 %v3575_v53, %v958_v39  ;;  %v734_v4 = vadd.f32 %v702_v32, %v634_v44  ;;  %4884 = vst [vmem:[#allocation45_spill] sm:$0xff] %v3719_v52  ;;  %v3722_v53 = vld [vmem:[#allocation8] ss:$0 sm:$0xff]  ;;  %v1074_v44 = vld [vmem:[#allocation2 + $0xca] sm:$0xff] }
 0x13e   : > { %v770_v12 = vmul.f32 %v3487_v21, %v598_v33  ;;  %v1129_v11 = vadd.f32 %v3578_v54, %v1025_v45  ;;  %v874_v35 = vmul.f32 %v3489_v24, %v3511_v36  ;;  %v3716_v40 = vmul.f32 %v3489_v24, %v3530_v41  ;;  %v1073_v36 = vld [vmem:[#allocation2 + $0xc2] sm:$0xff]  ;;  %v3732_v31 = vld [vmem:[#allocation2 + $0xda] sm:$0xff]  ;;  %552 = vst [vmem:[#allocation2 + $0x81] sm:$0xff] %v3719_v52 }
 0x13f   : > { %v801_v15 = vadd.f32 %v769_v5, %v733_v8  ;;  %v1130_v39 = vadd.f32 %v3595_v61, %v1026_v46  ;;  %v3726_v33 = vmul.f32 %v3489_v24, %v3533_v42  ;;  %v3730_v54 = vmul.f32 %v3489_v24, %v3536_v43  ;;  %v3736_v61 = vld [vmem:[%s3436_s24 + $0xc0] sm:$0xff]  ;;  %v3742_v0 = vld [vmem:[%s3436_s24 + $0x50] sm:$0xff]  ;;  %2373 = vmatpush3.bf16.msra.mxu0 %v2563_v17  ;;  %v3752_v46 = vld [vmem:[%s3436_s24 + $0x58] sm:$0xff] }
 0x140   : > { %v802_v58 = vadd.f32 %v770_v12, %v734_v4  ;;  %4886 = vst [vmem:[#allocation47_spill] sm:$0xff] %v3736_v61  ;;  %v3739_v12 = vld [vmem:[%s3436_s24 + $0xc8] sm:$0xff]  ;;  %4888 = vst [vmem:[#allocation49_spill] sm:$0xff] %v3742_v0  ;;  %2421 = vmatpush3.bf16.msra.mxu1 %v2563_v17  ;;  %v1197_v32 = vadd.f32 %v1165_v30, %v1129_v11  ;;  %v3746_v45 = vmul.f32 %v3489_v24, %v3558_v49  ;;  %v1076_v5 = vld [vmem:[#allocation2 + $0xe2] sm:$0xff] }
 0x141   : > { %4885 = vst [vmem:[#allocation46_spill] sm:$0xff] %v3730_v54  ;;  %4887 = vst [vmem:[#allocation48_spill] sm:$0xff] %v3739_v12  ;;  %v905_v8 = vadd.f32 %v3600_v63, %v801_v15  ;;  %v3756_v17 = vld [vmem:[%s3436_s24 + $0xd0] sm:$0xff]  ;;  %v3759_v30 = vld [vmem:[%s3436_s24 + $0xd8] sm:$0xff]  ;;  %v1198_v11 = vadd.f32 %v3665_v57, %v1130_v39  ;;  %v941_v15 = vmul.f32 %v3493_v26, %v3530_v41 }
 0x142   : > { %4889 = vst [vmem:[#allocation50_spill] sm:$0xff] %v3746_v45  ;;  %567 = vst [vmem:[#allocation2 + $0x139] sm:$0xff] %v3736_v61  ;;  %v906_v4 = vadd.f32 %v874_v35, %v802_v58  ;;  %v942_v63 = vmul.f32 %v3493_v26, %v3533_v42  ;;  %v484_v57 = vld [vmem:[%s3436_s24 + $0xe0] sm:$0xff]  ;;  %v1265_v35 = vadd.f32 %v3679_v22, %v1197_v32  ;;  %v487_v61 = vld [vmem:[%s3436_s24 + $0xf8] sm:$0xff] }
 0x143   : > { %568 = vst [vmem:[#allocation2 + $0x141] sm:$0xff] %v3739_v12  ;;  %4890 = vst [vmem:[#allocation51_spill] sm:$0xff] %v3752_v46  ;;  %v3773_v12 = vld [vmem:[%s3436_s24 + $0x68] sm:$0xff]  ;;  %v3779_v39 = vmul.f32 %v3493_v26, %v3536_v43  ;;  %v3783_v58 = vmul.f32 %v3493_v26, %v3558_v49  ;;  %v1266_v22 = vadd.f32 %v3682_v6, %v1198_v11 }
 0x144   : > { %553 = vst [vmem:[#allocation2 + $0x91] sm:$0xff] %v3742_v0  ;;  %4891 = vst [vmem:[#allocation52_spill] sm:$0xff] %v3756_v17  ;;  %v3770_v0 = vld [vmem:[%s3436_s24 + $0x60] sm:$0xff]  ;;  %v973_v32 = vadd.f32 %v941_v15, %v905_v8  ;;  %v974_v52 = vadd.f32 %v942_v63, %v906_v4  ;;  %v1010_v24 = vmul.f32 %v3495_v27, %v3558_v49  ;;  %v1078_v15 = vld [vmem:[#allocation2 + $0xfa] sm:$0xff] }
 0x145   : > { %4892 = vst [vmem:[#allocation53_spill] sm:$0xff] %v3759_v30  ;;  %554 = vst [vmem:[#allocation2 + $0x99] sm:$0xff] %v3752_v46  ;;  %v486_v46 = vld [vmem:[%s3436_s24 + $0xf0] sm:$0xff]  ;;  %v1305_v6 = vadd.f32 %v3722_v53, %v1266_v22  ;;  %v1077_v4 = vld [vmem:[#allocation2 + $0xf2] sm:$0xff]  ;;  %v636_v45 = vmul.f32 %v3483_v19, %v3684_v23 }
 0x146   : > { %569 = vst [vmem:[#allocation2 + $0x151] sm:$0xff] %v3756_v17  ;;  %570 = vst [vmem:[#allocation2 + $0x159] sm:$0xff] %v3759_v30  ;;  %v1009_v17 = vmul.f32 %v3495_v27, %v3536_v43  ;;  %v485_v30 = vld [vmem:[%s3436_s24 + $0xe8] sm:$0xff]  ;;  %v1304_v43 = vadd.f32 %v3722_v53, %v1265_v35  ;;  %v1042_v11 = vadd.f32 %v1010_v24, %v974_v52  ;;  %v3824_v49 = vld [vmem:[#allocation2 + $0x50] sm:$0xff] }
 0x147   : > { %4893 = vst [vmem:[#allocation54_spill] sm:$0xff] %v3770_v0  ;;  %4894 = vst [vmem:[#allocation55_spill] sm:$0xff] %v3773_v12  ;;  %v3814_v63 = vmul.f32 0.5, %v1305_v6  ;;  %v1369_v35 = vmul.f32 0.70710677, %v1305_v6  ;;  %v1181_v24 = vmul.f32 %v3597_v62, %v3732_v31  ;;  %v1182_v52 = vmul.f32 %v3597_v62, %v1076_v5  ;;  %v3831_v6 = vld [vmem:[#allocation2 + $0x4a] sm:$0xff] }
 0x148   : > { %555 = vst [vmem:[#allocation2 + $0xa9] sm:$0xff] %v3770_v0  ;;  %556 = vst [vmem:[#allocation2 + $0xb1] sm:$0xff] %v3773_v12  ;;  %v1113_v0 = vmul.f32 %v3497_v29, %v1073_v36  ;;  %v1114_v12 = vmul.f32 %v3497_v29, %v1074_v44  ;;  %v1041_v8 = vadd.f32 %v1009_v17, %v973_v32 }
 0x149   : > { %571 = vst [vmem:[#allocation2 + $0x169] sm:$0xff] %v484_v57  ;;  %572 = vst [vmem:[#allocation2 + $0x171] sm:$0xff] %v485_v30  ;;  %v3800_v57 = vmul.f32 %v3497_v29, %v3732_v31  ;;  %v3804_v30 = vmul.f32 %v3497_v29, %v1076_v5  ;;  %v3809_v36 = vmul.f32 %v3497_v29, %v1077_v4  ;;  %v3833_v31 = vld [vmem:[#allocation2 + $0x52] sm:$0xff] }
 0x14a   : > { %573 = vst [vmem:[#allocation2 + $0x181] sm:$0xff] %v486_v46  ;;  %574 = vst [vmem:[#allocation2 + $0x189] sm:$0xff] %v487_v61  ;;  %v3806_v61 = vmul.f32 0.5, %v1304_v43  ;;  %v1368_v46 = vmul.f32 0.70710677, %v1304_v43  ;;  %v3812_v44 = vmul.f32 %v3497_v29, %v1078_v15  ;;  %v1145_v22 = vadd.f32 %v1113_v0, %v1041_v8  ;;  %v3822_v43 = vld [vmem:[#allocation2 + $0x48] sm:$0xff] }
 0x14b   : > { %4895 = vst [vmem:[#allocation56_spill] sm:$0xff] %v3809_v36  ;;  %v1146_v17 = vadd.f32 %v1114_v12, %v1042_v11  ;;  %v3820_v32 = vmul.f32 %v3597_v62, %v1077_v4  ;;  %v3827_v29 = vmul.f32 %v3597_v62, %v1078_v15  ;;  %v1249_v0 = vmul.f32 %v3645_v25, %v1077_v4 }
 0x14c   : > { %4896 = vst [vmem:[#allocation57_spill] sm:$0xff] %v3812_v44  ;;  %2564 = verf.f32 %v1368_v46  ;;  %v1250_v12 = vmul.f32 %v3645_v25, %v1078_v15  ;;  %v1213_v5 = vadd.f32 %v1181_v24, %v1145_v22  ;;  %v719_v11 = vadd.f32 %v3620_v9, %v3606_v1  ;;  %v3847_v22 = vld [vmem:[#allocation2 + $0x108] sm:$0xff] }
 0x14d   : > { %2566 = verf.f32 %v1369_v35  ;;  %v1214_v8 = vadd.f32 %v1182_v52, %v1146_v17  ;;  %v720_v46 = vadd.f32 %v3623_v10, %v3609_v2  ;;  %v755_v35 = vmul.f32 %v3487_v21, %v3822_v43  ;;  %v3849_v17 = vld [vmem:[#allocation2 + $0x110] sm:$0xff] }
 0x14e   : > { %v756_v4 = vmul.f32 %v3487_v21, %v3824_v49  ;;  %v995_v15 = vmul.f32 %v3495_v27, %v3564_v50  ;;  %v996_v44 = vmul.f32 %v3495_v27, %v3567_v51  ;;  %4897 = vst [vmem:[#allocation58_spill] sm:$0xff] %v3849_v17  ;;  %v1281_v1 = vadd.f32 %v1249_v0, %v1213_v5 }
 0x14f   : > { %v1282_v9 = vadd.f32 %v1250_v12, %v1214_v8  ;;  %v1235_v2 = vmul.f32 %v3645_v25, %v3831_v6  ;;  %v1236_v10 = vmul.f32 %v3645_v25, %v3833_v31  ;;  %v787_v24 = vadd.f32 %v755_v35, %v719_v11 }
 0x150   : > { %v788_v52 = vadd.f32 %v756_v4, %v720_v46  ;;  %v635_v36 = vmul.f32 %v3483_v19, %v3673_v18  ;;  %v1320_v54 = vadd.f32 %v3722_v53, %v1281_v1  ;;  %v771_v0 = vmul.f32 %v3487_v21, %v3847_v22  ;;  %v3869_v46 = vld [vmem:[#allocation2 + $0x10a] sm:$0xff] }
 0x151   : > { %v1321_v42 = vadd.f32 %v3722_v53, %v1282_v9  ;;  %v772_v12 = vmul.f32 %v3487_v21, %v3849_v17  ;;  %v891_v5 = vadd.f32 %v3515_v37, %v787_v24  ;;  %v736_v18 = vadd.f32 %v3705_v16, %v636_v45  ;;  %v3877_v24 = vld [vmem:[#allocation2 + $0x112] sm:$0xff] }
 0x152   : > { %v892_v8 = vadd.f32 %v3519_v38, %v788_v52  ;;  %v735_v11 = vadd.f32 %v3702_v13, %v635_v36  ;;  %v3871_v23 = vmul.f32 0.5, %v1320_v54  ;;  %v1384_v4 = vmul.f32 0.70710677, %v1320_v54  ;;  %v3885_v52 = vld [vmem:[#allocation9] ss:$0 sm:$0xff] }
 0x153   : > { %v3873_v35 = vmul.f32 0.5, %v1321_v42  ;;  %v1385_v1 = vmul.f32 0.70710677, %v1321_v42  ;;  %v959_v9 = vadd.f32 %v3551_v47, %v891_v5  ;;  %v804_v37 = vadd.f32 %v772_v12, %v736_v18 }
 0x154   : > { %v960_v19 = vadd.f32 %v3555_v48, %v892_v8  ;;  %v803_v17 = vadd.f32 %v771_v0, %v735_v11  ;;  %2568 = verf.f32 %v1384_v4  ;;  %v1011_v13 = vmul.f32 %v3495_v27, %v3584_v55 }
 0x155   : > { %v1012_v16 = vmul.f32 %v3495_v27, %v3587_v56  ;;  %v1251_v54 = vmul.f32 %v3645_v25, %v3869_v46  ;;  %2570 = verf.f32 %v1385_v1  ;;  %v1027_v47 = vadd.f32 %v995_v15, %v959_v9  ;;  %v3908_v1 = vld [vmem:[#allocation2 + $0x68] sm:$0xff] }
 0x156   : > { %v2565_v38 = vpop.eup %2564  ;;  %v1028_v48 = vadd.f32 %v996_v44, %v960_v19  ;;  %v907_v0 = vadd.f32 %v3716_v40, %v803_v17  ;;  %v908_v12 = vadd.f32 %v3726_v33, %v804_v37  ;;  %v1252_v5 = vmul.f32 %v3645_v25, %v3877_v24  ;;  %v3897_v44 = vld [vmem:[#allocation11] ss:$0 sm:$0xff] }
 0x157   : > { %v2567_v42 = vpop.eup %2566  ;;  %v1432_v45 = vadd.f32 1.0, %v2565_v38  ;;  %v1131_v11 = vadd.f32 %v3649_v59, %v1027_v47  ;;  %v689_v15 = vmul.f32 %v3485_v20, %v3822_v43  ;;  %v3901_v17 = vld [vmem:[#allocation2 + $0x60] sm:$0xff] }
 0x158   : > { %v1433_v36 = vadd.f32 1.0, %v2567_v42  ;;  %v1132_v18 = vadd.f32 %v3652_v60, %v1028_v48  ;;  %v975_v40 = vadd.f32 %v3779_v39, %v907_v0  ;;  %v976_v33 = vadd.f32 %v3783_v58, %v908_v12 }
 0x159   : > { %v1464_v8 = vmul.f32 %v1432_v45, %v3806_v61  ;;  %v690_v61 = vmul.f32 %v3485_v20, %v3824_v49  ;;  %v1199_v60 = vadd.f32 %v3668_v28, %v1131_v11  ;;  %v757_v47 = vmul.f32 %v3487_v21, %v3901_v17 }
 0x15a   : > { %v1465_v19 = vmul.f32 %v1433_v36, %v3814_v63  ;;  %v1200_v4 = vadd.f32 %v3671_v34, %v1132_v18  ;;  %v721_v63 = vadd.f32 %v689_v15, %v3612_v3  ;;  %v1043_v39 = vadd.f32 %v1011_v13, %v975_v40  ;;  %v4898_v36 = vld [vmem:[#allocation25_spill] sm:$0xff] }
 0x15b   : > { %v1503_v59 = vmul.f32 %v3885_v52, %v1464_v8  ;;  %v1044_v37 = vadd.f32 %v1012_v16, %v976_v33  ;;  %v722_v58 = vadd.f32 %v690_v61, %v3616_v7  ;;  %v1267_v42 = vadd.f32 %v1235_v2, %v1199_v60 }
 0x15c   : > { %v1504_v9 = vmul.f32 %v3885_v52, %v1465_v19  ;;  %v1268_v45 = vadd.f32 %v1236_v10, %v1200_v4  ;;  %v1147_v34 = vadd.f32 %v3800_v57, %v1043_v39  ;;  %v758_v3 = vmul.f32 %v3487_v21, %v3908_v1  ;;  %v4899_v4 = vld [vmem:[#allocation31_spill] sm:$0xff] }
 0x15d   : > { %v1542_v38 = vadd.f32 %v3897_v44, %v1503_v59  ;;  %v1148_v48 = vadd.f32 %v3804_v30, %v1044_v37  ;;  %v1306_v7 = vadd.f32 %v3722_v53, %v1267_v42  ;;  %v789_v2 = vadd.f32 %v757_v47, %v721_v63  ;;  %v4901_v42 = vld [vmem:[#allocation36_spill] sm:$0xff] }
 0x15e   : > { %v1543_v28 = vadd.f32 %v3897_v44, %v1504_v9  ;;  %v1307_v16 = vadd.f32 %v3722_v53, %v1268_v45  ;;  %v2569_v10 = vpop.eup %2568  ;;  %v1215_v12 = vadd.f32 %v3820_v32, %v1147_v34  ;;  %v790_v57 = vadd.f32 %v758_v3, %v722_v58  ;;  %v4900_v9 = vld [vmem:[#allocation32_spill] sm:$0xff] }
 0x15f   : > { %v1574_v13 = vadd.f32 %v1542_v38, %v3468_v14  ;;  %v1216_v8 = vadd.f32 %v3827_v29, %v1148_v48  ;;  %v2571_v11 = vpop.eup %2570  ;;  %v1448_v30 = vadd.f32 1.0, %v2569_v10  ;;  %v3927_v18 = vmul.f32 0.5, %v1306_v7  ;;  %v3950_v3 = vld [vmem:[#allocation2 + $0x62] sm:$0xff]  ;;  %v3955_v10 = vld [vmem:[#allocation2 + $0x6a] sm:$0xff] }
 0x160   : > { %v1575_v0 = vadd.f32 %v1543_v28, %v4898_v36  ;;  %v3929_v15 = vmul.f32 0.5, %v1307_v16  ;;  %v1370_v14 = vmul.f32 0.70710677, %v1306_v7  ;;  %v1449_v40 = vadd.f32 1.0, %v2571_v11  ;;  %v4903_v11 = vld [vmem:[#allocation33_spill] sm:$0xff] }
 0x161   : > { %v1371_v33 = vmul.f32 0.70710677, %v1307_v16  ;;  %v1283_v61 = vadd.f32 %v1251_v54, %v1215_v12  ;;  %v1480_v59 = vmul.f32 %v1448_v30, %v3871_v23  ;;  %v1284_v60 = vadd.f32 %v1252_v5, %v1216_v8  ;;  %v4902_v16 = vld [vmem:[#allocation37_spill] sm:$0xff]  ;;  %v3960_v8 = vld [vmem:[#allocation2 + $0x120] sm:$0xff] }
 0x162   : > { %v1606_v19 = vpack.c.bf16 %v1575_v0, %v1574_v13  ;;  %2572 = verf.f32 %v1370_v14  ;;  %v893_v32 = vadd.f32 %v4899_v4, %v789_v2  ;;  %v1481_v29 = vmul.f32 %v1449_v40, %v3873_v35 }
 0x163   : > { %2574 = verf.f32 %v1371_v33  ;;  %v1322_v63 = vadd.f32 %v3722_v53, %v1283_v61  ;;  %v894_v39 = vadd.f32 %v4900_v9, %v790_v57  ;;  %v1519_v37 = vmul.f32 %v3885_v52, %v1480_v59  ;;  %v3962_v57 = vld [vmem:[#allocation2 + $0x128] sm:$0xff] }
 0x164   : > { %2374 = vmatprep.mubr.bf16.mxu0 %v1606_v19  ;;  %v1323_v58 = vadd.f32 %v3722_v53, %v1284_v60  ;;  %v929_v54 = vmul.f32 %v3493_v26, %v3564_v50  ;;  %v930_v23 = vmul.f32 %v3493_v26, %v3567_v51  ;;  %v1520_v5 = vmul.f32 %v3885_v52, %v1481_v29  ;;  %v4904_v33 = vld [vmem:[#allocation41_spill] sm:$0xff]  ;;  %v4905_v60 = vld [vmem:[#allocation58_spill] sm:$0xff] }
 0x165   : > { %v3943_v38 = vmul.f32 0.5, %v1322_v63  ;;  %v1386_v35 = vmul.f32 0.70710677, %v1322_v63  ;;  %v997_v45 = vmul.f32 %v3495_v27, %v4901_v42  ;;  %v1558_v47 = vadd.f32 %v3897_v44, %v1519_v37  ;;  %v4906_v29 = vld [vmem:[#allocation42_spill] sm:$0xff] }
 0x166   : > { %v3948_v28 = vmul.f32 0.5, %v1323_v58  ;;  %v1387_v34 = vmul.f32 0.70710677, %v1323_v58  ;;  %v961_v48 = vadd.f32 %v929_v54, %v893_v32  ;;  %v1559_v13 = vadd.f32 %v3897_v44, %v1520_v5  ;;  %v4907_v54 = vld [vmem:[#allocation43_spill] sm:$0xff]  ;;  %v4908_v5 = vld [vmem:[#allocation44_spill] sm:$0xff] }
 0x167   : > { %2576 = verf.f32 %v1386_v35  ;;  %v962_v7 = vadd.f32 %v930_v23, %v894_v39  ;;  %v998_v2 = vmul.f32 %v3495_v27, %v4902_v16  ;;  %v1590_v36 = vadd.f32 %v1558_v47, %v3530_v41 }
 0x168   : > { %2578 = verf.f32 %v1387_v34  ;;  %v1029_v0 = vadd.f32 %v997_v45, %v961_v48  ;;  %v1169_v12 = vmul.f32 %v3597_v62, %v3831_v6  ;;  %v1591_v30 = vadd.f32 %v1559_v13, %v4903_v11 }
 0x169   : > { %v1030_v14 = vadd.f32 %v998_v2, %v962_v7  ;;  %v1170_v19 = vmul.f32 %v3597_v62, %v3833_v31  ;;  %v1237_v40 = vmul.f32 %v3645_v25, %v3950_v3  ;;  %v1238_v61 = vmul.f32 %v3645_v25, %v3955_v10  ;;  %v4909_v7 = vld [vmem:[#allocation38_spill] sm:$0xff] }
 0x16a   : > { %v1133_v41 = vadd.f32 %v4904_v33, %v1029_v0  ;;  %v705_v59 = vmul.f32 %v3485_v20, %v3847_v22  ;;  %v706_v4 = vmul.f32 %v3485_v20, %v4905_v60  ;;  %v1614_v32 = vpack.c.bf16 %v1591_v30, %v1590_v36  ;;  %v3989_v30 = vld [vmem:[#allocation2 + $0x122] sm:$0xff] }
 0x16b   : > { %v1134_v63 = vadd.f32 %v4906_v29, %v1030_v14  ;;  %v773_v9 = vmul.f32 %v3487_v21, %v3960_v8  ;;  %v774_v39 = vmul.f32 %v3487_v21, %v3962_v57  ;;  %v945_v45 = vmul.f32 %v3493_v26, %v3584_v55  ;;  %4910 = vst [vmem:[#allocation25_spill] sm:$0xff] %v3989_v30  ;;  %v4912_v29 = vld [vmem:[#allocation46_spill] sm:$0xff] }
 0x16c   : > { %v2573_v37 = vpop.eup %2572  ;;  %v1201_v58 = vadd.f32 %v1169_v12, %v1133_v41  ;;  %v737_v23 = vadd.f32 %v705_v59, %v4907_v54  ;;  %v738_v35 = vadd.f32 %v706_v4, %v4908_v5  ;;  %2390 = vmatprep.mubr.bf16.mxu1 %v1614_v32  ;;  %v946_v13 = vmul.f32 %v3493_v26, %v3587_v56  ;;  %v4911_v41 = vld [vmem:[#allocation39_spill] sm:$0xff] }
 0x16d   : > { %v2575_v47 = vpop.eup %2574  ;;  %v1434_v34 = vadd.f32 1.0, %v2573_v37  ;;  %v1202_v48 = vadd.f32 %v1170_v19, %v1134_v63  ;;  %v1013_v2 = vmul.f32 %v3495_v27, %v4909_v7  ;;  %v1014_v59 = vmul.f32 %v3495_v27, %v4911_v41 }
 0x16e   : > { %v1435_v36 = vadd.f32 1.0, %v2575_v47  ;;  %v1269_v0 = vadd.f32 %v1237_v40, %v1201_v58  ;;  %v805_v12 = vadd.f32 %v773_v9, %v737_v23  ;;  %v806_v11 = vadd.f32 %v774_v39, %v738_v35  ;;  %v4913_v40 = vld [vmem:[#allocation50_spill] sm:$0xff] }
 0x16f   : > { %v1466_v14 = vmul.f32 %v1434_v34, %v3927_v18  ;;  %v1270_v33 = vadd.f32 %v1238_v61, %v1202_v48  ;;  %v1185_v19 = vmul.f32 %v3597_v62, %v3869_v46  ;;  %v1186_v61 = vmul.f32 %v3597_v62, %v3877_v24 }
 0x170   : > { %v1467_v4 = vmul.f32 %v1435_v36, %v3929_v15  ;;  %v1308_v32 = vadd.f32 %v3722_v53, %v1269_v0  ;;  %v909_v63 = vadd.f32 %v4912_v29, %v805_v12  ;;  %v910_v9 = vadd.f32 %v4913_v40, %v806_v11  ;;  %v4012_v0 = vld [vmem:[#allocation2 + $0x12a] sm:$0xff]  ;;  %v4915_v40 = vld [vmem:[#allocation27_spill] sm:$0xff] }
 0x171   : > { %v2577_v39 = vpop.eup %2576  ;;  %v1505_v37 = vmul.f32 %v3885_v52, %v1466_v14  ;;  %v1309_v18 = vadd.f32 %v3722_v53, %v1270_v33  ;;  %v1253_v58 = vmul.f32 %v3645_v25, %v3989_v30  ;;  %v4914_v33 = vld [vmem:[#allocation26_spill] sm:$0xff] }
 0x172   : > { %v2579_v54 = vpop.eup %2578  ;;  %v1506_v15 = vmul.f32 %v3885_v52, %v1467_v4  ;;  %v1450_v23 = vadd.f32 1.0, %v2577_v39  ;;  %v4007_v5 = vmul.f32 0.5, %v1308_v32  ;;  %v1372_v35 = vmul.f32 0.70710677, %v1308_v32  ;;  %v4022_v30 = vld [vmem:[#allocation2 + $0x78] sm:$0xff] }
 0x173   : > { %v1544_v47 = vadd.f32 %v3897_v44, %v1505_v37  ;;  %v1451_v34 = vadd.f32 1.0, %v2579_v54  ;;  %v4010_v48 = vmul.f32 0.5, %v1309_v18  ;;  %v1373_v36 = vmul.f32 0.70710677, %v1309_v18 }
 0x174   : > { %v1545_v12 = vadd.f32 %v3897_v44, %v1506_v15  ;;  %v1482_v11 = vmul.f32 %v1450_v23, %v3943_v38  ;;  %2580 = verf.f32 %v1372_v35  ;;  %v977_v14 = vadd.f32 %v945_v45, %v909_v63  ;;  %v4025_v45 = vld [vmem:[#allocation2 + $0x80] sm:$0xff] }
 0x175   : > { %v1576_v4 = vadd.f32 %v1544_v47, %v4914_v33  ;;  %v1483_v29 = vmul.f32 %v1451_v34, %v3948_v28  ;;  %2582 = verf.f32 %v1373_v36  ;;  %v978_v32 = vadd.f32 %v946_v13, %v910_v9  ;;  %v4916_v63 = vld [vmem:[#allocation28_spill] sm:$0xff]  ;;  %v4918_v36 = vld [vmem:[#allocation57_spill] sm:$0xff] }
 0x176   : > { %v1577_v39 = vadd.f32 %v1545_v12, %v4915_v40  ;;  %v1521_v37 = vmul.f32 %v3885_v52, %v1482_v11  ;;  %v1045_v54 = vadd.f32 %v1013_v2, %v977_v14  ;;  %v1254_v18 = vmul.f32 %v3645_v25, %v4012_v0  ;;  %v4917_v2 = vld [vmem:[#allocation56_spill] sm:$0xff] }
 0x177   : > { %v1522_v38 = vmul.f32 %v3885_v52, %v1483_v29  ;;  %v1046_v15 = vadd.f32 %v1014_v59, %v978_v32  ;;  %v623_v28 = vmul.f32 %v4916_v63, %v3822_v43  ;;  %v624_v13 = vmul.f32 %v4916_v63, %v3824_v49  ;;  %v4919_v49 = vld [vmem:[#allocation34_spill] sm:$0xff]  ;;  %v4920_v29 = vld [vmem:[#allocation35_spill] sm:$0xff] }
 0x178   : > { %v1607_v9 = vpack.c.bf16 %v1577_v39, %v1576_v4  ;;  %v1560_v23 = vadd.f32 %v3897_v44, %v1521_v37  ;;  %v1149_v35 = vadd.f32 %v4917_v2, %v1045_v54  ;;  %v691_v47 = vmul.f32 %v3485_v20, %v3901_v17  ;;  %v4921_v37 = vld [vmem:[#allocation29_spill] sm:$0xff] }
 0x179   : > { %v1561_v34 = vadd.f32 %v3897_v44, %v1522_v38  ;;  %v1150_v59 = vadd.f32 %v4918_v36, %v1046_v15  ;;  %v692_v12 = vmul.f32 %v3485_v20, %v3908_v1  ;;  %v759_v43 = vmul.f32 %v3487_v21, %v4022_v30  ;;  %v4923_v36 = vld [vmem:[#allocation45_spill] sm:$0xff] }
 0x17a   : > { %2375 = vmatmul.mubr.bf16.vlgmr.msra.gmra.mrb[0].mxu0 %v1607_v9  ;;  %v1592_v11 = vadd.f32 %v1560_v23, %v4919_v49  ;;  %v1217_v14 = vadd.f32 %v1185_v19, %v1149_v35  ;;  %v723_v33 = vadd.f32 %v691_v47, %v623_v28  ;;  %v760_v4 = vmul.f32 %v3487_v21, %v4025_v45 }
 0x17b   : > { %v1593_v32 = vadd.f32 %v1561_v34, %v4920_v29  ;;  %v1218_v40 = vadd.f32 %v1186_v61, %v1150_v59  ;;  %v724_v39 = vadd.f32 %v692_v12, %v624_v13  ;;  %v863_v54 = vmul.f32 %v4921_v37, %v3564_v50  ;;  %v4922_v34 = vld [vmem:[#allocation40_spill] sm:$0xff] }
 0x17c   : > { %v1285_v38 = vadd.f32 %v1253_v58, %v1217_v14  ;;  %v791_v15 = vadd.f32 %v759_v43, %v723_v33  ;;  %v864_v2 = vmul.f32 %v4921_v37, %v3567_v51  ;;  %v931_v9 = vmul.f32 %v3493_v26, %v4901_v42 }
 0x17d   : > { %v1615_v19 = vpack.c.bf16 %v1593_v32, %v1592_v11  ;;  %v1286_v28 = vadd.f32 %v1254_v18, %v1218_v40  ;;  %v792_v23 = vadd.f32 %v760_v4, %v724_v39  ;;  %v932_v35 = vmul.f32 %v3493_v26, %v4902_v16  ;;  %v4924_v11 = vld [vmem:[#allocation30_spill] sm:$0xff] }
 0x17e   : > { %v2581_v47 = vpop.eup %2580  ;;  %v1324_v61 = vadd.f32 %v3722_v53, %v1285_v38  ;;  %v895_v13 = vadd.f32 %v863_v54, %v791_v15  ;;  %v999_v58 = vmul.f32 %v3495_v27, %v4922_v34  ;;  %v1000_v59 = vmul.f32 %v3495_v27, %v4923_v36  ;;  %v4066_v15 = vld [vmem:[#allocation2 + $0x7a] sm:$0xff] }
 0x17f   : > { %v2583_v12 = vpop.eup %2582  ;;  %2391 = vmatmul.mubr.bf16.vlgmr.msra.gmra.mrb[0].mxu1 %v1615_v19  ;;  %v1436_v43 = vadd.f32 1.0, %v2581_v47  ;;  %v1325_v49 = vadd.f32 %v3722_v53, %v1286_v28  ;;  %v896_v18 = vadd.f32 %v864_v2, %v792_v23  ;;  %v1103_v14 = vmul.f32 %v4924_v11, %v3831_v6  ;;  %v4069_v28 = vld [vmem:[#allocation2 + $0x82] sm:$0xff] }
 0x180   : > { %v1437_v33 = vadd.f32 1.0, %v2583_v12  ;;  %v4061_v4 = vmul.f32 0.5, %v1324_v61  ;;  %v1388_v29 = vmul.f32 0.70710677, %v1324_v61  ;;  %v963_v32 = vadd.f32 %v931_v9, %v895_v13  ;;  %v4081_v13 = vld [vmem:[#allocation2 + $0x138] sm:$0xff]  ;;  %v4086_v12 = vld [vmem:[#allocation2 + $0x140] sm:$0xff] }
 0x181   : > { %v1468_v40 = vmul.f32 %v1436_v43, %v4007_v5  ;;  %v4064_v39 = vmul.f32 0.5, %v1325_v49  ;;  %v1389_v54 = vmul.f32 0.70710677, %v1325_v49  ;;  %v964_v38 = vadd.f32 %v932_v35, %v896_v18 }
 0x182   : > { %v1469_v19 = vmul.f32 %v1437_v33, %v4010_v48  ;;  %2584 = verf.f32 %v1388_v29  ;;  %v1031_v2 = vadd.f32 %v999_v58, %v963_v32  ;;  %v1104_v6 = vmul.f32 %v4924_v11, %v3833_v31 }
 0x183   : > { %v1507_v23 = vmul.f32 %v3885_v52, %v1468_v40  ;;  %2586 = verf.f32 %v1389_v54  ;;  %v1032_v9 = vadd.f32 %v1000_v59, %v964_v38  ;;  %v1171_v5 = vmul.f32 %v3597_v62, %v3950_v3 }
 0x184   : > { %v1508_v35 = vmul.f32 %v3885_v52, %v1469_v19  ;;  %v1135_v47 = vadd.f32 %v1103_v14, %v1031_v2  ;;  %v1172_v48 = vmul.f32 %v3597_v62, %v3955_v10  ;;  %v1239_v61 = vmul.f32 %v3645_v25, %v4066_v15 }
 0x185   : > { %v1546_v31 = vadd.f32 %v3897_v44, %v1507_v23  ;;  %v1136_v58 = vadd.f32 %v1104_v6, %v1032_v9  ;;  %v1240_v59 = vmul.f32 %v3645_v25, %v4069_v28  ;;  %v639_v43 = vmul.f32 %v4916_v63, %v3847_v22 }
 0x186   : > { %v1547_v49 = vadd.f32 %v3897_v44, %v1508_v35  ;;  %v1203_v18 = vadd.f32 %v1171_v5, %v1135_v47  ;;  %v640_v14 = vmul.f32 %v4916_v63, %v4905_v60  ;;  %v707_v33 = vmul.f32 %v3485_v20, %v3960_v8 }
 0x187   : > { %v1578_v29 = vadd.f32 %v1546_v31, %v3564_v50  ;;  %v1204_v32 = vadd.f32 %v1172_v48, %v1136_v58  ;;  %v708_v40 = vmul.f32 %v3485_v20, %v3962_v57  ;;  %v775_v54 = vmul.f32 %v3487_v21, %v4081_v13  ;;  %v4925_v31 = vld [vmem:[#allocation47_spill] sm:$0xff] }
 0x188   : > { %v1579_v22 = vadd.f32 %v1547_v49, %v3567_v51  ;;  %v1271_v38 = vadd.f32 %v1239_v61, %v1203_v18  ;;  %v739_v19 = vadd.f32 %v707_v33, %v639_v43  ;;  %v776_v2 = vmul.f32 %v3487_v21, %v4086_v12 }
 0x189   : > { %v1272_v60 = vadd.f32 %v1240_v59, %v1204_v32  ;;  %v740_v6 = vadd.f32 %v708_v40, %v640_v14  ;;  %v879_v23 = vmul.f32 %v4921_v37, %v3584_v55  ;;  %v880_v50 = vmul.f32 %v4921_v37, %v3587_v56  ;;  %v4926_v14 = vld [vmem:[#allocation48_spill] sm:$0xff] }
 0x18a   : > { %v1608_v9 = vpack.c.bf16 %v1579_v22, %v1578_v29  ;;  %v1310_v5 = vadd.f32 %v3722_v53, %v1271_v38  ;;  %v807_v35 = vadd.f32 %v775_v54, %v739_v19  ;;  %v947_v51 = vmul.f32 %v3493_v26, %v4909_v7  ;;  %v4121_v38 = vld [vmem:[#allocation2 + $0x13a] sm:$0xff]  ;;  %v4123_v19 = vld [vmem:[#allocation2 + $0x142] sm:$0xff] }
 0x18b   : > { %v1311_v47 = vadd.f32 %v3722_v53, %v1272_v60  ;;  %v808_v48 = vadd.f32 %v776_v2, %v740_v6  ;;  %v948_v61 = vmul.f32 %v3493_v26, %v4911_v41  ;;  %v1015_v58 = vmul.f32 %v3495_v27, %v4925_v31 }
 0x18c   : > { %v2585_v59 = vpop.eup %2584  ;;  %2378 = vmatprep.mubr.bf16.mxu0 %v1608_v9  ;;  %v4115_v43 = vmul.f32 0.5, %v1310_v5  ;;  %v1374_v49 = vmul.f32 0.70710677, %v1310_v5  ;;  %v911_v18 = vadd.f32 %v879_v23, %v807_v35  ;;  %v1016_v33 = vmul.f32 %v3495_v27, %v4926_v14  ;;  %v4927_v5 = vld [vmem:[#allocation25_spill] sm:$0xff] }
 0x18d   : > { %v2587_v29 = vpop.eup %2586  ;;  %v1452_v7 = vadd.f32 1.0, %v2585_v59  ;;  %v4119_v32 = vmul.f32 0.5, %v1311_v47  ;;  %v1375_v40 = vmul.f32 0.70710677, %v1311_v47  ;;  %v912_v54 = vadd.f32 %v880_v50, %v808_v48 }
 0x18e   : > { %v1453_v22 = vadd.f32 1.0, %v2587_v29  ;;  %2588 = verf.f32 %v1374_v49  ;;  %v979_v41 = vadd.f32 %v947_v51, %v911_v18  ;;  %v1119_v2 = vmul.f32 %v4924_v11, %v3869_v46 }
 0x18f   : > { %v1484_v60 = vmul.f32 %v1452_v7, %v4061_v4  ;;  %2590 = verf.f32 %v1375_v40  ;;  %v980_v6 = vadd.f32 %v948_v61, %v912_v54  ;;  %v1120_v23 = vmul.f32 %v4924_v11, %v3877_v24  ;;  %v4140_v61 = vld [vmem:[#allocation2 + $0x90] sm:$0xff]  ;;  %v4142_v24 = vld [vmem:[#allocation2 + $0x98] sm:$0xff] }
 0x190   : > { %v1485_v9 = vmul.f32 %v1453_v22, %v4064_v39  ;;  %v1047_v50 = vadd.f32 %v1015_v58, %v979_v41  ;;  %v1187_v35 = vmul.f32 %v3597_v62, %v4927_v5  ;;  %v1188_v51 = vmul.f32 %v3597_v62, %v4012_v0 }
 0x191   : > { %v1523_v47 = vmul.f32 %v3885_v52, %v1484_v60  ;;  %v1048_v48 = vadd.f32 %v1016_v33, %v980_v6  ;;  %v1255_v46 = vmul.f32 %v3645_v25, %v4121_v38  ;;  %v1256_v4 = vmul.f32 %v3645_v25, %v4123_v19 }
 0x192   : > { %v1524_v39 = vmul.f32 %v3885_v52, %v1485_v9  ;;  %v1151_v58 = vadd.f32 %v1119_v2, %v1047_v50  ;;  %v625_v59 = vmul.f32 %v4916_v63, %v3901_v17  ;;  %v626_v49 = vmul.f32 %v4916_v63, %v3908_v1 }
 0x193   : > { %v1562_v18 = vadd.f32 %v3897_v44, %v1523_v47  ;;  %v1152_v33 = vadd.f32 %v1120_v23, %v1048_v48  ;;  %v693_v29 = vmul.f32 %v3485_v20, %v4022_v30  ;;  %v694_v25 = vmul.f32 %v3485_v20, %v4025_v45 }
 0x194   : > { %v1563_v7 = vadd.f32 %v3897_v44, %v1524_v39  ;;  %v1219_v40 = vadd.f32 %v1187_v35, %v1151_v58  ;;  %v761_v54 = vmul.f32 %v3487_v21, %v4140_v61  ;;  %v762_v17 = vmul.f32 %v3487_v21, %v4142_v24 }
 0x195   : > { %v1594_v1 = vadd.f32 %v1562_v18, %v3584_v55  ;;  %v1220_v22 = vadd.f32 %v1188_v51, %v1152_v33  ;;  %v725_v41 = vadd.f32 %v693_v29, %v625_v59  ;;  %v726_v2 = vadd.f32 %v694_v25, %v626_v49  ;;  %v4929_v29 = vld [vmem:[#allocation51_spill] sm:$0xff] }
 0x196   : > { %v1595_v60 = vadd.f32 %v1563_v7, %v3587_v56  ;;  %v1287_v6 = vadd.f32 %v1255_v46, %v1219_v40  ;;  %v865_v23 = vmul.f32 %v4921_v37, %v4901_v42  ;;  %v866_v9 = vmul.f32 %v4921_v37, %v4902_v16  ;;  %v4928_v46 = vld [vmem:[#allocation49_spill] sm:$0xff] }
 0x197   : > { %v1288_v50 = vadd.f32 %v1256_v4, %v1220_v22  ;;  %v793_v35 = vadd.f32 %v761_v54, %v725_v41  ;;  %v794_v47 = vadd.f32 %v762_v17, %v726_v2  ;;  %v933_v48 = vmul.f32 %v3493_v26, %v4922_v34  ;;  %v4181_v22 = vld [vmem:[#allocation2 + $0x92] sm:$0xff]  ;;  %v4183_v41 = vld [vmem:[#allocation2 + $0x9a] sm:$0xff] }
 0x198   : > { %v2589_v39 = vpop.eup %2588  ;;  %v1616_v55 = vpack.c.bf16 %v1595_v60, %v1594_v1  ;;  %v1326_v51 = vadd.f32 %v3722_v53, %v1287_v6  ;;  %v934_v56 = vmul.f32 %v3493_v26, %v4923_v36  ;;  %v1001_v58 = vmul.f32 %v3495_v27, %v4928_v46 }
 0x199   : > { %v2591_v42 = vpop.eup %2590  ;;  %v1438_v59 = vadd.f32 1.0, %v2589_v39  ;;  %v1327_v16 = vadd.f32 %v3722_v53, %v1288_v50  ;;  %v897_v4 = vadd.f32 %v865_v23, %v793_v35  ;;  %v898_v49 = vadd.f32 %v866_v9, %v794_v47  ;;  %v4202_v39 = vld [vmem:[#allocation2 + $0x150] sm:$0xff] }
 0x19a   : > { %2394 = vmatprep.mubr.bf16.mxu1 %v1616_v55  ;;  %v1439_v18 = vadd.f32 1.0, %v2591_v42  ;;  %v4173_v33 = vmul.f32 0.5, %v1326_v51  ;;  %v1390_v34 = vmul.f32 0.70710677, %v1326_v51  ;;  %v1002_v25 = vmul.f32 %v3495_v27, %v4929_v29  ;;  %v4204_v55 = vld [vmem:[#allocation2 + $0x158] sm:$0xff]  ;;  %v2693_v42 = vld [vmem:[#allocation2 + $0x61] sm:$0xff] }
 0x19b   : > { %v1470_v7 = vmul.f32 %v1438_v59, %v4115_v43  ;;  %v4178_v36 = vmul.f32 0.5, %v1327_v16  ;;  %v1391_v40 = vmul.f32 0.70710677, %v1327_v16  ;;  %v965_v54 = vadd.f32 %v933_v48, %v897_v4 }
 0x19c   : > { %v1471_v17 = vmul.f32 %v1439_v18, %v4119_v32  ;;  %2592 = verf.f32 %v1390_v34  ;;  %v966_v1 = vadd.f32 %v934_v56, %v898_v49  ;;  %v1105_v2 = vmul.f32 %v4924_v11, %v3950_v3  ;;  %v4196_v3 = vld [vmem:[#allocation6 + $0x8] ss:$0 sm:$0xff]  ;;  %v2694_v18 = vld [vmem:[#allocation2 + $0x69] sm:$0xff] }
 0x19d   : > { %v1509_v60 = vmul.f32 %v3885_v52, %v1470_v7  ;;  %2594 = verf.f32 %v1391_v40  ;;  %v1033_v6 = vadd.f32 %v1001_v58, %v965_v54  ;;  %v1106_v43 = vmul.f32 %v4924_v11, %v3955_v10  ;;  %v2695_v54 = vld [vmem:[#allocation2 + $0x121] sm:$0xff] }
 0x19e   : > { %v1510_v23 = vmul.f32 %v3885_v52, %v1471_v17  ;;  %v1034_v9 = vadd.f32 %v1002_v25, %v966_v1  ;;  %v1173_v32 = vmul.f32 %v3597_v62, %v4066_v15  ;;  %v1174_v50 = vmul.f32 %v3597_v62, %v4069_v28 }
 0x19f   : > { %v1548_v35 = vadd.f32 %v3897_v44, %v1509_v60  ;;  %v1137_v47 = vadd.f32 %v1105_v2, %v1033_v6  ;;  %v1241_v48 = vmul.f32 %v4196_v3, %v4181_v22  ;;  %v1242_v10 = vmul.f32 %v4196_v3, %v4183_v41  ;;  %v2696_v60 = vld [vmem:[#allocation2 + $0x129] sm:$0xff] }
 0x1a0   : > { %v1549_v51 = vadd.f32 %v3897_v44, %v1510_v23  ;;  %v1138_v56 = vadd.f32 %v1106_v43, %v1034_v9  ;;  %v641_v46 = vmul.f32 %v4916_v63, %v3960_v8  ;;  %v642_v58 = vmul.f32 %v4916_v63, %v3962_v57 }
 0x1a1   : > { %v1580_v59 = vadd.f32 %v2693_v42, %v1548_v35  ;;  %v1205_v16 = vadd.f32 %v1173_v32, %v1137_v47  ;;  %v709_v4 = vmul.f32 %v3485_v20, %v4081_v13  ;;  %v710_v49 = vmul.f32 %v3485_v20, %v4086_v12 }
 0x1a2   : > { %v1581_v34 = vadd.f32 %v2694_v18, %v1549_v51  ;;  %v1206_v29 = vadd.f32 %v1174_v50, %v1138_v56  ;;  %v777_v25 = vmul.f32 %v3487_v21, %v4202_v39  ;;  %v778_v8 = vmul.f32 %v3487_v21, %v4204_v55  ;;  %v4931_v51 = vld [vmem:[#allocation53_spill] sm:$0xff] }
 0x1a3   : > { %v1273_v7 = vadd.f32 %v1241_v48, %v1205_v16  ;;  %v741_v57 = vadd.f32 %v709_v4, %v641_v46  ;;  %v742_v40 = vadd.f32 %v710_v49, %v642_v58  ;;  %v881_v17 = vmul.f32 %v2695_v54, %v4921_v37  ;;  %v4930_v48 = vld [vmem:[#allocation52_spill] sm:$0xff]  ;;  %v4237_v18 = vld [vmem:[#allocation2 + $0x152] sm:$0xff] }
 0x1a4   : > { %v1609_v1 = vpack.c.bf16 %v1581_v34, %v1580_v59  ;;  %v1274_v2 = vadd.f32 %v1242_v10, %v1206_v29  ;;  %v882_v6 = vmul.f32 %v2696_v60, %v4921_v37  ;;  %v949_v43 = vmul.f32 %v3493_v26, %v4925_v31 }
 0x1a5   : > { %v1312_v23 = vadd.f32 %v3722_v53, %v1273_v7  ;;  %v809_v9 = vadd.f32 %v777_v25, %v741_v57  ;;  %v810_v32 = vadd.f32 %v778_v8, %v742_v40  ;;  %v950_v50 = vmul.f32 %v3493_v26, %v4926_v14  ;;  %v4240_v25 = vld [vmem:[#allocation2 + $0x15a] sm:$0xff] }
 0x1a6   : > { %v2593_v35 = vpop.eup %2592  ;;  %2379 = vmatmul.mubr.bf16.gmra.mrb[4].mxu0 %v1609_v1  ;;  %v1313_v47 = vadd.f32 %v3722_v53, %v1274_v2  ;;  %v1017_v10 = vmul.f32 %v3495_v27, %v4930_v48  ;;  %v1018_v56 = vmul.f32 %v3495_v27, %v4931_v51  ;;  %v1121_v31 = vmul.f32 %v4924_v11, %v4927_v5  ;;  %v4252_v2 = vld [vmem:[#allocation2 + $0xa8] sm:$0xff] }
 0x1a7   : > { %v2595_v46 = vpop.eup %2594  ;;  %v1454_v58 = vadd.f32 1.0, %v2593_v35  ;;  %v4233_v42 = vmul.f32 0.5, %v1312_v23  ;;  %v1376_v59 = vmul.f32 0.70710677, %v1312_v23  ;;  %v913_v16 = vadd.f32 %v881_v17, %v809_v9 }
 0x1a8   : > { %v1455_v14 = vadd.f32 1.0, %v2595_v46  ;;  %v4235_v4 = vmul.f32 0.5, %v1313_v47  ;;  %v1377_v49 = vmul.f32 0.70710677, %v1313_v47  ;;  %v914_v53 = vadd.f32 %v882_v6, %v810_v32 }
 0x1a9   : > { %v1486_v34 = vmul.f32 %v1454_v58, %v4173_v33  ;;  %2596 = verf.f32 %v1376_v59  ;;  %v981_v29 = vadd.f32 %v949_v43, %v913_v16  ;;  %v1122_v5 = vmul.f32 %v4924_v11, %v4012_v0  ;;  %v4257_v43 = vld [vmem:[#allocation2 + $0xb0] sm:$0xff]  ;;  %v2697_v16 = vld [vmem:[#allocation2 + $0x79] sm:$0xff] }
 0x1aa   : > { %v1487_v8 = vmul.f32 %v1455_v14, %v4178_v36  ;;  %2598 = verf.f32 %v1377_v49  ;;  %v982_v7 = vadd.f32 %v950_v50, %v914_v53  ;;  %v1189_v57 = vmul.f32 %v3597_v62, %v4121_v38 }
 0x1ab   : > { %v1525_v40 = vmul.f32 %v3885_v52, %v1486_v34  ;;  %v1049_v17 = vadd.f32 %v1017_v10, %v981_v29  ;;  %v1190_v33 = vmul.f32 %v3597_v62, %v4123_v19  ;;  %v1257_v1 = vmul.f32 %v4196_v3, %v4237_v18  ;;  %v2698_v34 = vld [vmem:[#allocation2 + $0x81] sm:$0xff] }
 0x1ac   : > { %v1526_v0 = vmul.f32 %v3885_v52, %v1487_v8  ;;  %v1050_v6 = vadd.f32 %v1018_v56, %v982_v7  ;;  %v1258_v36 = vmul.f32 %v4196_v3, %v4240_v25  ;;  %v627_v23 = vmul.f32 %v4916_v63, %v4022_v30 }
 0x1ad   : > { %v1564_v9 = vadd.f32 %v3897_v44, %v1525_v40  ;;  %v1153_v32 = vadd.f32 %v1121_v31, %v1049_v17  ;;  %v628_v50 = vmul.f32 %v4916_v63, %v4025_v45  ;;  %v695_v35 = vmul.f32 %v3485_v20, %v4140_v61  ;;  %v4279_v40 = vld [vmem:[#allocation2 + $0x99] sm:$0xff] }
 0x1ae   : > { %v1565_v47 = vadd.f32 %v3897_v44, %v1526_v0  ;;  %v1154_v48 = vadd.f32 %v1122_v5, %v1050_v6  ;;  %v696_v10 = vmul.f32 %v3485_v20, %v4142_v24  ;;  %v763_v51 = vmul.f32 %v3487_v21, %v4252_v2  ;;  %v4275_v5 = vld [vmem:[#allocation2 + $0x91] sm:$0xff] }
 0x1af   : > { %v1596_v56 = vadd.f32 %v2695_v54, %v1564_v9  ;;  %v1221_v30 = vadd.f32 %v1189_v57, %v1153_v32  ;;  %v727_v46 = vadd.f32 %v695_v35, %v627_v23  ;;  %v764_v31 = vmul.f32 %v3487_v21, %v4257_v43  ;;  %v4932_v6 = vld [vmem:[#allocation54_spill] sm:$0xff]  ;;  %v4933_v9 = vld [vmem:[#allocation55_spill] sm:$0xff] }
 0x1b0   : > { %v1597_v58 = vadd.f32 %v2696_v60, %v1565_v47  ;;  %v1222_v45 = vadd.f32 %v1190_v33, %v1154_v48  ;;  %v728_v59 = vadd.f32 %v696_v10, %v628_v50  ;;  %v867_v14 = vmul.f32 %v2697_v16, %v4921_v37  ;;  %v4283_v33 = vld [vmem:[#allocation8] ss:$0 sm:$0xff] }
 0x1b1   : > { %v1289_v49 = vadd.f32 %v1257_v1, %v1221_v30  ;;  %v795_v53 = vadd.f32 %v763_v51, %v727_v46  ;;  %v868_v29 = vmul.f32 %v2698_v34, %v4921_v37  ;;  %v935_v54 = vmul.f32 %v4275_v5, %v3493_v26 }
 0x1b2   : > { %v1617_v8 = vpack.c.bf16 %v1597_v58, %v1596_v56  ;;  %v1290_v7 = vadd.f32 %v1258_v36, %v1222_v45  ;;  %v796_v57 = vadd.f32 %v764_v31, %v728_v59  ;;  %v936_v60 = vmul.f32 %v4279_v40, %v3493_v26  ;;  %v4298_v59 = vld [vmem:[#allocation2 + $0xaa] sm:$0xff] }
 0x1b3   : > { %v2597_v17 = vpop.eup %2596  ;;  %v1328_v1 = vadd.f32 %v4283_v33, %v1289_v49  ;;  %v899_v0 = vadd.f32 %v867_v14, %v795_v53  ;;  %v1003_v23 = vmul.f32 %v3495_v27, %v4932_v6  ;;  %v1004_v32 = vmul.f32 %v3495_v27, %v4933_v9  ;;  %v4301_v53 = vld [vmem:[#allocation2 + $0xb2] sm:$0xff] }
 0x1b4   : > { %v2599_v50 = vpop.eup %2598  ;;  %2395 = vmatmul.mubr.bf16.gmra.mrb[4].mxu1 %v1617_v8  ;;  %v1440_v36 = vadd.f32 1.0, %v2597_v17  ;;  %v1329_v35 = vadd.f32 %v4283_v33, %v1290_v7  ;;  %v900_v47 = vadd.f32 %v868_v29, %v796_v57  ;;  %v1107_v48 = vmul.f32 %v4924_v11, %v4066_v15 }
 0x1b5   : > { %v1441_v10 = vadd.f32 1.0, %v2599_v50  ;;  %v4293_v51 = vmul.f32 0.5, %v1328_v1  ;;  %v1392_v56 = vmul.f32 0.70710677, %v1328_v1  ;;  %v967_v30 = vadd.f32 %v935_v54, %v899_v0  ;;  %v4318_v0 = vld [vmem:[#allocation2 + $0x170] sm:$0xff] }
 0x1b6   : > { %v1472_v46 = vmul.f32 %v1440_v36, %v4233_v42  ;;  %v4296_v31 = vmul.f32 0.5, %v1329_v35  ;;  %v1393_v58 = vmul.f32 0.70710677, %v1329_v35  ;;  %v968_v45 = vadd.f32 %v936_v60, %v900_v47  ;;  %v4313_v60 = vld [vmem:[#allocation2 + $0x168] sm:$0xff] }
 0x1b7   : > { %v1473_v14 = vmul.f32 %v1441_v10, %v4235_v4  ;;  %2600 = verf.f32 %v1392_v56  ;;  %v1035_v49 = vadd.f32 %v1003_v23, %v967_v30  ;;  %v1108_v15 = vmul.f32 %v4924_v11, %v4069_v28 }
 0x1b8   : > { %v1511_v29 = vmul.f32 %v3885_v52, %v1472_v46  ;;  %2602 = verf.f32 %v1393_v58  ;;  %v1036_v54 = vadd.f32 %v1004_v32, %v968_v45  ;;  %v1175_v42 = vmul.f32 %v3597_v62, %v4181_v22 }
 0x1b9   : > { %v1512_v8 = vmul.f32 %v3885_v52, %v1473_v14  ;;  %v1139_v7 = vadd.f32 %v1107_v48, %v1035_v49  ;;  %v1176_v4 = vmul.f32 %v3597_v62, %v4183_v41  ;;  %v1243_v57 = vmul.f32 %v4196_v3, %v4298_v59  ;;  %v2703_v14 = vld [vmem:[#allocation2 + $0x141] sm:$0xff] }
 0x1ba   : > { %v1550_v28 = vadd.f32 %v3897_v44, %v1511_v29  ;;  %v1140_v17 = vadd.f32 %v1108_v15, %v1036_v54  ;;  %v1244_v1 = vmul.f32 %v4196_v3, %v4301_v53  ;;  %v643_v6 = vmul.f32 %v4916_v63, %v4081_v13  ;;  %v4336_v54 = vld [vmem:[#allocation2 + $0x151] sm:$0xff] }
 0x1bb   : > { %v1551_v23 = vadd.f32 %v3897_v44, %v1512_v8  ;;  %v1207_v9 = vadd.f32 %v1175_v42, %v1139_v7  ;;  %v644_v32 = vmul.f32 %v4916_v63, %v4086_v12  ;;  %v711_v50 = vmul.f32 %v3485_v20, %v4202_v39  ;;  %v2702_v12 = vld [vmem:[#allocation2 + $0x139] sm:$0xff] }
 0x1bc   : > { %v1582_v36 = vadd.f32 %v2697_v16, %v1550_v28  ;;  %v1208_v35 = vadd.f32 %v1176_v4, %v1140_v17  ;;  %v712_v47 = vmul.f32 %v3485_v20, %v4204_v55  ;;  %v779_v48 = vmul.f32 %v3487_v21, %v4313_v60  ;;  %v4341_v7 = vld [vmem:[#allocation2 + $0x159] sm:$0xff] }
 0x1bd   : > { %v1583_v10 = vadd.f32 %v2698_v34, %v1551_v23  ;;  %v1275_v56 = vadd.f32 %v1243_v57, %v1207_v9  ;;  %v743_v13 = vadd.f32 %v711_v50, %v643_v6  ;;  %v780_v30 = vmul.f32 %v3487_v21, %v4318_v0  ;;  %v4345_v57 = vld [vmem:[#allocation2 + $0x169] sm:$0xff]  ;;  %v4351_v9 = vld [vmem:[#allocation2 + $0x171] sm:$0xff] }
 0x1be   : > { %v1276_v46 = vadd.f32 %v1244_v1, %v1208_v35  ;;  %v744_v58 = vadd.f32 %v712_v47, %v644_v32  ;;  %v883_v45 = vmul.f32 %v2702_v12, %v4921_v37  ;;  %v884_v16 = vmul.f32 %v2703_v14, %v4921_v37 }
 0x1bf   : > { %v1610_v49 = vpack.c.bf16 %v1583_v10, %v1582_v36  ;;  %v1314_v15 = vadd.f32 %v4283_v33, %v1275_v56  ;;  %v811_v29 = vadd.f32 %v779_v48, %v743_v13  ;;  %v951_v34 = vmul.f32 %v4336_v54, %v3493_v26  ;;  %v4357_v13 = vld [vmem:[#allocation2 + $0x16a] sm:$0xff] }
 0x1c0   : > { %v1315_v42 = vadd.f32 %v4283_v33, %v1276_v46  ;;  %v812_v8 = vadd.f32 %v780_v30, %v744_v58  ;;  %v952_v4 = vmul.f32 %v4341_v7, %v3493_v26  ;;  %v1019_v28 = vmul.f32 %v4345_v57, %v3495_v27  ;;  %v4359_v30 = vld [vmem:[#allocation2 + $0x172] sm:$0xff] }
 0x1c1   : > { %v2601_v17 = vpop.eup %2600  ;;  %2382 = vmatprep.mubr.bf16.mxu0 %v1610_v49  ;;  %v4349_v1 = vmul.f32 0.5, %v1314_v15  ;;  %v1378_v6 = vmul.f32 0.70710677, %v1314_v15  ;;  %v915_v23 = vadd.f32 %v883_v45, %v811_v29  ;;  %v1020_v32 = vmul.f32 %v4351_v9, %v3495_v27 }
 0x1c2   : > { %v2603_v50 = vpop.eup %2602  ;;  %v1456_v36 = vadd.f32 1.0, %v2601_v17  ;;  %v4355_v35 = vmul.f32 0.5, %v1315_v42  ;;  %v1379_v47 = vmul.f32 0.70710677, %v1315_v42  ;;  %v916_v48 = vadd.f32 %v884_v16, %v812_v8 }
 0x1c3   : > { %v1457_v10 = vadd.f32 1.0, %v2603_v50  ;;  %2604 = verf.f32 %v1378_v6  ;;  %v983_v56 = vadd.f32 %v951_v34, %v915_v23  ;;  %v1123_v46 = vmul.f32 %v4924_v11, %v4121_v38 }
 0x1c4   : > { %v1488_v58 = vmul.f32 %v1456_v36, %v4293_v51  ;;  %2606 = verf.f32 %v1379_v47  ;;  %v984_v45 = vadd.f32 %v952_v4, %v916_v48  ;;  %v1124_v49 = vmul.f32 %v4924_v11, %v4123_v19  ;;  %v4391_v47 = vld [vmem:[#allocation2 + $0xc8] sm:$0xff] }
 0x1c5   : > { %v1489_v15 = vmul.f32 %v1457_v10, %v4296_v31  ;;  %v1051_v16 = vadd.f32 %v1019_v28, %v983_v56  ;;  %v1191_v29 = vmul.f32 %v3597_v62, %v4237_v18  ;;  %v1192_v34 = vmul.f32 %v3597_v62, %v4240_v25 }
 0x1c6   : > { %v1527_v42 = vmul.f32 %v3885_v52, %v1488_v58  ;;  %v1052_v8 = vadd.f32 %v1020_v32, %v984_v45  ;;  %v1259_v38 = vmul.f32 %v4196_v3, %v4357_v13  ;;  %v1260_v51 = vmul.f32 %v4196_v3, %v4359_v30 }
 0x1c7   : > { %v1528_v19 = vmul.f32 %v3885_v52, %v1489_v15  ;;  %v1155_v4 = vadd.f32 %v1123_v46, %v1051_v16  ;;  %v629_v31 = vmul.f32 %v4916_v63, %v4140_v61  ;;  %v630_v28 = vmul.f32 %v4916_v63, %v4142_v24  ;;  %v4387_v52 = vld [vmem:[#allocation2 + $0xc0] sm:$0xff] }
 0x1c8   : > { %v1566_v17 = vadd.f32 %v3897_v44, %v1527_v42  ;;  %v1156_v6 = vadd.f32 %v1124_v49, %v1052_v8  ;;  %v697_v23 = vmul.f32 %v3485_v20, %v4252_v2  ;;  %v698_v32 = vmul.f32 %v3485_v20, %v4257_v43  ;;  %v4399_v42 = vld [vmem:[#allocation2 + $0xa9] sm:$0xff] }
 0x1c9   : > { %v1567_v50 = vadd.f32 %v3897_v44, %v1528_v19  ;;  %v1223_v36 = vadd.f32 %v1191_v29, %v1155_v4  ;;  %v765_v61 = vmul.f32 %v4387_v52, %v3487_v21  ;;  %v766_v24 = vmul.f32 %v4391_v47, %v3487_v21  ;;  %v4408_v4 = vld [vmem:[#allocation2 + $0xc1] sm:$0xff] }
 0x1ca   : > { %v1598_v48 = vadd.f32 %v2702_v12, %v1566_v17  ;;  %v1224_v10 = vadd.f32 %v1192_v34, %v1156_v6  ;;  %v729_v56 = vadd.f32 %v697_v23, %v629_v31  ;;  %v730_v46 = vadd.f32 %v698_v32, %v630_v28 }
 0x1cb   : > { %v1599_v58 = vadd.f32 %v2703_v14, %v1567_v50  ;;  %v1291_v45 = vadd.f32 %v1259_v38, %v1223_v36  ;;  %v869_v44 = vmul.f32 %v4275_v5, %v4921_v37  ;;  %v870_v49 = vmul.f32 %v4279_v40, %v4921_v37  ;;  %v4404_v14 = vld [vmem:[#allocation2 + $0xb1] sm:$0xff]  ;;  %v4413_v36 = vld [vmem:[#allocation2 + $0xc9] sm:$0xff] }
 0x1cc   : > { %v1292_v15 = vadd.f32 %v1260_v51, %v1224_v10  ;;  %v797_v16 = vadd.f32 %v765_v61, %v729_v56  ;;  %v798_v29 = vadd.f32 %v766_v24, %v730_v46  ;;  %v937_v8 = vmul.f32 %v4399_v42, %v3493_v26 }
 0x1cd   : > { %v2605_v12 = vpop.eup %2604  ;;  %v1618_v34 = vpack.c.bf16 %v1599_v58, %v1598_v48  ;;  %v1330_v19 = vadd.f32 %v4283_v33, %v1291_v45  ;;  %v938_v38 = vmul.f32 %v4404_v14, %v3493_v26  ;;  %v1005_v51 = vmul.f32 %v4408_v4, %v3495_v27 }
 0x1ce   : > { %v2607_v31 = vpop.eup %2606  ;;  %v1442_v28 = vadd.f32 1.0, %v2605_v12  ;;  %v1331_v17 = vadd.f32 %v4283_v33, %v1292_v15  ;;  %v901_v6 = vadd.f32 %v869_v44, %v797_v16  ;;  %v902_v23 = vadd.f32 %v870_v49, %v798_v29  ;;  %v4423_v44 = vld [vmem:[#allocation9] ss:$0 sm:$0xff]  ;;  %v4433_v12 = vld [vmem:[#allocation11] ss:$0 sm:$0xff] }
 0x1cf   : > { %2398 = vmatprep.mubr.bf16.mxu1 %v1618_v34  ;;  %v1443_v32 = vadd.f32 1.0, %v2607_v31  ;;  %v1394_v50 = vmul.f32 0.70710677, %v1330_v19  ;;  %v1006_v61 = vmul.f32 %v4413_v36, %v3495_v27  ;;  %v4418_v48 = vmul.f32 0.5, %v1330_v19  ;;  %v4436_v19 = vld [vmem:[#allocation2 + $0xc2] sm:$0xff] }
 0x1d0   : > { %v1474_v24 = vmul.f32 %v1442_v28, %v4349_v1  ;;  %v1395_v10 = vmul.f32 0.70710677, %v1331_v17  ;;  %v969_v56 = vadd.f32 %v937_v8, %v901_v6  ;;  %v970_v58 = vadd.f32 %v938_v38, %v902_v23  ;;  %v4444_v31 = vld [vmem:[#allocation2 + $0x180] sm:$0xff]  ;;  %v4446_v28 = vld [vmem:[#allocation2 + $0x188] sm:$0xff] }
 0x1d1   : > { %v1475_v46 = vmul.f32 %v1443_v32, %v4355_v35  ;;  %2608 = verf.f32 %v1394_v50  ;;  %v1109_v45 = vmul.f32 %v4924_v11, %v4181_v22  ;;  %v1110_v1 = vmul.f32 %v4924_v11, %v4183_v41  ;;  %v4440_v41 = vld [vmem:[#allocation2 + $0xca] sm:$0xff] }
 0x1d2   : > { %v1513_v49 = vmul.f32 %v4423_v44, %v1474_v24  ;;  %2610 = verf.f32 %v1395_v10  ;;  %v1037_v15 = vadd.f32 %v1005_v51, %v969_v56  ;;  %v1038_v29 = vadd.f32 %v1006_v61, %v970_v58 }
 0x1d3   : > { %v1514_v16 = vmul.f32 %v4423_v44, %v1475_v46  ;;  %v1177_v35 = vmul.f32 %v3597_v62, %v4298_v59  ;;  %v1178_v8 = vmul.f32 %v3597_v62, %v4301_v53  ;;  %v1245_v38 = vmul.f32 %v4436_v19, %v4196_v3 }
 0x1d4   : > { %v1552_v22 = vadd.f32 %v4433_v12, %v1513_v49  ;;  %v1141_v34 = vadd.f32 %v1109_v45, %v1037_v15  ;;  %v1246_v51 = vmul.f32 %v4440_v41, %v4196_v3  ;;  %v1142_v23 = vadd.f32 %v1110_v1, %v1038_v29 }
 0x1d5   : > { %v1553_v6 = vadd.f32 %v4433_v12, %v1514_v16  ;;  %v645_v32 = vmul.f32 %v4916_v63, %v4202_v39  ;;  %v646_v50 = vmul.f32 %v4916_v63, %v4204_v55  ;;  %v713_v10 = vmul.f32 %v3485_v20, %v4313_v60 }
 0x1d6   : > { %v1584_v61 = vadd.f32 %v4275_v5, %v1552_v22  ;;  %v1209_v24 = vadd.f32 %v1177_v35, %v1141_v34  ;;  %v714_v56 = vmul.f32 %v3485_v20, %v4318_v0  ;;  %v1210_v58 = vadd.f32 %v1178_v8, %v1142_v23 }
 0x1d7   : > { %v1585_v46 = vadd.f32 %v4279_v40, %v1553_v6  ;;  %v781_v45 = vmul.f32 %v3487_v21, %v4444_v31  ;;  %v782_v39 = vmul.f32 %v3487_v21, %v4446_v28  ;;  %v745_v55 = vadd.f32 %v713_v10, %v645_v32  ;;  %v4473_v32 = vld [vmem:[#allocation2 + $0x181] sm:$0xff] }
 0x1d8   : > { %v1277_v49 = vadd.f32 %v1245_v38, %v1209_v24  ;;  %v746_v15 = vadd.f32 %v714_v56, %v646_v50  ;;  %v885_v5 = vmul.f32 %v4336_v54, %v4921_v37  ;;  %v1363_v16 = vmul.f32 0.5, %v1331_v17 }
 0x1d9   : > { %v1611_v1 = vpack.c.bf16 %v1585_v46, %v1584_v61  ;;  %v1278_v29 = vadd.f32 %v1246_v51, %v1210_v58  ;;  %v886_v35 = vmul.f32 %v4341_v7, %v4921_v37  ;;  %v813_v8 = vadd.f32 %v781_v45, %v745_v55  ;;  %v4477_v51 = vld [vmem:[#allocation2 + $0x189] sm:$0xff] }
 0x1da   : > { %v1316_v40 = vadd.f32 %v4283_v33, %v1277_v49  ;;  %v814_v22 = vadd.f32 %v782_v39, %v746_v15  ;;  %v953_v34 = vmul.f32 %v4345_v57, %v3493_v26  ;;  %v954_v23 = vmul.f32 %v4351_v9, %v3493_v26  ;;  %v4485_v55 = vld [vmem:[#allocation2 + $0x182] sm:$0xff] }
 0x1db   : > { %v2609_v6 = vpop.eup %2608  ;;  %2383 = vmatmul.mubr.bf16.gmra.mrb[8].mxu0 %v1611_v1  ;;  %v1317_v38 = vadd.f32 %v4283_v33, %v1278_v29  ;;  %v1021_v17 = vmul.f32 %v4473_v32, %v3495_v27  ;;  %v1022_v50 = vmul.f32 %v4477_v51, %v3495_v27  ;;  %v917_v56 = vadd.f32 %v885_v5, %v813_v8  ;;  %v4488_v29 = vld [vmem:[#allocation2 + $0x18a] sm:$0xff] }
 0x1dc   : > { %v2611_v61 = vpop.eup %2610  ;;  %v1458_v24 = vadd.f32 1.0, %v2609_v6  ;;  %v1380_v10 = vmul.f32 0.70710677, %v1316_v40  ;;  %v1125_v46 = vmul.f32 %v4924_v11, %v4237_v18  ;;  %v4483_v45 = vmul.f32 0.5, %v1316_v40 }
 0x1dd   : > { %v1459_v58 = vadd.f32 1.0, %v2611_v61  ;;  %v1381_v39 = vmul.f32 0.70710677, %v1317_v38  ;;  %v918_v49 = vadd.f32 %v886_v35, %v814_v22  ;;  %v985_v1 = vadd.f32 %v953_v34, %v917_v56 }
 0x1de   : > { %v1490_v15 = vmul.f32 %v1458_v24, %v4418_v48  ;;  %2612 = verf.f32 %v1380_v10  ;;  %v1126_v6 = vmul.f32 %v4924_v11, %v4240_v25  ;;  %v1193_v18 = vmul.f32 %v3597_v62, %v4357_v13 }
 0x1df   : > { %v1491_v5 = vmul.f32 %v1459_v58, %v1363_v16  ;;  %2614 = verf.f32 %v1381_v39  ;;  %v986_v8 = vadd.f32 %v954_v23, %v918_v49  ;;  %v1053_v35 = vadd.f32 %v1021_v17, %v985_v1  ;;  %v2720_v39 = vld [vmem:[#allocation2 + $0xd8] sm:$0xff] }
 0x1e0   : > { %v1529_v40 = vmul.f32 %v4423_v44, %v1490_v15  ;;  %v1194_v22 = vmul.f32 %v3597_v62, %v4359_v30  ;;  %v1261_v48 = vmul.f32 %v4196_v3, %v4485_v55  ;;  %v1262_v25 = vmul.f32 %v4196_v3, %v4488_v29 }
 0x1e1   : > { %v1530_v34 = vmul.f32 %v4423_v44, %v1491_v5  ;;  %v1054_v61 = vadd.f32 %v1022_v50, %v986_v8  ;;  %v631_v16 = vmul.f32 %v4916_v63, %v4252_v2  ;;  %v1157_v24 = vadd.f32 %v1125_v46, %v1053_v35  ;;  %v2721_v46 = vld [vmem:[#allocation2 + $0xe0] sm:$0xff] }
 0x1e2   : > { %v1568_v23 = vadd.f32 %v4433_v12, %v1529_v40  ;;  %v632_v17 = vmul.f32 %v4916_v63, %v4257_v43  ;;  %v699_v10 = vmul.f32 %v4387_v52, %v3485_v20  ;;  %v700_v50 = vmul.f32 %v4391_v47, %v3485_v20 }
 0x1e3   : > { %v1569_v56 = vadd.f32 %v4433_v12, %v1530_v34  ;;  %v1158_v58 = vadd.f32 %v1126_v6, %v1054_v61  ;;  %v767_v49 = vmul.f32 %v2720_v39, %v3487_v21  ;;  %v1225_v15 = vadd.f32 %v1193_v18, %v1157_v24  ;;  %v2723_v39 = vld [vmem:[#allocation2 + $0xe1] sm:$0xff] }
 0x1e4   : > { %v1600_v2 = vadd.f32 %v4336_v54, %v1568_v23  ;;  %v731_v1 = vadd.f32 %v699_v10, %v631_v16  ;;  %v768_v5 = vmul.f32 %v2721_v46, %v3487_v21  ;;  %v732_v52 = vadd.f32 %v700_v50, %v632_v17  ;;  %v2722_v17 = vld [vmem:[#allocation2 + $0xd9] sm:$0xff] }
 0x1e5   : > { %v1601_v43 = vadd.f32 %v4341_v7, %v1569_v56  ;;  %v1226_v8 = vadd.f32 %v1194_v22, %v1158_v58  ;;  %v871_v6 = vmul.f32 %v4399_v42, %v4921_v37  ;;  %v1293_v40 = vadd.f32 %v1261_v48, %v1225_v15 }
 0x1e6   : > { %v799_v35 = vadd.f32 %v767_v49, %v731_v1  ;;  %v872_v47 = vmul.f32 %v4404_v14, %v4921_v37  ;;  %v939_v54 = vmul.f32 %v4408_v4, %v3493_v26  ;;  %v800_v61 = vadd.f32 %v768_v5, %v732_v52 }
 0x1e7   : > { %v1619_v18 = vpack.c.bf16 %v1601_v43, %v1600_v2  ;;  %v1294_v34 = vadd.f32 %v1262_v25, %v1226_v8  ;;  %v940_v16 = vmul.f32 %v4413_v36, %v3493_v26  ;;  %v1349_v22 = vmul.f32 0.5, %v1317_v38 }
 0x1e8   : > { %v2613_v7 = vpop.eup %2612  ;;  %v1332_v23 = vadd.f32 %v4283_v33, %v1293_v40  ;;  %v903_v24 = vadd.f32 %v871_v6, %v799_v35  ;;  %v1007_v48 = vmul.f32 %v2722_v17, %v3495_v27  ;;  %v904_v50 = vadd.f32 %v872_v47, %v800_v61 }
 0x1e9   : > { %v2615_v10 = vpop.eup %2614  ;;  %2399 = vmatmul.mubr.bf16.gmra.mrb[8].mxu1 %v1619_v18  ;;  %v1444_v56 = vadd.f32 1.0, %v2613_v7  ;;  %v1333_v58 = vadd.f32 %v4283_v33, %v1294_v34  ;;  %v1008_v25 = vmul.f32 %v2723_v39, %v3495_v27  ;;  %v1111_v38 = vmul.f32 %v4924_v11, %v4298_v59 }
 0x1ea   : > { %v1445_v49 = vadd.f32 1.0, %v2615_v10  ;;  %v1396_v2 = vmul.f32 0.70710677, %v1332_v23  ;;  %v971_v15 = vadd.f32 %v939_v54, %v903_v24  ;;  %v972_v5 = vadd.f32 %v940_v16, %v904_v50  ;;  %v2724_v54 = vld [vmem:[#allocation2 + $0xda] sm:$0xff] }
 0x1eb   : > { %v1476_v1 = vmul.f32 %v1444_v56, %v4483_v45  ;;  %v1397_v46 = vmul.f32 0.70710677, %v1333_v58  ;;  %v1112_v52 = vmul.f32 %v4924_v11, %v4301_v53  ;;  %v1179_v35 = vmul.f32 %v4436_v19, %v3597_v62  ;;  %v2725_v53 = vld [vmem:[#allocation2 + $0xe2] sm:$0xff] }
 0x1ec   : > { %v1477_v43 = vmul.f32 %v1445_v49, %v1349_v22  ;;  %2616 = verf.f32 %v1396_v2  ;;  %v1039_v8 = vadd.f32 %v1007_v48, %v971_v15  ;;  %v1040_v40 = vadd.f32 %v1008_v25, %v972_v5  ;;  %v2726_v56 = vld [vmem:[#allocation2] sm:$0xff] }
 0x1ed   : > { %v1515_v6 = vmul.f32 %v4423_v44, %v1476_v1  ;;  %2618 = verf.f32 %v1397_v46  ;;  %v1180_v45 = vmul.f32 %v4440_v41, %v3597_v62  ;;  %v1247_v18 = vmul.f32 %v2724_v54, %v4196_v3  ;;  %v851_v2 = vld [vmem:[#allocation2 + $0x199] sm:$0xff] }
 0x1ee   : > { %v1516_v47 = vmul.f32 %v4423_v44, %v1477_v43  ;;  %v1143_v59 = vadd.f32 %v1111_v38, %v1039_v8  ;;  %v1144_v61 = vadd.f32 %v1112_v52, %v1040_v40  ;;  %v1248_v16 = vmul.f32 %v2725_v53, %v4196_v3 }
 0x1ef   : > { %v1554_v34 = vadd.f32 %v4433_v12, %v1515_v6  ;;  %v647_v7 = vmul.f32 %v4916_v63, %v4313_v60  ;;  %v648_v24 = vmul.f32 %v4916_v63, %v4318_v0  ;;  %v715_v41 = vmul.f32 %v3485_v20, %v4444_v31 }
 0x1f0   : > { %v1555_v19 = vadd.f32 %v4433_v12, %v1516_v47  ;;  %v1211_v22 = vadd.f32 %v1179_v35, %v1143_v59  ;;  %v1212_v48 = vadd.f32 %v1180_v45, %v1144_v61  ;;  %v716_v10 = vmul.f32 %v3485_v20, %v4446_v28  ;;  %v852_v28 = vld [vmem:[#allocation2 + $0x1a1] sm:$0xff] }
 0x1f1   : > { %v1586_v17 = vadd.f32 %v4399_v42, %v1554_v34  ;;  %v783_v50 = vmul.f32 %v2726_v56, %v3487_v21  ;;  %v747_v25 = vadd.f32 %v715_v41, %v647_v7  ;;  %v887_v49 = vmul.f32 %v4345_v57, %v4921_v37 }
 0x1f2   : > { %v1587_v60 = vadd.f32 %v4404_v14, %v1555_v19  ;;  %v1279_v39 = vadd.f32 %v1247_v18, %v1211_v22  ;;  %v1280_v63 = vadd.f32 %v1248_v16, %v1212_v48  ;;  %v748_v0 = vadd.f32 %v716_v10, %v648_v24  ;;  %v1092_v16 = vld [vmem:[#allocation2 + $0x1a2] sm:$0xff] }
 0x1f3   : > { %v888_v42 = vmul.f32 %v4351_v9, %v4921_v37  ;;  %v815_v20 = vadd.f32 %v783_v50, %v747_v25  ;;  %v955_v21 = vmul.f32 %v4473_v32, %v3493_v26  ;;  %v1364_v14 = vmul.f32 0.5, %v1332_v23 }
 0x1f4   : > { %v1612_v31 = vpack.c.bf16 %v1587_v60, %v1586_v17  ;;  %v1318_v15 = vadd.f32 %v4283_v33, %v1279_v39  ;;  %v1319_v38 = vadd.f32 %v4283_v33, %v1280_v63  ;;  %v816_v1 = vadd.f32 %v783_v50, %v748_v0 }
 0x1f5   : > { %v956_v46 = vmul.f32 %v4477_v51, %v3493_v26  ;;  %v1365_v43 = vmul.f32 0.5, %v1333_v58  ;;  %v919_v37 = vadd.f32 %v887_v49, %v815_v20  ;;  %v1023_v52 = vmul.f32 %v3495_v27, %v851_v2  ;;  %v1091_v58 = vld [vmem:[#allocation2 + $0x19a] sm:$0xff] }
 0x1f6   : > { %v2617_v5 = vpop.eup %2616  ;;  %2386 = vmatprep.mubr.bf16.mxu0 %v1612_v31  ;;  %v1382_v8 = vmul.f32 0.70710677, %v1318_v15  ;;  %v1383_v35 = vmul.f32 0.70710677, %v1319_v38  ;;  %v920_v47 = vadd.f32 %v888_v42, %v816_v1  ;;  %v1024_v59 = vmul.f32 %v3495_v27, %v852_v28 }
 0x1f7   : > { %v2619_v6 = vpop.eup %2618  ;;  %v1460_v40 = vadd.f32 1.0, %v2617_v5  ;;  %v987_v45 = vadd.f32 %v955_v21, %v919_v37  ;;  %v1127_v54 = vmul.f32 %v4924_v11, %v4357_v13  ;;  %v1128_v34 = vmul.f32 %v4924_v11, %v4359_v30 }
 0x1f8   : > { %v1461_v23 = vadd.f32 1.0, %v2619_v6  ;;  %2620 = verf.f32 %v1382_v8  ;;  %v988_v18 = vadd.f32 %v956_v46, %v920_v47  ;;  %v1195_v7 = vmul.f32 %v3597_v62, %v4485_v55 }
 0x1f9   : > { %v1492_v26 = vmul.f32 %v1460_v40, %v1364_v14  ;;  %2622 = verf.f32 %v1383_v35  ;;  %v1055_v53 = vadd.f32 %v1023_v52, %v987_v45  ;;  %v1196_v22 = vmul.f32 %v3597_v62, %v4488_v29 }
 0x1fa   : > { %v1493_v61 = vmul.f32 %v1461_v23, %v1365_v43  ;;  %v1056_v19 = vadd.f32 %v1024_v59, %v988_v18  ;;  %v1263_v41 = vmul.f32 %v4196_v3, %v1091_v58  ;;  %v1264_v30 = vmul.f32 %v4196_v3, %v1092_v16 }
 0x1fb   : > { %v1531_v27 = vmul.f32 %v4423_v44, %v1492_v26  ;;  %v1159_v24 = vadd.f32 %v1127_v54, %v1055_v53  ;;  %v1350_v62 = vmul.f32 0.5, %v1318_v15  ;;  %v1351_v49 = vmul.f32 0.5, %v1319_v38  ;;  %v4596_v54 = vld [vmem:[#allocation14] ss:$0 sm:$0xff] }
 0x1fc   : > { %v1532_v13 = vmul.f32 %v4423_v44, %v1493_v61  ;;  %v1160_v11 = vadd.f32 %v1128_v34, %v1056_v19 }
 0x1fd   : > { %v1570_v17 = vadd.f32 %v4433_v12, %v1531_v27  ;;  %v1227_v10 = vadd.f32 %v1195_v7, %v1159_v24 }
 0x1fe   : > { %v1571_v48 = vadd.f32 %v4433_v12, %v1532_v13  ;;  %v1228_v56 = vadd.f32 %v1196_v22, %v1160_v11 }
 0x1ff   : > { %v1602_v55 = vadd.f32 %v4345_v57, %v1570_v17  ;;  %v1295_v60 = vadd.f32 %v1263_v41, %v1227_v10 }
 0x200   : > { %v1603_v50 = vadd.f32 %v4351_v9, %v1571_v48  ;;  %v1296_v29 = vadd.f32 %v1264_v30, %v1228_v56 }
 0x201   : > { %v1334_v63 = vadd.f32 %v4283_v33, %v1295_v60 }
 0x202   : > { %v2621_v39 = vpop.eup %2620  ;;  %v1620_v25 = vpack.c.bf16 %v1603_v50, %v1602_v55  ;;  %v1335_v3 = vadd.f32 %v4283_v33, %v1296_v29 }
 0x203   : > { %v2623_v0 = vpop.eup %2622  ;;  %v1446_v2 = vadd.f32 1.0, %v2621_v39  ;;  %v1398_v31 = vmul.f32 0.70710677, %v1334_v63  ;;  %v1366_v46 = vmul.f32 0.5, %v1334_v63  ;;  %v4606_v39 = vld [vmem:[#allocation15] ss:$0 sm:$0xff] }
 0x204   : > { %2402 = vmatprep.mubr.bf16.mxu1 %v1620_v25  ;;  %v1447_v42 = vadd.f32 1.0, %v2623_v0  ;;  %v1399_v57 = vmul.f32 0.70710677, %v1335_v3  ;;  %v1367_v43 = vmul.f32 0.5, %v1335_v3 }
 0x205   : > { %v1478_v20 = vmul.f32 %v1446_v2, %v1350_v62  ;;  %2624 = verf.f32 %v1398_v31 }
 0x206   : > { %v1479_v28 = vmul.f32 %v1447_v42, %v1351_v49  ;;  %2626 = verf.f32 %v1399_v57  ;;  %v4608_v42 = vld [vmem:[#allocation17] ss:$0 sm:$0xff] }
 0x207   : > { %v1517_v9 = vmul.f32 %v4423_v44, %v1478_v20 }
 0x208   : > { %v1518_v15 = vmul.f32 %v4423_v44, %v1479_v28 }
 0x209   : > { %v1556_v21 = vadd.f32 %v4433_v12, %v1517_v9 }
 0x20a   : > { %v1557_v14 = vadd.f32 %v4433_v12, %v1518_v15 }
 0x20b   : > { %v1588_v38 = vadd.f32 %v4408_v4, %v1556_v21 }
 0x20c   : > { %v1589_v33 = vadd.f32 %v4413_v36, %v1557_v14 }
 0x20e   : > { %v1613_v1 = vpack.c.bf16 %v1589_v33, %v1588_v38 }
 0x20f   : > { %v2625_v5 = vpop.eup %2624 }
 0x210   : > { %2387 = vmatmul.mubr.bf16.gmra.mrb[12].mxu0 %v1613_v1  ;;  %v2627_v8 = vpop.eup %2626  ;;  %v1462_v37 = vadd.f32 1.0, %v2625_v5 }
 0x211   : > { %v1463_v52 = vadd.f32 1.0, %v2627_v8 }
 0x212   : > { %v1494_v6 = vmul.f32 %v1462_v37, %v1366_v46 }
 0x213   : > { %v1495_v40 = vmul.f32 %v1463_v52, %v1367_v43 }
 0x214   : > { %v1533_v35 = vmul.f32 %v4423_v44, %v1494_v6 }
 0x215   : > { %v1534_v47 = vmul.f32 %v4423_v44, %v1495_v40 }
 0x216   : > { %v1572_v59 = vadd.f32 %v4433_v12, %v1533_v35 }
 0x217   : > { %v1573_v4 = vadd.f32 %v4433_v12, %v1534_v47 }
 0x218   : > { %v1604_v36 = vadd.f32 %v4473_v32, %v1572_v59 }
 0x219   : > { %v1605_v23 = vadd.f32 %v4477_v51, %v1573_v4 }
 0x21b   : > { %v1621_v45 = vpack.c.bf16 %v1605_v23, %v1604_v36 }
 0x21d   : > { %2403 = vmatmul.mubr.bf16.gmra.mrb[12].mxu1 %v1621_v45 }
 0x24d   : > { %v2376_v26 = vpop.f32.mrb[0].mxu0 }
 0x24e   : > { %v1736_v18 = vadd.f32 %v2376_v26, %v4596_v54  ;;  %v1727_v58 = vpop.f32.mrb[1].mxu0 }
 0x24f   : > { %v1728_v34 = vadd.f32 %v4596_v54, %v1727_v58  ;;  %v2377_v61 = vpop.f32.mrb[2].mxu0 }
 0x250   : > { %v1888_v44 = vmul.f32 0.70710677, %v1736_v18  ;;  %v1739_v53 = vadd.f32 %v2377_v61, %v4596_v54  ;;  %v1730_v16 = vpop.f32.mrb[3].mxu0  ;;  %v1856_v60 = vmul.f32 0.5, %v1736_v18 }
 0x251   : > { %v1886_v12 = vmul.f32 0.70710677, %v1728_v34  ;;  %v1731_v32 = vadd.f32 %v4596_v54, %v1730_v16  ;;  %v1854_v25 = vmul.f32 0.5, %v1728_v34 }
 0x252   : > { %2628 = verf.f32 %v1888_v44  ;;  %v2392_v51 = vpop.f32.mrb[0].mxu1  ;;  %v1889_v7 = vmul.f32 0.70710677, %v1739_v53  ;;  %v1857_v2 = vmul.f32 0.5, %v1739_v53 }
 0x253   : > { %v1800_v27 = vadd.f32 %v2392_v51, %v4596_v54  ;;  %2630 = verf.f32 %v1886_v12  ;;  %v1791_v19 = vpop.f32.mrb[1].mxu1  ;;  %v1887_v22 = vmul.f32 0.70710677, %v1731_v32  ;;  %v1855_v20 = vmul.f32 0.5, %v1731_v32 }
 0x254   : > { %v1792_v13 = vadd.f32 %v4596_v54, %v1791_v19  ;;  %2632 = verf.f32 %v1889_v7  ;;  %v2393_v24 = vpop.f32.mrb[2].mxu1 }
 0x255   : > { %v1904_v41 = vmul.f32 0.70710677, %v1800_v27  ;;  %v1803_v17 = vadd.f32 %v2393_v24, %v4596_v54  ;;  %2634 = verf.f32 %v1887_v22  ;;  %v1794_v11 = vpop.f32.mrb[3].mxu1  ;;  %v1872_v15 = vmul.f32 0.5, %v1800_v27 }
 0x256   : > { %v1902_v30 = vmul.f32 0.70710677, %v1792_v13  ;;  %v1795_v48 = vadd.f32 %v4596_v54, %v1794_v11  ;;  %v1870_v1 = vmul.f32 0.5, %v1792_v13 }
 0x257   : > { %2636 = verf.f32 %v1904_v41  ;;  %v1905_v10 = vmul.f32 0.70710677, %v1803_v17  ;;  %v1873_v52 = vmul.f32 0.5, %v1803_v17 }
 0x258   : > { %2638 = verf.f32 %v1902_v30  ;;  %v1903_v55 = vmul.f32 0.70710677, %v1795_v48  ;;  %v1871_v23 = vmul.f32 0.5, %v1795_v48 }
 0x259   : > { %2640 = verf.f32 %v1905_v10 }
 0x25a   : > { %2642 = verf.f32 %v1903_v55 }
 0x25c   : > { %v2629_v56 = vpop.eup %2628 }
 0x25d   : > { %v2631_v50 = vpop.eup %2630  ;;  %v1952_v62 = vadd.f32 1.0, %v2629_v56 }
 0x25e   : > { %v2633_v29 = vpop.eup %2632  ;;  %v1950_v49 = vadd.f32 1.0, %v2631_v50 }
 0x25f   : > { %v2635_v63 = vpop.eup %2634  ;;  %v1984_v0 = vmul.f32 %v1952_v62, %v1856_v60  ;;  %v1953_v3 = vadd.f32 1.0, %v2633_v29 }
 0x260   : > { %v1982_v31 = vmul.f32 %v1950_v49, %v1854_v25  ;;  %v1951_v57 = vadd.f32 1.0, %v2635_v63 }
 0x261   : > { %v2637_v28 = vpop.eup %2636  ;;  %v2023_v9 = vmul.f32 %v4606_v39, %v1984_v0  ;;  %v1985_v21 = vmul.f32 %v1953_v3, %v1857_v2 }
 0x262   : > { %v2639_v14 = vpop.eup %2638  ;;  %v1968_v38 = vadd.f32 1.0, %v2637_v28  ;;  %v2021_v33 = vmul.f32 %v4606_v39, %v1982_v31  ;;  %v1983_v46 = vmul.f32 %v1951_v57, %v1855_v20 }
 0x263   : > { %v2641_v5 = vpop.eup %2640  ;;  %v2062_v43 = vadd.f32 %v4608_v42, %v2023_v9  ;;  %v1966_v8 = vadd.f32 1.0, %v2639_v14  ;;  %v2024_v37 = vmul.f32 %v4606_v39, %v1985_v21 }
 0x264   : > { %v2643_v6 = vpop.eup %2642  ;;  %v2000_v40 = vmul.f32 %v1968_v38, %v1872_v15  ;;  %v2060_v35 = vadd.f32 %v4608_v42, %v2021_v33  ;;  %v1969_v47 = vadd.f32 1.0, %v2641_v5  ;;  %v2022_v59 = vmul.f32 %v4606_v39, %v1983_v46 }
 0x265   : > { %2094 = vst [vmem:[%s4618_s16 + $0x10] sm:$0xff] %v2062_v43  ;;  %v1998_v4 = vmul.f32 %v1966_v8, %v1870_v1  ;;  %v2063_v36 = vadd.f32 %v4608_v42, %v2024_v37  ;;  %v1967_v45 = vadd.f32 1.0, %v2643_v6 }
 0x266   : > { %v2039_v26 = vmul.f32 %v4606_v39, %v2000_v40  ;;  %2092 = vst [vmem:[%s4618_s16] sm:$0xff] %v2060_v35  ;;  %v2001_v18 = vmul.f32 %v1969_v47, %v1873_v52  ;;  %v2061_v58 = vadd.f32 %v4608_v42, %v2022_v59 }
 0x267   : > { %v2037_v34 = vmul.f32 %v4606_v39, %v1998_v4  ;;  %2095 = vst [vmem:[%s4618_s16 + $0x18] sm:$0xff] %v2063_v36  ;;  %v1999_v61 = vmul.f32 %v1967_v45, %v1871_v23 }
 0x268   : > { %v2078_v44 = vadd.f32 %v4608_v42, %v2039_v26  ;;  %v2040_v53 = vmul.f32 %v4606_v39, %v2001_v18  ;;  %2093 = vst [vmem:[%s4618_s16 + $0x8] sm:$0xff] %v2061_v58 }
 0x269   : > { %v2076_v16 = vadd.f32 %v4608_v42, %v2037_v34  ;;  %v2038_v12 = vmul.f32 %v4606_v39, %v1999_v61 }
 0x26a   : > { %2110 = vst [vmem:[%s4618_s16 + $0x90] sm:$0xff] %v2078_v44  ;;  %v2079_v32 = vadd.f32 %v4608_v42, %v2040_v53 }
 0x26b   : > { %2108 = vst [vmem:[%s4618_s16 + $0x80] sm:$0xff] %v2076_v16  ;;  %v2077_v51 = vadd.f32 %v4608_v42, %v2038_v12 }
 0x26c   : > { %2111 = vst [vmem:[%s4618_s16 + $0x98] sm:$0xff] %v2079_v32 }
 0x26d   : > { %2109 = vst [vmem:[%s4618_s16 + $0x88] sm:$0xff] %v2077_v51 }
 0x279   : > { %v2380_v7 = vpop.f32.mrb[4].mxu0 }
 0x27a   : > { %v1752_v27 = vadd.f32 %v2380_v7, %v4596_v54  ;;  %v1743_v19 = vpop.f32.mrb[5].mxu0 }
 0x27b   : > { %v1744_v22 = vadd.f32 %v4596_v54, %v1743_v19  ;;  %v2381_v13 = vpop.f32.mrb[6].mxu0 }
 0x27c   : > { %v1892_v24 = vmul.f32 0.70710677, %v1752_v27  ;;  %v1755_v41 = vadd.f32 %v2381_v13, %v4596_v54  ;;  %v1746_v17 = vpop.f32.mrb[7].mxu0  ;;  %v1860_v29 = vmul.f32 0.5, %v1752_v27 }
 0x27d   : > { %v1890_v11 = vmul.f32 0.70710677, %v1744_v22  ;;  %v1747_v30 = vadd.f32 %v4596_v54, %v1746_v17  ;;  %v1858_v3 = vmul.f32 0.5, %v1744_v22 }
 0x27e   : > { %2644 = verf.f32 %v1892_v24  ;;  %v1893_v48 = vmul.f32 0.70710677, %v1755_v41  ;;  %v1861_v21 = vmul.f32 0.5, %v1755_v41 }
 0x27f   : > { %2646 = verf.f32 %v1890_v11  ;;  %v1891_v10 = vmul.f32 0.70710677, %v1747_v30  ;;  %v1859_v1 = vmul.f32 0.5, %v1747_v30 }
 0x280   : > { %2648 = verf.f32 %v1893_v48 }
 0x281   : > { %2650 = verf.f32 %v1891_v10 }
 0x287   : > { %v2396_v55 = vpop.f32.mrb[4].mxu1 }
 0x288   : > { %v2645_v56 = vpop.eup %2644  ;;  %v1816_v50 = vadd.f32 %v2396_v55, %v4596_v54  ;;  %v1807_v60 = vpop.f32.mrb[5].mxu1 }
 0x289   : > { %v2647_v62 = vpop.eup %2646  ;;  %v1956_v25 = vadd.f32 1.0, %v2645_v56  ;;  %v1808_v49 = vadd.f32 %v4596_v54, %v1807_v60  ;;  %v2397_v63 = vpop.f32.mrb[6].mxu1 }
 0x28a   : > { %v2649_v0 = vpop.eup %2648  ;;  %v1908_v2 = vmul.f32 0.70710677, %v1816_v50  ;;  %v1954_v31 = vadd.f32 1.0, %v2647_v62  ;;  %v1819_v20 = vadd.f32 %v2397_v63, %v4596_v54  ;;  %v1810_v57 = vpop.f32.mrb[7].mxu1  ;;  %v1876_v26 = vmul.f32 0.5, %v1816_v50 }
 0x28b   : > { %v2651_v28 = vpop.eup %2650  ;;  %v1988_v9 = vmul.f32 %v1956_v25, %v1860_v29  ;;  %v1906_v15 = vmul.f32 0.70710677, %v1808_v49  ;;  %v1957_v14 = vadd.f32 1.0, %v2649_v0  ;;  %v1811_v37 = vadd.f32 %v4596_v54, %v1810_v57 }
 0x28c   : > { %2652 = verf.f32 %v1908_v2  ;;  %v1986_v38 = vmul.f32 %v1954_v31, %v1858_v3  ;;  %v1909_v33 = vmul.f32 0.70710677, %v1819_v20  ;;  %v1955_v43 = vadd.f32 1.0, %v2651_v28 }
 0x28d   : > { %v2027_v46 = vmul.f32 %v4606_v39, %v1988_v9  ;;  %2654 = verf.f32 %v1906_v15  ;;  %v1989_v5 = vmul.f32 %v1957_v14, %v1861_v21  ;;  %v1907_v47 = vmul.f32 0.70710677, %v1811_v37 }
 0x28e   : > { %v2025_v8 = vmul.f32 %v4606_v39, %v1986_v38  ;;  %2656 = verf.f32 %v1909_v33  ;;  %v1987_v40 = vmul.f32 %v1955_v43, %v1859_v1  ;;  %v1874_v34 = vmul.f32 0.5, %v1808_v49 }
 0x28f   : > { %v2066_v52 = vadd.f32 %v4608_v42, %v2027_v46  ;;  %v2028_v6 = vmul.f32 %v4606_v39, %v1989_v5  ;;  %2658 = verf.f32 %v1907_v47  ;;  %v1877_v53 = vmul.f32 0.5, %v1819_v20 }
 0x290   : > { %v2064_v35 = vadd.f32 %v4608_v42, %v2025_v8  ;;  %v2026_v4 = vmul.f32 %v4606_v39, %v1987_v40  ;;  %v1875_v13 = vmul.f32 0.5, %v1811_v37 }
 0x291   : > { %2098 = vst [vmem:[%s4618_s16 + $0x30] sm:$0xff] %v2066_v52  ;;  %v2067_v59 = vadd.f32 %v4608_v42, %v2028_v6 }
 0x292   : > { %2096 = vst [vmem:[%s4618_s16 + $0x20] sm:$0xff] %v2064_v35  ;;  %v2065_v36 = vadd.f32 %v4608_v42, %v2026_v4 }
 0x293   : > { %2099 = vst [vmem:[%s4618_s16 + $0x38] sm:$0xff] %v2067_v59 }
 0x294   : > { %2097 = vst [vmem:[%s4618_s16 + $0x28] sm:$0xff] %v2065_v36 }
 0x296   : > { %v2653_v23 = vpop.eup %2652 }
 0x297   : > { %v2655_v45 = vpop.eup %2654  ;;  %v1972_v18 = vadd.f32 1.0, %v2653_v23 }
 0x298   : > { %v2657_v58 = vpop.eup %2656  ;;  %v1970_v61 = vadd.f32 1.0, %v2655_v45 }
 0x299   : > { %v2004_v44 = vmul.f32 %v1972_v18, %v1876_v26  ;;  %v1973_v16 = vadd.f32 1.0, %v2657_v58  ;;  %v2659_v7 = vpop.eup %2658 }
 0x29a   : > { %v2002_v12 = vmul.f32 %v1970_v61, %v1874_v34  ;;  %v1971_v24 = vadd.f32 1.0, %v2659_v7 }
 0x29b   : > { %v2043_v32 = vmul.f32 %v4606_v39, %v2004_v44  ;;  %v2005_v51 = vmul.f32 %v1973_v16, %v1877_v53 }
 0x29c   : > { %v2041_v27 = vmul.f32 %v4606_v39, %v2002_v12  ;;  %v2003_v11 = vmul.f32 %v1971_v24, %v1875_v13 }
 0x29d   : > { %v2082_v19 = vadd.f32 %v4608_v42, %v2043_v32  ;;  %v2044_v22 = vmul.f32 %v4606_v39, %v2005_v51 }
 0x29e   : > { %v2080_v41 = vadd.f32 %v4608_v42, %v2041_v27  ;;  %v2042_v30 = vmul.f32 %v4606_v39, %v2003_v11 }
 0x29f   : > { %2114 = vst [vmem:[%s4618_s16 + $0xb0] sm:$0xff] %v2082_v19  ;;  %v2083_v17 = vadd.f32 %v4608_v42, %v2044_v22 }
 0x2a0   : > { %2112 = vst [vmem:[%s4618_s16 + $0xa0] sm:$0xff] %v2080_v41  ;;  %v2081_v48 = vadd.f32 %v4608_v42, %v2042_v30 }
 0x2a1   : > { %2115 = vst [vmem:[%s4618_s16 + $0xb8] sm:$0xff] %v2083_v17 }
 0x2a2   : > { %2113 = vst [vmem:[%s4618_s16 + $0xa8] sm:$0xff] %v2081_v48 }
 0x2ae   : > { %v2384_v10 = vpop.f32.mrb[8].mxu0 }
 0x2af   : > { %v1768_v55 = vadd.f32 %v2384_v10, %v4596_v54  ;;  %v1759_v56 = vpop.f32.mrb[9].mxu0 }
 0x2b0   : > { %v1760_v50 = vadd.f32 %v4596_v54, %v1759_v56  ;;  %v2385_v60 = vpop.f32.mrb[10].mxu0 }
 0x2b1   : > { %v1896_v62 = vmul.f32 0.70710677, %v1768_v55  ;;  %v1771_v29 = vadd.f32 %v2385_v60, %v4596_v54  ;;  %v1762_v25 = vpop.f32.mrb[11].mxu0  ;;  %v1864_v9 = vmul.f32 0.5, %v1768_v55 }
 0x2b2   : > { %v1894_v49 = vmul.f32 0.70710677, %v1760_v50  ;;  %v1763_v63 = vadd.f32 %v4596_v54, %v1762_v25  ;;  %v1862_v1 = vmul.f32 0.5, %v1760_v50 }
 0x2b3   : > { %2660 = verf.f32 %v1896_v62  ;;  %v1897_v0 = vmul.f32 0.70710677, %v1771_v29  ;;  %v1865_v6 = vmul.f32 0.5, %v1771_v29 }
 0x2b4   : > { %2662 = verf.f32 %v1894_v49  ;;  %v1895_v2 = vmul.f32 0.70710677, %v1763_v63  ;;  %v1863_v59 = vmul.f32 0.5, %v1763_v63 }
 0x2b5   : > { %2664 = verf.f32 %v1897_v0 }
 0x2b6   : > { %2666 = verf.f32 %v1895_v2 }
 0x2bc   : > { %v2400_v3 = vpop.f32.mrb[8].mxu1 }
 0x2bd   : > { %v2661_v31 = vpop.eup %2660  ;;  %v1832_v20 = vadd.f32 %v2400_v3, %v4596_v54  ;;  %v1823_v57 = vpop.f32.mrb[9].mxu1 }
 0x2be   : > { %v2663_v28 = vpop.eup %2662  ;;  %v1960_v15 = vadd.f32 1.0, %v2661_v31  ;;  %v1824_v21 = vadd.f32 %v4596_v54, %v1823_v57  ;;  %v2401_v14 = vpop.f32.mrb[10].mxu1 }
 0x2bf   : > { %v2665_v38 = vpop.eup %2664  ;;  %v1912_v33 = vmul.f32 0.70710677, %v1832_v20  ;;  %v1958_v46 = vadd.f32 1.0, %v2663_v28  ;;  %v1835_v5 = vadd.f32 %v2401_v14, %v4596_v54  ;;  %v1826_v43 = vpop.f32.mrb[11].mxu1  ;;  %v1880_v7 = vmul.f32 0.5, %v1832_v20 }
 0x2c0   : > { %v2667_v8 = vpop.eup %2666  ;;  %v1992_v37 = vmul.f32 %v1960_v15, %v1864_v9  ;;  %v1910_v52 = vmul.f32 0.70710677, %v1824_v21  ;;  %v1961_v40 = vadd.f32 1.0, %v2665_v38  ;;  %v1827_v26 = vadd.f32 %v4596_v54, %v1826_v43 }
 0x2c1   : > { %2668 = verf.f32 %v1912_v33  ;;  %v1990_v35 = vmul.f32 %v1958_v46, %v1862_v1  ;;  %v1913_v47 = vmul.f32 0.70710677, %v1835_v5  ;;  %v1959_v23 = vadd.f32 1.0, %v2667_v8 }
 0x2c2   : > { %v2031_v4 = vmul.f32 %v4606_v39, %v1992_v37  ;;  %2670 = verf.f32 %v1910_v52  ;;  %v1993_v36 = vmul.f32 %v1961_v40, %v1865_v6  ;;  %v1911_v44 = vmul.f32 0.70710677, %v1827_v26 }
 0x2c3   : > { %v2029_v45 = vmul.f32 %v4606_v39, %v1990_v35  ;;  %2672 = verf.f32 %v1913_v47  ;;  %v1991_v34 = vmul.f32 %v1959_v23, %v1863_v59  ;;  %v1878_v22 = vmul.f32 0.5, %v1824_v21 }
 0x2c4   : > { %v2070_v18 = vadd.f32 %v4608_v42, %v2031_v4  ;;  %v2032_v58 = vmul.f32 %v4606_v39, %v1993_v36  ;;  %2674 = verf.f32 %v1911_v44  ;;  %v1881_v41 = vmul.f32 0.5, %v1835_v5 }
 0x2c5   : > { %v2068_v61 = vadd.f32 %v4608_v42, %v2029_v45  ;;  %v2030_v16 = vmul.f32 %v4606_v39, %v1991_v34  ;;  %v1879_v60 = vmul.f32 0.5, %v1827_v26 }
 0x2c6   : > { %2102 = vst [vmem:[%s4618_s16 + $0x50] sm:$0xff] %v2070_v18  ;;  %v2071_v53 = vadd.f32 %v4608_v42, %v2032_v58 }
 0x2c7   : > { %2100 = vst [vmem:[%s4618_s16 + $0x40] sm:$0xff] %v2068_v61  ;;  %v2069_v12 = vadd.f32 %v4608_v42, %v2030_v16 }
 0x2c8   : > { %2103 = vst [vmem:[%s4618_s16 + $0x58] sm:$0xff] %v2071_v53 }
 0x2c9   : > { %2101 = vst [vmem:[%s4618_s16 + $0x48] sm:$0xff] %v2069_v12 }
 0x2cb   : > { %v2669_v32 = vpop.eup %2668 }
 0x2cc   : > { %v2671_v51 = vpop.eup %2670  ;;  %v1976_v27 = vadd.f32 1.0, %v2669_v32 }
 0x2cd   : > { %v2673_v19 = vpop.eup %2672  ;;  %v1974_v13 = vadd.f32 1.0, %v2671_v51 }
 0x2ce   : > { %v2008_v24 = vmul.f32 %v1976_v27, %v1880_v7  ;;  %v1977_v17 = vadd.f32 1.0, %v2673_v19  ;;  %v2675_v10 = vpop.eup %2674 }
 0x2cf   : > { %v2006_v11 = vmul.f32 %v1974_v13, %v1878_v22  ;;  %v1975_v62 = vadd.f32 1.0, %v2675_v10 }
 0x2d0   : > { %v2047_v30 = vmul.f32 %v4606_v39, %v2008_v24  ;;  %v2009_v48 = vmul.f32 %v1977_v17, %v1881_v41 }
 0x2d1   : > { %v2045_v55 = vmul.f32 %v4606_v39, %v2006_v11  ;;  %v2007_v49 = vmul.f32 %v1975_v62, %v1879_v60 }
 0x2d2   : > { %v2086_v56 = vadd.f32 %v4608_v42, %v2047_v30  ;;  %v2048_v50 = vmul.f32 %v4606_v39, %v2009_v48 }
 0x2d3   : > { %v2084_v29 = vadd.f32 %v4608_v42, %v2045_v55  ;;  %v2046_v63 = vmul.f32 %v4606_v39, %v2007_v49 }
 0x2d4   : > { %2118 = vst [vmem:[%s4618_s16 + $0xd0] sm:$0xff] %v2086_v56  ;;  %v2087_v25 = vadd.f32 %v4608_v42, %v2048_v50 }
 0x2d5   : > { %2116 = vst [vmem:[%s4618_s16 + $0xc0] sm:$0xff] %v2084_v29  ;;  %v2085_v0 = vadd.f32 %v4608_v42, %v2046_v63 }
 0x2d6   : > { %2119 = vst [vmem:[%s4618_s16 + $0xd8] sm:$0xff] %v2087_v25 }
 0x2d7   : > { %2117 = vst [vmem:[%s4618_s16 + $0xc8] sm:$0xff] %v2085_v0 }
 0x2e3   : > { %v2388_v2 = vpop.f32.mrb[12].mxu0 }
 0x2e4   : > { %v1784_v3 = vadd.f32 %v2388_v2, %v4596_v54  ;;  %v1775_v31 = vpop.f32.mrb[13].mxu0 }
 0x2e5   : > { %v1776_v20 = vadd.f32 %v4596_v54, %v1775_v31  ;;  %v2389_v57 = vpop.f32.mrb[14].mxu0 }
 0x2e6   : > { %v1900_v28 = vmul.f32 0.70710677, %v1784_v3  ;;  %v1787_v9 = vadd.f32 %v2389_v57, %v4596_v54  ;;  %v1778_v15 = vpop.f32.mrb[15].mxu0  ;;  %v1868_v37 = vmul.f32 0.5, %v1784_v3 }
 0x2e7   : > { %v1898_v21 = vmul.f32 0.70710677, %v1776_v20  ;;  %v1779_v14 = vadd.f32 %v4596_v54, %v1778_v15  ;;  %v1866_v59 = vmul.f32 0.5, %v1776_v20 }
 0x2e8   : > { %2676 = verf.f32 %v1900_v28  ;;  %v1901_v38 = vmul.f32 0.70710677, %v1787_v9  ;;  %v1869_v58 = vmul.f32 0.5, %v1787_v9 }
 0x2e9   : > { %2678 = verf.f32 %v1898_v21  ;;  %v1899_v33 = vmul.f32 0.70710677, %v1779_v14  ;;  %v1867_v53 = vmul.f32 0.5, %v1779_v14 }
 0x2ea   : > { %2680 = verf.f32 %v1901_v38 }
 0x2eb   : > { %2682 = verf.f32 %v1899_v33 }
 0x2f0   : > { %v2404_v1 = vpop.f32.mrb[12].mxu1 }
 0x2f1   : > { %v1848_v5 = vadd.f32 %v2404_v1, %v4596_v54  ;;  %v1839_v43 = vpop.f32.mrb[13].mxu1 }
 0x2f2   : > { %v2677_v46 = vpop.eup %2676  ;;  %v1840_v6 = vadd.f32 %v4596_v54, %v1839_v43  ;;  %v2405_v40 = vpop.f32.mrb[14].mxu1 }
 0x2f3   : > { %v2679_v8 = vpop.eup %2678  ;;  %v1964_v52 = vadd.f32 1.0, %v2677_v46  ;;  %v1916_v47 = vmul.f32 0.70710677, %v1848_v5  ;;  %v1851_v36 = vadd.f32 %v2405_v40, %v4596_v54  ;;  %v1842_v23 = vpop.f32.mrb[15].mxu1  ;;  %v1884_v48 = vmul.f32 0.5, %v1848_v5 }
 0x2f4   : > { %v2681_v35 = vpop.eup %2680  ;;  %v1962_v4 = vadd.f32 1.0, %v2679_v8  ;;  %v1914_v18 = vmul.f32 0.70710677, %v1840_v6  ;;  %v1843_v7 = vadd.f32 %v4596_v54, %v1842_v23  ;;  %v1882_v56 = vmul.f32 0.5, %v1840_v6 }
 0x2f5   : > { %v2683_v45 = vpop.eup %2682  ;;  %v1996_v26 = vmul.f32 %v1964_v52, %v1868_v37  ;;  %v1965_v34 = vadd.f32 1.0, %v2681_v35  ;;  %2684 = verf.f32 %v1916_v47  ;;  %v1917_v44 = vmul.f32 0.70710677, %v1851_v36 }
 0x2f6   : > { %v1994_v61 = vmul.f32 %v1962_v4, %v1866_v59  ;;  %2686 = verf.f32 %v1914_v18  ;;  %v1963_v32 = vadd.f32 1.0, %v2683_v45  ;;  %v1915_v24 = vmul.f32 0.70710677, %v1843_v7 }
 0x2f7   : > { %v2035_v16 = vmul.f32 %v4606_v39, %v1996_v26  ;;  %v1997_v12 = vmul.f32 %v1965_v34, %v1869_v58  ;;  %2688 = verf.f32 %v1917_v44  ;;  %v1885_v62 = vmul.f32 0.5, %v1851_v36 }
 0x2f8   : > { %v2033_v51 = vmul.f32 %v4606_v39, %v1994_v61  ;;  %v1995_v22 = vmul.f32 %v1963_v32, %v1867_v53  ;;  %2690 = verf.f32 %v1915_v24  ;;  %v1883_v20 = vmul.f32 0.5, %v1843_v7 }
 0x2f9   : > { %v2074_v27 = vadd.f32 %v4608_v42, %v2035_v16  ;;  %v2036_v19 = vmul.f32 %v4606_v39, %v1997_v12 }
 0x2fa   : > { %v2072_v13 = vadd.f32 %v4608_v42, %v2033_v51  ;;  %v2034_v17 = vmul.f32 %v4606_v39, %v1995_v22 }
 0x2fb   : > { %2106 = vst [vmem:[%s4618_s16 + $0x70] sm:$0xff] %v2074_v27  ;;  %v2075_v41 = vadd.f32 %v4608_v42, %v2036_v19 }
 0x2fc   : > { %2104 = vst [vmem:[%s4618_s16 + $0x60] sm:$0xff] %v2072_v13  ;;  %v2073_v11 = vadd.f32 %v4608_v42, %v2034_v17 }
 0x2fd   : > { %2107 = vst [vmem:[%s4618_s16 + $0x78] sm:$0xff] %v2075_v41 }
 0x2fe   : > { %2105 = vst [vmem:[%s4618_s16 + $0x68] sm:$0xff] %v2073_v11 }
 0x2ff   : > { %v2685_v54 = vpop.eup %2684 }
 0x300   : > { %v2687_v30 = vpop.eup %2686  ;;  %v1980_v10 = vadd.f32 1.0, %v2685_v54 }
 0x301   : > { %v2689_v55 = vpop.eup %2688  ;;  %v1978_v50 = vadd.f32 1.0, %v2687_v30 }
 0x302   : > { %v2012_v60 = vmul.f32 %v1980_v10, %v1884_v48  ;;  %v1981_v29 = vadd.f32 1.0, %v2689_v55  ;;  %v2691_v0 = vpop.eup %2690 }
 0x303   : > { %v2010_v25 = vmul.f32 %v1978_v50, %v1882_v56  ;;  %v1979_v57 = vadd.f32 1.0, %v2691_v0 }
 0x304   : > { %v2051_v49 = vmul.f32 %v4606_v39, %v2012_v60  ;;  %v2013_v63 = vmul.f32 %v1981_v29, %v1885_v62 }
 0x305   : > { %v2049_v2 = vmul.f32 %v4606_v39, %v2010_v25  ;;  %v2011_v15 = vmul.f32 %v1979_v57, %v1883_v20 }
 0x306   : > { %v2090_v3 = vadd.f32 %v4608_v42, %v2051_v49  ;;  %v2052_v31 = vmul.f32 %v4606_v39, %v2013_v63 }
 0x307   : > { %v2088_v28 = vadd.f32 %v4608_v42, %v2049_v2  ;;  %v2050_v21 = vmul.f32 %v4606_v39, %v2011_v15 }
 0x308   : > { %2122 = vst [vmem:[%s4618_s16 + $0xf0] sm:$0xff] %v2090_v3  ;;  %v2091_v9 = vadd.f32 %v4608_v42, %v2052_v31 }
 0x309   : > { %2120 = vst [vmem:[%s4618_s16 + $0xe0] sm:$0xff] %v2088_v28  ;;  %v2089_v14 = vadd.f32 %v4608_v42, %v2050_v21 }
 0x30a   : > { %2123 = vst [vmem:[%s4618_s16 + $0xf8] sm:$0xff] %v2091_v9 }
 0x30b   : > { %2121 = vst [vmem:[%s4618_s16 + $0xe8] sm:$0xff] %v2089_v14 }
 0x30c   : > { %2994 = shalt.err (!%p2991_p10)
}
 0x30d   : > { %s2995_s17 = scalar_lea.hbm %s4737_s3, 4096  ;;  %s2999_s16 = scalar_lea.hbm %s4934_s26, 8192 }
 0x30e   : > { %p2996_p11 = scmp.ne.s32.totalorder %s4737_s3, %s2995_s17  ;;  %p3000_p7 = scmp.lt.u32.totalorder %s4737_s3, %s4934_s26 }
 0x30f   : > { %p3001_p6 = scmp.lt.u32.totalorder %s2999_s16, %s2995_s17  ;;  %p3003_p12 = scmp.lt.u32.totalorder %s2995_s17, %s4737_s3 }
 0x310   : > { %p2997_p0 = pnand %p2996_p11, %p4935_p13 }
 0x311   : > { %p3002_p9 = por %p3001_p6, %p3000_p7 }
 0x312   : > { %p2998_p5 = pneg %p2997_p0 }
 0x313   : > { %p3004_p1 = por %p3003_p12, %p3002_p9 }
 0x315   : > { %p3005_p3 = pnand %p3004_p1, %p2998_p5 }
 0x317   : > { %3008 = shalt.err (!%p3005_p3)
}
 0x318   : > { %s3080_s27 = smov 128   ;;  %s3081_s15 = smov 8  }
 0x319   : > { %2456 = dma.vmem_to_hbm [thread:$0]  (%p4935_p13), %s4739_s20, 4096, %s4737_s3, %s2125_s9, %s3080_s27, %s3080_s27, %s3081_s15  }
 0x31a PF: > { %s2153_s25 = sand.u32 1, %s3051_s30   ;;  %p4936_p2 = scmp.ne.s32.totalorder %s4851_s18, 0 }
 0x31b   : > { %p4937_p8 = scmp.ge.s32.totalorder %s3063_s12, 2  ;;  %s2154_s22 = scalar_lea.sflag [#allocation5], %s2153_s25 }
 0x31d   : > { %p2488_p4 = pnand %p4937_p8, %p4936_p2 }
 0x31f   : > { %3046 = dma.done.wait (!%p2488_p4), %s2154_s22, 4096  }
 0x320   : > { %3048 = vsyncadd (!%p2488_p4), %s2154_s22, 4294963200  ;;  %p26_p10 = scmp.ge.s32.totalorder %s3348_s19, 4   ;;  %s4938_s30 = smov %s3055_s10 }
 0x321   : > { %s4939_s10 = smov %s3059_s11  ;;  %s4940_s11 = smov %s3359_s28 }
 0x322   : > { %s4941_s12 = smov %s3348_s19  ;;  %28 = sbr.rel (!%p26_p10) target bundleno = 13 (0xd), region = 134 }
 0x329   :  { %2159 = vsyncpa [#allocation4], 1 }
 0x32a   :  { %2161 = vsyncpa [#allocation4 + $0x1], 1 }
 0x32b   :  { %2162 = vsyncpa [#allocation7], 1 }
 0x32c   :  { %2163 = vsyncpa [#allocation10], 1 }
 0x32d   :  { %2164 = vsyncpa [#allocation13], 1 }
 0x32e   :  { %2165 = vsyncpa [#allocation16], 1 }
 0x32f   :  { %2166 = vsyncpa [#allocation5], 1 }
 0x330   :  { %2168 = vsyncpa [#allocation5 + $0x1], 1 }

</bundles_post_ra>
